<compile_context>
chip_gen: v7x
topology: tpu7x:2x2x1
jax: 0.10.0
libtpu: 0.0.40
codegen_flags: <defaults>
</compile_context>

<pallas_src>
import numpy as np
import jax
import jax.numpy as jnp
from jax import lax
from jax.experimental import pallas as pl
from jax.experimental.pallas import tpu as pltpu


def _pix_to_ndc_consts(s1, s2):
    # PyTorch3D non-square NDC: the shorter image side spans [-1, 1], the longer
    # side is scaled by the aspect ratio.  ndc(i) = offset + scale * (i + 0.5)
    rng = 2.0 if s1 <= s2 else 2.0 * s1 / s2
    return -rng / 2.0, rng / s1


def _depth_raster_kernel(pixf_ref, ptf_ref, pz_ref, zbuf_ref):
    """One (pixel-block, point-chunk) grid step.

    pixf_ref: (block_rows, 8, block_l)  pixel features, pixels on lanes
    ptf_ref : (chunk_n, 8)              point features
    pz_ref  : (chunk_n, 1)              point depth (+inf for culled/padded)
    zbuf_ref: (block_rows, block_l)     running min-z, resident across chunks
    """
    c = pl.program_id(1)
    block_rows, block_l = zbuf_ref.shape
    chunk_n = ptf_ref.shape[0]

    @pl.when(c == 0)
    def _init():
        zbuf_ref[...] = jnp.full((block_rows, block_l), jnp.inf, dtype=jnp.float32)

    ptf = ptf_ref[...]                                          # (N, 8)
    # Hoist the lane-broadcast of z out of the row loop (no CSE inside loops).
    pzb = jnp.broadcast_to(pz_ref[...], (chunk_n, block_l))     # (N, L)

    for s in range(block_rows):
        pixf = pixf_ref[s]                                      # (8, L)
        # score[n, l] = d2(point n, pixel l) - r^2   (distance math on the MXU)
        score = jnp.dot(ptf, pixf,
                        preferred_element_type=jnp.float32,
                        precision=lax.Precision.HIGHEST)        # (N, L)
        cand = jnp.where(score < 0.0, pzb, jnp.inf)             # hit -> z, else +inf
        part = jnp.min(cand, axis=0, keepdims=True)             # (1, L) min over points
        cur = zbuf_ref[pl.ds(s, 1), :]
        zbuf_ref[pl.ds(s, 1), :] = jnp.minimum(cur, part)

    @pl.when(c == pl.num_programs(1) - 1)
    def _finalize():
        z = zbuf_ref[...]
        # PyTorch3D fills zbuf with -1 where no point covers the pixel.
        # (z == +inf was the behind-camera / padding sentinel, so it counts as "no hit".)
        zbuf_ref[...] = jnp.where(jnp.isinf(z), jnp.float32(-1.0), z)


def depth_rasterize(points_ndc, image_size, radius=0.005, *,
                    block_l=512, block_rows=32, chunk_n=256):
    """points_ndc: [P, 3] float32 (x, y, z) in PyTorch3D NDC.  Returns [H, W] zbuf.

    block_l    : lane width of a pixel block (multiple of 128).
    block_rows : sublane rows per pixel block (multiple of 8); one kernel step
                 covers block_rows * block_l flattened pixels.
    chunk_n    : points per streamed chunk (256 suits v6e/v7x MXU, 128 for v5e).
    """
    H, W = image_size
    n_pix = H * W
    assert n_pix % 1024 == 0, "H*W must be a multiple of 1024"
    assert chunk_n % 8 == 0

    block_l = min(block_l, n_pix // 8)
    while n_pix % (8 * block_l) != 0:
        block_l //= 2
    assert block_l >= 128 and block_l % 128 == 0, "could not pick a lane-dense pixel block"
    R = n_pix // block_l                       # rows of the flattened output
    block_rows = min(block_rows, R)
    while R % block_rows != 0:
        block_rows -= 8
    assert block_rows >= 8 and block_rows % 8 == 0
    n_blocks = R // block_rows                 # "parallel" grid steps

    P = points_ndc.shape[0]
    p_pad = pl.cdiv(P, chunk_n) * chunk_n
    r2 = jnp.float32(float(radius) * float(radius))

    px = points_ndc[:, 0].astype(jnp.float32)
    py = points_ndc[:, 1].astype(jnp.float32)
    pz = points_ndc[:, 2].astype(jnp.float32)
    # Cull behind-camera points up front: +inf never wins the z-min.
    pz = jnp.where(pz < 0.0, jnp.inf, pz)

    zeros_p = jnp.zeros_like(px)
    ptfeat = jnp.stack([-2.0 * px, -2.0 * py, jnp.ones_like(px),
                        px * px + py * py - r2,
                        zeros_p, zeros_p, zeros_p, zeros_p], axis=1)     # (P, 8)
    ptfeat = jnp.pad(ptfeat, ((0, p_pad - P), (0, 0)))
    pz_col = jnp.pad(pz[:, None], ((0, p_pad - P), (0, 0)),
                     constant_values=jnp.inf)                            # (p_pad, 1)

    # Pixel features for the flattened (row-major) image, pixels on the lane axis.
    flat = jnp.arange(n_pix, dtype=jnp.int32)
    row = flat // W
    col = flat % W
    y_off, y_scale = _pix_to_ndc_consts(H, W)
    x_off, x_scale = _pix_to_ndc_consts(W, H)
    # PyTorch3D flips both image axes before the pixel->NDC mapping.
    yi = (H - 1 - row).astype(jnp.float32)
    xi = (W - 1 - col).astype(jnp.float32)
    yf = jnp.float32(y_off) + jnp.float32(y_scale) * (yi + 0.5)
    xf = jnp.float32(x_off) + jnp.float32(x_scale) * (xi + 0.5)
    ones = jnp.ones_like(xf)
    zeros = jnp.zeros_like(xf)
    pixfeat = jnp.stack([xf, yf, xf * xf + yf * yf, ones,
                         zeros, zeros, zeros, zeros], axis=0)            # (8, n_pix)
    pixfeat = pixfeat.reshape(8, R, block_l).transpose(1, 0, 2)          # (R, 8, L)

    zflat = pl.pallas_call(
        _depth_raster_kernel,
        out_shape=jax.ShapeDtypeStruct((R, block_l), jnp.float32),
        grid=(n_blocks, p_pad // chunk_n),
        in_specs=[
            pl.BlockSpec((block_rows, 8, block_l), lambda i, c: (i, 0, 0)),
            pl.BlockSpec((chunk_n, 8), lambda i, c: (c, 0)),
            pl.BlockSpec((chunk_n, 1), lambda i, c: (c, 0)),
        ],
        out_specs=pl.BlockSpec((block_rows, block_l), lambda i, c: (i, 0)),
        compiler_params=pltpu.CompilerParams(
            dimension_semantics=("parallel", "arbitrary")),
    )(pixfeat, ptfeat, pz_col)
    return zflat.reshape(H, W)


def _reference_rasterize(points, H, W, radius2):
    """Pure numpy reference of PyTorch3D rasterize_points zbuf[0, ..., 0]."""
    px, py, pz = points[:, 0], points[:, 1], points[:, 2]
    y_off, y_scale = _pix_to_ndc_consts(H, W)
    x_off, x_scale = _pix_to_ndc_consts(W, H)
    yi = (H - 1 - np.arange(H)).astype(np.float32)
    xi = (W - 1 - np.arange(W)).astype(np.float32)
    yf = np.float32(y_off) + np.float32(y_scale) * (yi + np.float32(0.5))
    xf = np.float32(x_off) + np.float32(x_scale) * (xi + np.float32(0.5))
    dx = xf[None, None, :] - px[:, None, None]
    dy = yf[None, :, None] - py[:, None, None]
    d2 = dx * dx + dy * dy
    hit = (d2 < np.float32(radius2)) & (pz[:, None, None] >= 0.0)
    cand = np.where(hit, pz[:, None, None], np.inf).astype(np.float32)
    z = cand.min(axis=0)
    return np.where(np.isinf(z), np.float32(-1.0), z)


if __name__ == "__main__":
    # Deterministic synthetic point cloud (no checkpoint / mesh files).
    key = jax.random.PRNGKey(0)
    H, W = 48, 64             # image_size = (height, width)
    P = 300                   # number of points
    radius = 0.1              # NDC radius (default 0.005 would rarely hit at this res)

    kx, ky, kz = jax.random.split(key, 3)
    x_range = 1.0 if W <= H else float(W) / H     # longer-side NDC half-range
    y_range = 1.0 if H <= W else float(H) / W
    px = jax.random.uniform(kx, (P,), jnp.float32, -x_range, x_range)
    py = jax.random.uniform(ky, (P,), jnp.float32, -y_range, y_range)
    pz = jax.random.uniform(kz, (P,), jnp.float32, -0.5, 2.0)  # some behind camera
    points = jnp.stack([px, py, pz], axis=-1)      # [P, 3]

    zbuf = depth_rasterize(points, (H, W), radius=radius,
                           block_l=128, block_rows=8, chunk_n=128)
    zbuf = jax.block_until_ready(zbuf)
    zb = np.asarray(zbuf)

    # Reference check.  The kernel evaluates the radius test in the MXU-expanded
    # form d2 - r^2 = x^2+y^2 - 2x*px - 2y*py + (px^2+py^2 - r^2), which can
    # differ from the direct form by a few f32 ulps right at the circle
    # boundary, so compare exactly on every pixel whose result is stable under
    # a tiny r^2 perturbation (covers boundary rounding, excludes ~<5% pixels).
    pts_np = np.asarray(points, dtype=np.float32)
    r2 = float(radius) * float(radius)
    delta = 1e-4
    ref = _reference_rasterize(pts_np, H, W, r2)
    ref_lo = _reference_rasterize(pts_np, H, W, r2 - delta)
    ref_hi = _reference_rasterize(pts_np, H, W, r2 + delta)
    stable = ref_lo == ref_hi

    assert zb.shape == (H, W) and zb.dtype == np.float32
    assert stable.mean() > 0.9, "test setup: too many boundary pixels"
    assert np.array_equal(zb[stable], ref[stable]), "mismatch vs reference"
    print("KERNEL_OK")
</pallas_src>

<mosaic_0001>
module attributes {stable_mosaic.version = 11 : i64} {
  func.func @_depth_raster_kernel(%arg0: i32, %arg1: i32, %arg2: memref<8x8x128xf32, #tpu.memory_space<vmem>>, %arg3: memref<128x8xf32, #tpu.memory_space<vmem>>, %arg4: memref<128x1xf32, #tpu.memory_space<vmem>>, %arg5: memref<8x128xf32, #tpu.memory_space<vmem>>) attributes {dimension_semantics = [#tpu.dimension_semantics<parallel>, #tpu.dimension_semantics<arbitrary>], iteration_bounds = array<i64: 3, 3>, scalar_prefetch = 0 : i64, scratch_operands = 0 : i64, tpu.core_type = #tpu.core_type<tc>, window_params = [{transform_indices = @transform_0, window_bounds = array<i64: 8, 8, 128>}, {transform_indices = @transform_1, window_bounds = array<i64: 128, 8>}, {transform_indices = @transform_2, window_bounds = array<i64: 128, 1>}, {transform_indices = @transform_3, window_bounds = array<i64: 8, 128>}]} {
    %c0_i32 = arith.constant 0 : i32
    %0 = arith.cmpi eq, %arg1, %c0_i32 : i32
    %1 = arith.extui %0 : i1 to i32
    %c0_i32_0 = arith.constant 0 : i32
    %2 = arith.cmpi ne, %1, %c0_i32_0 : i32
    scf.if %2 {
      %cst_85 = arith.constant 0x7F800000 : f32
      %106 = vector.broadcast %cst_85 : f32 to vector<8x128xf32>
      %c0_86 = arith.constant 0 : index
      %c0_87 = arith.constant 0 : index
      %107 = vector.load %arg5[%c0_86, %c0_87] : memref<8x128xf32, #tpu.memory_space<vmem>>, vector<8x128xf32>
      tpu.vector_store %arg5[%c0_86, %c0_87], %106 {strides = array<i32>} : memref<8x128xf32, #tpu.memory_space<vmem>>, vector<8x128xf32>,
    } else {
    }
    %c0 = arith.constant 0 : index
    %c0_1 = arith.constant 0 : index
    %3 = vector.load %arg3[%c0, %c0_1] : memref<128x8xf32, #tpu.memory_space<vmem>>, vector<128x8xf32>
    %c0_2 = arith.constant 0 : index
    %c0_3 = arith.constant 0 : index
    %4 = vector.load %arg4[%c0_2, %c0_3] : memref<128x1xf32, #tpu.memory_space<vmem>>, vector<128x1xf32>
    %5 = vector.shape_cast %4 : vector<128x1xf32> to vector<128x1xf32>
    %6 = vector.broadcast %5 : vector<128x1xf32> to vector<128x128xf32>
    %c0_4 = arith.constant 0 : index
    %c0_5 = arith.constant 0 : index
    %c0_6 = arith.constant 0 : index
    %7 = vector.load %arg2[%c0_4, %c0_5, %c0_6] : memref<8x8x128xf32, #tpu.memory_space<vmem>>, vector<1x8x128xf32>
    %8 = vector.shape_cast %7 : vector<1x8x128xf32> to vector<8x128xf32>
    %cst = arith.constant dense<0.000000e+00> : vector<128x128xf32>
    %9 = tpu.matmul %3, %8, %cst {dimension_numbers = #tpu.dot_dimension_numbers<[1], [0], [0], [1], [0, 0, 1, 1], [], []>, precision = #tpu.contract_precision<fp32>} : vector<128x8xf32>, vector<8x128xf32>, vector<128x128xf32> -> vector<128x128xf32>
    %cst_7 = arith.constant 0.000000e+00 : f32
    %10 = vector.broadcast %cst_7 : f32 to vector<128x128xf32>
    %11 = arith.cmpf olt, %9, %10 : vector<128x128xf32>
    %cst_8 = arith.constant 0x7F800000 : f32
    %12 = vector.broadcast %cst_8 : f32 to vector<128x128xf32>
    %13 = arith.select %11, %6, %12 : vector<128x128xi1>, vector<128x128xf32>
    %cst_9 = arith.constant dense<0x7F800000> : vector<128xf32>
    %14 = vector.multi_reduction <minimumf>, %13, %cst_9 [0] : vector<128x128xf32> to vector<128xf32>
    %15 = vector.shape_cast %14 : vector<128xf32> to vector<1x128xf32>
    %c0_10 = arith.constant 0 : index
    %c0_11 = arith.constant 0 : index
    %16 = vector.load %arg5[%c0_10, %c0_11] : memref<8x128xf32, #tpu.memory_space<vmem>>, vector<1x128xf32>
    %17 = arith.minimumf %16, %15 : vector<1x128xf32>
    %c0_12 = arith.constant 0 : index
    %c0_13 = arith.constant 0 : index
    %18 = vector.load %arg5[%c0_12, %c0_13] : memref<8x128xf32, #tpu.memory_space<vmem>>, vector<1x128xf32>
    tpu.vector_store %arg5[%c0_12, %c0_13], %17 {strides = array<i32>} : memref<8x128xf32, #tpu.memory_space<vmem>>, vector<1x128xf32>,
    %c1 = arith.constant 1 : index
    %c0_14 = arith.constant 0 : index
    %c0_15 = arith.constant 0 : index
    %19 = vector.load %arg2[%c1, %c0_14, %c0_15] : memref<8x8x128xf32, #tpu.memory_space<vmem>>, vector<1x8x128xf32>
    %20 = vector.shape_cast %19 : vector<1x8x128xf32> to vector<8x128xf32>
    %cst_16 = arith.constant dense<0.000000e+00> : vector<128x128xf32>
    %21 = tpu.matmul %3, %20, %cst_16 {dimension_numbers = #tpu.dot_dimension_numbers<[1], [0], [0], [1], [0, 0, 1, 1], [], []>, precision = #tpu.contract_precision<fp32>} : vector<128x8xf32>, vector<8x128xf32>, vector<128x128xf32> -> vector<128x128xf32>
    %cst_17 = arith.constant 0.000000e+00 : f32
    %22 = vector.broadcast %cst_17 : f32 to vector<128x128xf32>
    %23 = arith.cmpf olt, %21, %22 : vector<128x128xf32>
    %cst_18 = arith.constant 0x7F800000 : f32
    %24 = vector.broadcast %cst_18 : f32 to vector<128x128xf32>
    %25 = arith.select %23, %6, %24 : vector<128x128xi1>, vector<128x128xf32>
    %cst_19 = arith.constant dense<0x7F800000> : vector<128xf32>
    %26 = vector.multi_reduction <minimumf>, %25, %cst_19 [0] : vector<128x128xf32> to vector<128xf32>
    %27 = vector.shape_cast %26 : vector<128xf32> to vector<1x128xf32>
    %c1_20 = arith.constant 1 : index
    %c0_21 = arith.constant 0 : index
    %28 = vector.load %arg5[%c1_20, %c0_21] : memref<8x128xf32, #tpu.memory_space<vmem>>, vector<1x128xf32>
    %29 = arith.minimumf %28, %27 : vector<1x128xf32>
    %c1_22 = arith.constant 1 : index
    %c0_23 = arith.constant 0 : index
    %30 = vector.load %arg5[%c1_22, %c0_23] : memref<8x128xf32, #tpu.memory_space<vmem>>, vector<1x128xf32>
    tpu.vector_store %arg5[%c1_22, %c0_23], %29 {strides = array<i32>} : memref<8x128xf32, #tpu.memory_space<vmem>>, vector<1x128xf32>,
    %c2 = arith.constant 2 : index
    %c0_24 = arith.constant 0 : index
    %c0_25 = arith.constant 0 : index
    %31 = vector.load %arg2[%c2, %c0_24, %c0_25] : memref<8x8x128xf32, #tpu.memory_space<vmem>>, vector<1x8x128xf32>
    %32 = vector.shape_cast %31 : vector<1x8x128xf32> to vector<8x128xf32>
    %cst_26 = arith.constant dense<0.000000e+00> : vector<128x128xf32>
    %33 = tpu.matmul %3, %32, %cst_26 {dimension_numbers = #tpu.dot_dimension_numbers<[1], [0], [0], [1], [0, 0, 1, 1], [], []>, precision = #tpu.contract_precision<fp32>} : vector<128x8xf32>, vector<8x128xf32>, vector<128x128xf32> -> vector<128x128xf32>
    %cst_27 = arith.constant 0.000000e+00 : f32
    %34 = vector.broadcast %cst_27 : f32 to vector<128x128xf32>
    %35 = arith.cmpf olt, %33, %34 : vector<128x128xf32>
    %cst_28 = arith.constant 0x7F800000 : f32
    %36 = vector.broadcast %cst_28 : f32 to vector<128x128xf32>
    %37 = arith.select %35, %6, %36 : vector<128x128xi1>, vector<128x128xf32>
    %cst_29 = arith.constant dense<0x7F800000> : vector<128xf32>
    %38 = vector.multi_reduction <minimumf>, %37, %cst_29 [0] : vector<128x128xf32> to vector<128xf32>
    %39 = vector.shape_cast %38 : vector<128xf32> to vector<1x128xf32>
    %c2_30 = arith.constant 2 : index
    %c0_31 = arith.constant 0 : index
    %40 = vector.load %arg5[%c2_30, %c0_31] : memref<8x128xf32, #tpu.memory_space<vmem>>, vector<1x128xf32>
    %41 = arith.minimumf %40, %39 : vector<1x128xf32>
    %c2_32 = arith.constant 2 : index
    %c0_33 = arith.constant 0 : index
    %42 = vector.load %arg5[%c2_32, %c0_33] : memref<8x128xf32, #tpu.memory_space<vmem>>, vector<1x128xf32>
    tpu.vector_store %arg5[%c2_32, %c0_33], %41 {strides = array<i32>} : memref<8x128xf32, #tpu.memory_space<vmem>>, vector<1x128xf32>,
    %c3 = arith.constant 3 : index
    %c0_34 = arith.constant 0 : index
    %c0_35 = arith.constant 0 : index
    %43 = vector.load %arg2[%c3, %c0_34, %c0_35] : memref<8x8x128xf32, #tpu.memory_space<vmem>>, vector<1x8x128xf32>
    %44 = vector.shape_cast %43 : vector<1x8x128xf32> to vector<8x128xf32>
    %cst_36 = arith.constant dense<0.000000e+00> : vector<128x128xf32>
    %45 = tpu.matmul %3, %44, %cst_36 {dimension_numbers = #tpu.dot_dimension_numbers<[1], [0], [0], [1], [0, 0, 1, 1], [], []>, precision = #tpu.contract_precision<fp32>} : vector<128x8xf32>, vector<8x128xf32>, vector<128x128xf32> -> vector<128x128xf32>
    %cst_37 = arith.constant 0.000000e+00 : f32
    %46 = vector.broadcast %cst_37 : f32 to vector<128x128xf32>
    %47 = arith.cmpf olt, %45, %46 : vector<128x128xf32>
    %cst_38 = arith.constant 0x7F800000 : f32
    %48 = vector.broadcast %cst_38 : f32 to vector<128x128xf32>
    %49 = arith.select %47, %6, %48 : vector<128x128xi1>, vector<128x128xf32>
    %cst_39 = arith.constant dense<0x7F800000> : vector<128xf32>
    %50 = vector.multi_reduction <minimumf>, %49, %cst_39 [0] : vector<128x128xf32> to vector<128xf32>
    %51 = vector.shape_cast %50 : vector<128xf32> to vector<1x128xf32>
    %c3_40 = arith.constant 3 : index
    %c0_41 = arith.constant 0 : index
    %52 = vector.load %arg5[%c3_40, %c0_41] : memref<8x128xf32, #tpu.memory_space<vmem>>, vector<1x128xf32>
    %53 = arith.minimumf %52, %51 : vector<1x128xf32>
    %c3_42 = arith.constant 3 : index
    %c0_43 = arith.constant 0 : index
    %54 = vector.load %arg5[%c3_42, %c0_43] : memref<8x128xf32, #tpu.memory_space<vmem>>, vector<1x128xf32>
    tpu.vector_store %arg5[%c3_42, %c0_43], %53 {strides = array<i32>} : memref<8x128xf32, #tpu.memory_space<vmem>>, vector<1x128xf32>,
    %c4 = arith.constant 4 : index
    %c0_44 = arith.constant 0 : index
    %c0_45 = arith.constant 0 : index
    %55 = vector.load %arg2[%c4, %c0_44, %c0_45] : memref<8x8x128xf32, #tpu.memory_space<vmem>>, vector<1x8x128xf32>
    %56 = vector.shape_cast %55 : vector<1x8x128xf32> to vector<8x128xf32>
    %cst_46 = arith.constant dense<0.000000e+00> : vector<128x128xf32>
    %57 = tpu.matmul %3, %56, %cst_46 {dimension_numbers = #tpu.dot_dimension_numbers<[1], [0], [0], [1], [0, 0, 1, 1], [], []>, precision = #tpu.contract_precision<fp32>} : vector<128x8xf32>, vector<8x128xf32>, vector<128x128xf32> -> vector<128x128xf32>
    %cst_47 = arith.constant 0.000000e+00 : f32
    %58 = vector.broadcast %cst_47 : f32 to vector<128x128xf32>
    %59 = arith.cmpf olt, %57, %58 : vector<128x128xf32>
    %cst_48 = arith.constant 0x7F800000 : f32
    %60 = vector.broadcast %cst_48 : f32 to vector<128x128xf32>
    %61 = arith.select %59, %6, %60 : vector<128x128xi1>, vector<128x128xf32>
    %cst_49 = arith.constant dense<0x7F800000> : vector<128xf32>
    %62 = vector.multi_reduction <minimumf>, %61, %cst_49 [0] : vector<128x128xf32> to vector<128xf32>
    %63 = vector.shape_cast %62 : vector<128xf32> to vector<1x128xf32>
    %c4_50 = arith.constant 4 : index
    %c0_51 = arith.constant 0 : index
    %64 = vector.load %arg5[%c4_50, %c0_51] : memref<8x128xf32, #tpu.memory_space<vmem>>, vector<1x128xf32>
    %65 = arith.minimumf %64, %63 : vector<1x128xf32>
    %c4_52 = arith.constant 4 : index
    %c0_53 = arith.constant 0 : index
    %66 = vector.load %arg5[%c4_52, %c0_53] : memref<8x128xf32, #tpu.memory_space<vmem>>, vector<1x128xf32>
    tpu.vector_store %arg5[%c4_52, %c0_53], %65 {strides = array<i32>} : memref<8x128xf32, #tpu.memory_space<vmem>>, vector<1x128xf32>,
    %c5 = arith.constant 5 : index
    %c0_54 = arith.constant 0 : index
    %c0_55 = arith.constant 0 : index
    %67 = vector.load %arg2[%c5, %c0_54, %c0_55] : memref<8x8x128xf32, #tpu.memory_space<vmem>>, vector<1x8x128xf32>
    %68 = vector.shape_cast %67 : vector<1x8x128xf32> to vector<8x128xf32>
    %cst_56 = arith.constant dense<0.000000e+00> : vector<128x128xf32>
    %69 = tpu.matmul %3, %68, %cst_56 {dimension_numbers = #tpu.dot_dimension_numbers<[1], [0], [0], [1], [0, 0, 1, 1], [], []>, precision = #tpu.contract_precision<fp32>} : vector<128x8xf32>, vector<8x128xf32>, vector<128x128xf32> -> vector<128x128xf32>
    %cst_57 = arith.constant 0.000000e+00 : f32
    %70 = vector.broadcast %cst_57 : f32 to vector<128x128xf32>
    %71 = arith.cmpf olt, %69, %70 : vector<128x128xf32>
    %cst_58 = arith.constant 0x7F800000 : f32
    %72 = vector.broadcast %cst_58 : f32 to vector<128x128xf32>
    %73 = arith.select %71, %6, %72 : vector<128x128xi1>, vector<128x128xf32>
    %cst_59 = arith.constant dense<0x7F800000> : vector<128xf32>
    %74 = vector.multi_reduction <minimumf>, %73, %cst_59 [0] : vector<128x128xf32> to vector<128xf32>
    %75 = vector.shape_cast %74 : vector<128xf32> to vector<1x128xf32>
    %c5_60 = arith.constant 5 : index
    %c0_61 = arith.constant 0 : index
    %76 = vector.load %arg5[%c5_60, %c0_61] : memref<8x128xf32, #tpu.memory_space<vmem>>, vector<1x128xf32>
    %77 = arith.minimumf %76, %75 : vector<1x128xf32>
    %c5_62 = arith.constant 5 : index
    %c0_63 = arith.constant 0 : index
    %78 = vector.load %arg5[%c5_62, %c0_63] : memref<8x128xf32, #tpu.memory_space<vmem>>, vector<1x128xf32>
    tpu.vector_store %arg5[%c5_62, %c0_63], %77 {strides = array<i32>} : memref<8x128xf32, #tpu.memory_space<vmem>>, vector<1x128xf32>,
    %c6 = arith.constant 6 : index
    %c0_64 = arith.constant 0 : index
    %c0_65 = arith.constant 0 : index
    %79 = vector.load %arg2[%c6, %c0_64, %c0_65] : memref<8x8x128xf32, #tpu.memory_space<vmem>>, vector<1x8x128xf32>
    %80 = vector.shape_cast %79 : vector<1x8x128xf32> to vector<8x128xf32>
    %cst_66 = arith.constant dense<0.000000e+00> : vector<128x128xf32>
    %81 = tpu.matmul %3, %80, %cst_66 {dimension_numbers = #tpu.dot_dimension_numbers<[1], [0], [0], [1], [0, 0, 1, 1], [], []>, precision = #tpu.contract_precision<fp32>} : vector<128x8xf32>, vector<8x128xf32>, vector<128x128xf32> -> vector<128x128xf32>
    %cst_67 = arith.constant 0.000000e+00 : f32
    %82 = vector.broadcast %cst_67 : f32 to vector<128x128xf32>
    %83 = arith.cmpf olt, %81, %82 : vector<128x128xf32>
    %cst_68 = arith.constant 0x7F800000 : f32
    %84 = vector.broadcast %cst_68 : f32 to vector<128x128xf32>
    %85 = arith.select %83, %6, %84 : vector<128x128xi1>, vector<128x128xf32>
    %cst_69 = arith.constant dense<0x7F800000> : vector<128xf32>
    %86 = vector.multi_reduction <minimumf>, %85, %cst_69 [0] : vector<128x128xf32> to vector<128xf32>
    %87 = vector.shape_cast %86 : vector<128xf32> to vector<1x128xf32>
    %c6_70 = arith.constant 6 : index
    %c0_71 = arith.constant 0 : index
    %88 = vector.load %arg5[%c6_70, %c0_71] : memref<8x128xf32, #tpu.memory_space<vmem>>, vector<1x128xf32>
    %89 = arith.minimumf %88, %87 : vector<1x128xf32>
    %c6_72 = arith.constant 6 : index
    %c0_73 = arith.constant 0 : index
    %90 = vector.load %arg5[%c6_72, %c0_73] : memref<8x128xf32, #tpu.memory_space<vmem>>, vector<1x128xf32>
    tpu.vector_store %arg5[%c6_72, %c0_73], %89 {strides = array<i32>} : memref<8x128xf32, #tpu.memory_space<vmem>>, vector<1x128xf32>,
    %c7 = arith.constant 7 : index
    %c0_74 = arith.constant 0 : index
    %c0_75 = arith.constant 0 : index
    %91 = vector.load %arg2[%c7, %c0_74, %c0_75] : memref<8x8x128xf32, #tpu.memory_space<vmem>>, vector<1x8x128xf32>
    %92 = vector.shape_cast %91 : vector<1x8x128xf32> to vector<8x128xf32>
    %cst_76 = arith.constant dense<0.000000e+00> : vector<128x128xf32>
    %93 = tpu.matmul %3, %92, %cst_76 {dimension_numbers = #tpu.dot_dimension_numbers<[1], [0], [0], [1], [0, 0, 1, 1], [], []>, precision = #tpu.contract_precision<fp32>} : vector<128x8xf32>, vector<8x128xf32>, vector<128x128xf32> -> vector<128x128xf32>
    %cst_77 = arith.constant 0.000000e+00 : f32
    %94 = vector.broadcast %cst_77 : f32 to vector<128x128xf32>
    %95 = arith.cmpf olt, %93, %94 : vector<128x128xf32>
    %cst_78 = arith.constant 0x7F800000 : f32
    %96 = vector.broadcast %cst_78 : f32 to vector<128x128xf32>
    %97 = arith.select %95, %6, %96 : vector<128x128xi1>, vector<128x128xf32>
    %cst_79 = arith.constant dense<0x7F800000> : vector<128xf32>
    %98 = vector.multi_reduction <minimumf>, %97, %cst_79 [0] : vector<128x128xf32> to vector<128xf32>
    %99 = vector.shape_cast %98 : vector<128xf32> to vector<1x128xf32>
    %c7_80 = arith.constant 7 : index
    %c0_81 = arith.constant 0 : index
    %100 = vector.load %arg5[%c7_80, %c0_81] : memref<8x128xf32, #tpu.memory_space<vmem>>, vector<1x128xf32>
    %101 = arith.minimumf %100, %99 : vector<1x128xf32>
    %c7_82 = arith.constant 7 : index
    %c0_83 = arith.constant 0 : index
    %102 = vector.load %arg5[%c7_82, %c0_83] : memref<8x128xf32, #tpu.memory_space<vmem>>, vector<1x128xf32>
    tpu.vector_store %arg5[%c7_82, %c0_83], %101 {strides = array<i32>} : memref<8x128xf32, #tpu.memory_space<vmem>>, vector<1x128xf32>,
    %c2_i32 = arith.constant 2 : i32
    %103 = arith.cmpi eq, %arg1, %c2_i32 : i32
    %104 = arith.extui %103 : i1 to i32
    %c0_i32_84 = arith.constant 0 : i32
    %105 = arith.cmpi ne, %104, %c0_i32_84 : i32
    scf.if %105 {
      %c0_85 = arith.constant 0 : index
      %c0_86 = arith.constant 0 : index
      %106 = vector.load %arg5[%c0_85, %c0_86] : memref<8x128xf32, #tpu.memory_space<vmem>>, vector<8x128xf32>
      %107 = math.absf %106 : vector<8x128xf32>
      %cst_87 = arith.constant 0x7F800000 : f32
      %108 = vector.broadcast %cst_87 : f32 to vector<8x128xf32>
      %109 = arith.cmpf oeq, %107, %108 : vector<8x128xf32>
      %cst_88 = arith.constant -1.000000e+00 : f32
      %110 = vector.broadcast %cst_88 : f32 to vector<8x128xf32>
      %111 = arith.select %109, %110, %106 : vector<8x128xi1>, vector<8x128xf32>
      %c0_89 = arith.constant 0 : index
      %c0_90 = arith.constant 0 : index
      %112 = vector.load %arg5[%c0_89, %c0_90] : memref<8x128xf32, #tpu.memory_space<vmem>>, vector<8x128xf32>
      tpu.vector_store %arg5[%c0_89, %c0_90], %111 {strides = array<i32>} : memref<8x128xf32, #tpu.memory_space<vmem>>, vector<8x128xf32>,
    } else {
    }
    return
  }
  func.func @transform_0(%arg0: i32, %arg1: i32) -> (i32, i32, i32) {
    %c0_i32 = arith.constant 0 : i32
    %c0_i32_0 = arith.constant 0 : i32
    %c0_i32_1 = arith.constant 0 : i32
    return %arg0, %c0_i32, %c0_i32_0 : i32, i32, i32
  }
  func.func @transform_1(%arg0: i32, %arg1: i32) -> (i32, i32) {
    %c0_i32 = arith.constant 0 : i32
    %c0_i32_0 = arith.constant 0 : i32
    return %arg1, %c0_i32 : i32, i32
  }
  func.func @transform_2(%arg0: i32, %arg1: i32) -> (i32, i32) {
    %c0_i32 = arith.constant 0 : i32
    %c0_i32_0 = arith.constant 0 : i32
    return %arg1, %c0_i32 : i32, i32
  }
  func.func @transform_3(%arg0: i32, %arg1: i32) -> (i32, i32) {
    %c0_i32 = arith.constant 0 : i32
    %c0_i32_0 = arith.constant 0 : i32
    return %arg0, %c0_i32 : i32, i32
  }
}

</mosaic_0001>

<bundles_post_ra>
// kernel: tpu_custom_call.1
= control target key start
LH: loop header
LB: loop body
LE: loop exit
PB: predicated region body
PF: predicated region fallthrough
CT: control target
= control target key end

     0   :  { %8 = vsyncpa [#allocation3], 0  ;;  %s14215_s0 = inlined_call_operand.vmem [shape: f32[24,8,128], index: 0, kind: input, shape index: {}]   ;;  %s14216_s1 = inlined_call_operand.vmem [shape: f32[384,8], index: 1, kind: input, shape index: {}]   ;;  %s14217_s2 = inlined_call_operand.vmem [shape: f32[384,1], index: 2, kind: input, shape index: {}]   ;;  %s14218_s3 = inlined_call_operand.hbm [shape: f32[24,128], index: 3, kind: output, shape index: {}]  }
   0x1   :  { %10 = vsyncpa [#allocation3 + $0x1], 0  ;;  %s12624_s12 = smov 0   ;;  %s12626_s13 = smov 0  }
   0x2   :  { %s12628_s14 = smov 0   ;;  %s12630_s15 = smov 0  }
   0x3   :  { %s12632_s16 = smov 0   ;;  %s12634_s17 = smov 0  }
   0x4   :  { %s12636_s18 = smov 0   ;;  %s12638_s19 = smov 0  }
   0x5 LB: > { %s9701_s20 = sadd.s32 4294967295, %s12599_s19   ;;  %s9702_s21 = sadd.s32 4294967294, %s12599_s19   ;;  %s12599_s19 = sphi %s12638_s19, %s16_s19   ;;  %s12595_s18 = sphi %s12636_s18, %s14524_s18   ;;  %s12591_s17 = sphi %s12634_s17, %s14523_s17   ;;  %s12587_s16 = sphi %s12632_s16, %s14522_s16   ;;  %s12583_s15 = sphi %s12630_s15, %s14521_s15   ;;  %s12579_s14 = sphi %s12628_s14, %s14520_s14   ;;  %s12575_s13 = sphi %s12626_s13, %s14519_s13   ;;  %s12571_s12 = sphi %s12624_s12, %s14518_s12  }
   0x6   : > { %s25_s22 = sadd.s32 1, %s12591_s17  ;;  %s28_s23 = sadd.s32 1, %s12595_s18 }
   0x7   : > { %p26_p0 = scmp.ge.s32.totalorder %s25_s22, 3  ;;  %p123_p1 = scmp.ne.s32.totalorder %s12579_s14, %s12575_s13 }
   0x8   : > { %p124_p2 = scmp.eq.s32.totalorder %s9701_s20, 8  ;;  %p129_p4 = scmp.ne.s32.totalorder %s12575_s13, %s12571_s12 }
   0x9   : > { %s14526_s22 = smov (%p26_p0, %s25_s22), 0  ;;  %s14528_s23 = smov (!%p26_p0, %s28_s23), %s12595_s18 }
   0xa   : > { %p12673_p3 = por %p124_p2, %p123_p1  ;;  %p30_p5 = scmp.ge.s32.totalorder %s14528_s23, 3 }
   0xb   : > { %p130_p6 = scmp.eq.s32.totalorder %s9702_s21, 8  ;;  %p9705_p7 = scmp.ge.s32.totalorder %s12599_s19, 1 }
   0xc   : > { %p175_p8 = scmp.lt.s32.totalorder %s12599_s19, 10  ;;  %s14530_s23 = smov (%p30_p5, %s14528_s23), 0 }
   0xd   : > { %14368 = sst [smem:[#allocation5_spill]] %s14530_s23  ;;  %p12683_p9 = por %p130_p6, %p129_p4 }
   0xe   : > { %p176_p10 = pnand %p9705_p7, %p175_p8  ;;  %s110_s26 = ssub.s32 %s12595_s18, %s14530_s23 }
   0xf   : > { %s113_s27 = sadd.s32 1, %s12579_s14  ;;  %p111_p11 = scmp.eq.s32.totalorder %s110_s26, 0 }
  0x10   : > { %179 = sbr.rel (%p176_p10) target bundleno = 1088 (0x440), region = 32 }
  0x11   : > { %s12691_s28 = scalar_select %p111_p11, %s12579_s14, %s113_s27  }
  0x17   : > { %s14219_s29 = sand.u32 1, %s12575_s13   ;;  %s9707_s30 = sshll.u32 %s12587_s16, 3 }
  0x18   : > { %s9706_s4 = sshll.u32 %s14219_s29, 3  ;;  %p210_p12 = scmp.lt.s32.totalorder %s9707_s30, 23 }
  0x19   : > { %s9709_s5 = sshll.u32 %s12583_s15, 4  ;;  %s12713_s23 = scalar_lea.vmem [#allocation2], %s9706_s4 }
  0x1a   : > { %s14532_s30 = smov (!%p210_p12, %s9707_s30), 23  ;;  %p216_p13 = scmp.lt.s32.totalorder %s9709_s5, 47 }
  0x1b   : > { %s9708_s6 = sshll.u32 %s14532_s30, 3  ;;  %p9713_p0 = scmp.ne.s32.totalorder %s12583_s15, 0 }
  0x1c   : > { %s12701_s9 = scalar_lea.vmem %s14215_s0, %s9708_s6  ;;  %s14534_s5 = smov (!%p216_p13, %s9709_s5), 47  ;;  %v12601_v0 = vmov (!%p9713_p0), inf  }
  0x1d   : > { %s9710_s10 = sshll.u32 %s14534_s5, 3  ;;  %230 = sbr.rel (%p9713_p0) target bundleno = 36 (0x24), region = 36  ;;  %231 = vst [vmem:[%s12713_s23] sm:$0xff] (!%p9713_p0), %v12601_v0 }
  0x1e   : > { %s12706_s21 = scalar_lea.vmem %s14216_s1, %s9710_s10  ;;  %s12711_s29 = scalar_lea.vmem %s14217_s2, %s9710_s10 }
  0x24 PF: > { %v344_v1 = vld [vmem:[%s12701_s9] sm:$0xff]  ;;  %v9714_v2 = vld [vmem:[%s12701_s9 + $0x8] sm:$0xff]  ;;  %vm345_vm0 = vcmask 64512   ;;  %v234_v8 = vld [vmem:[%s12706_s21 + $0x10] sm:$0xff]  ;;  %p9721_p1 = scmp.ne.s32.totalorder %s12583_s15, 2 }
  0x25   : > { %v232_v3 = vld [vmem:[%s12706_s21] sm:$0xff]  ;;  %v12720_v4 = vand.u32 4294901760, %v344_v1  ;;  %v12722_v5 = vand.u32 4294901760, %v9714_v2  ;;  %v233_v7 = vld [vmem:[%s12706_s21 + $0x8] sm:$0xff]  ;;  %v235_v9 = vld [vmem:[%s12706_s21 + $0x18] sm:$0xff]  ;;  %v353_v12 = vsel %vm345_vm0, %v234_v8, 0 }
  0x26   : > { %v347_v6 = vsel %vm345_vm0, %v232_v3, 0  ;;  %v350_v11 = vsel %vm345_vm0, %v233_v7, 0  ;;  %v356_v13 = vsel %vm345_vm0, %v235_v9, 0  ;;  %v236_v14 = vld [vmem:[%s12706_s21 + $0x20] sm:$0xff]  ;;  %v237_v15 = vld [vmem:[%s12706_s21 + $0x28] sm:$0xff]  ;;  %v12745_v19 = vand.u32 4294901760, %v353_v12 }
  0x27   : > { %v12728_v10 = vand.u32 4294901760, %v347_v6  ;;  %10542 = vmatprep.subr.mxu0 %v12720_v4  ;;  %10698 = vmatprep.subr.mxu1 %v12722_v5  ;;  %v12738_v16 = vsub.f32 %v344_v1, %v12720_v4  ;;  %v12741_v17 = vsub.f32 %v9714_v2, %v12722_v5  ;;  %v12743_v18 = vand.u32 4294901760, %v350_v11  ;;  %v238_v40 = vld [vmem:[%s12706_s21 + $0x30] sm:$0xff]  ;;  %v239_v41 = vld [vmem:[%s12706_s21 + $0x38] sm:$0xff]  ;;  %v240_v50 = vld [vmem:[%s12706_s21 + $0x40] sm:$0xff] }
  0x28   : > { %10543 = vmatpush3.msra.mxu0 %v12720_v4  ;;  %10699 = vmatpush3.msra.mxu1 %v12722_v5  ;;  %v12752_v21 = vand.u32 4294901760, %v356_v13  ;;  %v359_v22 = vsel %vm345_vm0, %v236_v14, 0  ;;  %v362_v23 = vsel %vm345_vm0, %v237_v15, 0  ;;  %v12766_v27 = vsub.f32 %v353_v12, %v12745_v19  ;;  %v241_v51 = vld [vmem:[%s12706_s21 + $0x48] sm:$0xff]  ;;  %v242_v52 = vld [vmem:[%s12706_s21 + $0x50] sm:$0xff]  ;;  %v243_v61 = vld [vmem:[%s12706_s21 + $0x58] sm:$0xff] }
  0x29   : > { %v12750_v20 = vsub.f32 %v347_v6, %v12728_v10  ;;  %v12757_v24 = vand.u32 4294901760, %v12738_v16  ;;  %v12760_v25 = vand.u32 4294901760, %v12741_v17  ;;  %v12763_v26 = vsub.f32 %v350_v11, %v12743_v18  ;;  %v244_v2 = vld [vmem:[%s12706_s21 + $0x60] sm:$0xff]  ;;  %v245_v14 = vld [vmem:[%s12706_s21 + $0x68] sm:$0xff] }
  0x2a   : > { %14371 = vst [vmem:[#allocation7_spill] sm:$0xff] %v12766_v27  ;;  %v12772_v29 = vsub.f32 %v356_v13, %v12752_v21  ;;  %v12774_v30 = vand.u32 4294901760, %v359_v22  ;;  %v12776_v31 = vand.u32 4294901760, %v362_v23  ;;  %v12786_v35 = vand.u32 4294901760, %v12766_v27 }
  0x2b   : > { %14370 = vst [vmem:[#allocation6_spill] sm:$0xff] %v12763_v26  ;;  %v12769_v28 = vand.u32 4294901760, %v12750_v20  ;;  %v624_v32 = vsub.f32 %v12738_v16, %v12757_v24  ;;  %v1773_v33 = vsub.f32 %v12741_v17, %v12760_v25  ;;  %v12783_v34 = vand.u32 4294901760, %v12763_v26 }
  0x2c   : > { %14373 = vst [vmem:[#allocation9_spill] sm:$0xff] %v12772_v29  ;;  %14375 = vst [vmem:[#allocation11_spill] sm:$0xff] %v12786_v35  ;;  %v12791_v37 = vand.u32 4294901760, %v12772_v29  ;;  %v12794_v38 = vsub.f32 %v359_v22, %v12774_v30  ;;  %v12797_v39 = vsub.f32 %v362_v23, %v12776_v31  ;;  %v483_v45 = vsub.f32 %v12766_v27, %v12786_v35 }
  0x2d   : > { %14372 = vst [vmem:[#allocation8_spill] sm:$0xff] %v12769_v28  ;;  %14374 = vst [vmem:[#allocation10_spill] sm:$0xff] %v12783_v34  ;;  %v463_v36 = vsub.f32 %v12750_v20, %v12769_v28  ;;  %v625_v42 = vand.u32 4294901760, %v624_v32  ;;  %v1774_v43 = vand.u32 4294901760, %v1773_v33  ;;  %v473_v44 = vsub.f32 %v12763_v26, %v12783_v34 }
  0x2e   : > { %14376 = vst [vmem:[#allocation12_spill] sm:$0xff] %v12791_v37  ;;  %14377 = vst [vmem:[#allocation13_spill] sm:$0xff] %v12794_v38  ;;  %v493_v47 = vsub.f32 %v12772_v29, %v12791_v37  ;;  %v12810_v48 = vand.u32 4294901760, %v12794_v38  ;;  %v12813_v49 = vand.u32 4294901760, %v12797_v39  ;;  %v12820_v54 = vand.u32 4294901760, %v483_v45 }
  0x2f   : > { %14378 = vst [vmem:[#allocation14_spill] sm:$0xff] %v12797_v39  ;;  %v12805_v46 = vand.u32 4294901760, %v463_v36  ;;  %10568 = vmatprep.subr.mxu0 %v625_v42  ;;  %10724 = vmatprep.subr.mxu1 %v1774_v43  ;;  %v12818_v53 = vand.u32 4294901760, %v473_v44  ;;  %v365_v55 = vsel %vm345_vm0, %v238_v40, 0  ;;  %v368_v56 = vsel %vm345_vm0, %v239_v41, 0 }
  0x30   : > { %14380 = vst [vmem:[#allocation16_spill] sm:$0xff] %v12810_v48  ;;  %14381 = vst [vmem:[#allocation17_spill] sm:$0xff] %v12813_v49  ;;  %v12826_v57 = vand.u32 4294901760, %v493_v47  ;;  %v503_v58 = vsub.f32 %v12794_v38, %v12810_v48  ;;  %v513_v59 = vsub.f32 %v12797_v39, %v12813_v49  ;;  %v12832_v60 = vand.u32 4294901760, %v365_v55 }
  0x31   : > { %14379 = vst [vmem:[#allocation15_spill] sm:$0xff] %v12805_v46  ;;  %14382 = vst [vmem:[#allocation18_spill] sm:$0xff] %v12818_v53  ;;  %10544 = vmatprep.mubr.f32.mxu0 %v12805_v46  ;;  %10700 = vmatprep.mubr.f32.mxu1 %v12805_v46  ;;  %v12837_v62 = vand.u32 4294901760, %v368_v56  ;;  %v371_v63 = vsel %vm345_vm0, %v240_v50, 0  ;;  %v374_v0 = vsel %vm345_vm0, %v241_v51, 0  ;;  %v377_v1 = vsel %vm345_vm0, %v242_v52, 0 }
  0x32   : > { %14383 = vst [vmem:[#allocation19_spill] sm:$0xff] %v12820_v54  ;;  %14384 = vst [vmem:[#allocation20_spill] sm:$0xff] %v12826_v57  ;;  %10545 = vmatmul.mubr.f32.vlgmr.msra.gmra.mrb[0].mxu0 %v12818_v53  ;;  %10701 = vmatmul.mubr.f32.vlgmr.msra.gmra.mrb[0].mxu1 %v12818_v53  ;;  %v12843_v3 = vand.u32 4294901760, %v503_v58  ;;  %v12845_v6 = vand.u32 4294901760, %v513_v59  ;;  %v12848_v7 = vsub.f32 %v365_v55, %v12832_v60  ;;  %v12850_v8 = vand.u32 4294901760, %v371_v63  ;;  %v246_v55 = vld [vmem:[%s12706_s21 + $0x70] sm:$0xff] }
  0x33   : > { %10569 = vmatpush3.msra.mxu0 %v625_v42  ;;  %10725 = vmatpush3.msra.mxu1 %v1774_v43  ;;  %v12855_v9 = vsub.f32 %v368_v56, %v12837_v62  ;;  %v12857_v11 = vand.u32 4294901760, %v374_v0  ;;  %v12859_v12 = vand.u32 4294901760, %v377_v1  ;;  %v380_v13 = vsel %vm345_vm0, %v243_v61, 0 }
  0x34   : > { %14385 = vst [vmem:[#allocation21_spill] sm:$0xff] %v12843_v3  ;;  %14386 = vst [vmem:[#allocation22_spill] sm:$0xff] %v12845_v6  ;;  %10547 = vmatprep.mubr.f32.mxu0 %v12820_v54  ;;  %10703 = vmatprep.mubr.f32.mxu1 %v12820_v54  ;;  %v12864_v15 = vand.u32 4294901760, %v12848_v7  ;;  %v12867_v22 = vsub.f32 %v371_v63, %v12850_v8  ;;  %v12869_v23 = vand.u32 4294901760, %v380_v13  ;;  %v383_v32 = vsel %vm345_vm0, %v244_v2, 0  ;;  %v247_v2 = vld [vmem:[%s12706_s21 + $0x78] sm:$0xff] }
  0x35   : > { %14387 = vst [vmem:[#allocation23_spill] sm:$0xff] %v12848_v7  ;;  %14388 = vst [vmem:[#allocation24_spill] sm:$0xff] %v12855_v9  ;;  %10594 = vmatprep.subr.mxu0 %v12738_v16  ;;  %10750 = vmatprep.subr.mxu1 %v12741_v17  ;;  %v12877_v33 = vand.u32 4294901760, %v12855_v9  ;;  %v12880_v36 = vsub.f32 %v374_v0, %v12857_v11  ;;  %v12883_v40 = vsub.f32 %v377_v1, %v12859_v12 }
  0x36   : > { %14389 = vst [vmem:[#allocation25_spill] sm:$0xff] %v12864_v15  ;;  %14390 = vst [vmem:[#allocation26_spill] sm:$0xff] %v12867_v22  ;;  %10548 = vmatmul.mubr.f32.gmra.mrb[2].mxu0 %v12826_v57  ;;  %10704 = vmatmul.mubr.f32.gmra.mrb[2].mxu1 %v12826_v57  ;;  %v12885_v41 = vand.u32 4294901760, %v383_v32  ;;  %v523_v42 = vsub.f32 %v12848_v7, %v12864_v15  ;;  %v12892_v43 = vand.u32 4294901760, %v12867_v22  ;;  %v386_v45 = vsel %vm345_vm0, %v245_v14, 0 }
  0x37   : > { %14391 = vst [vmem:[#allocation27_spill] sm:$0xff] %v12877_v33  ;;  %14392 = vst [vmem:[#allocation28_spill] sm:$0xff] %v12880_v36  ;;  %10550 = vmatprep.mubr.f32.mxu0 %v12843_v3  ;;  %10706 = vmatprep.mubr.f32.mxu1 %v12843_v3  ;;  %v12895_v44 = vsub.f32 %v380_v13, %v12869_v23  ;;  %v533_v47 = vsub.f32 %v12855_v9, %v12877_v33  ;;  %v12901_v50 = vand.u32 4294901760, %v12880_v36 }
  0x38   : > { %14393 = vst [vmem:[#allocation29_spill] sm:$0xff] %v12883_v40  ;;  %14394 = vst [vmem:[#allocation30_spill] sm:$0xff] %v12892_v43  ;;  %v12904_v51 = vand.u32 4294901760, %v12883_v40  ;;  %v12907_v52 = vsub.f32 %v383_v32, %v12885_v41  ;;  %v12910_v56 = vand.u32 4294901760, %v523_v42  ;;  %v543_v58 = vsub.f32 %v12867_v22, %v12892_v43 }
  0x39   : > { %14395 = vst [vmem:[#allocation31_spill] sm:$0xff] %v12895_v44  ;;  %14396 = vst [vmem:[#allocation32_spill] sm:$0xff] %v12901_v50  ;;  %v12915_v59 = vand.u32 4294901760, %v12895_v44  ;;  %v12917_v61 = vand.u32 4294901760, %v386_v45  ;;  %v12921_v63 = vand.u32 4294901760, %v533_v47  ;;  %v553_v0 = vsub.f32 %v12880_v36, %v12901_v50 }
  0x3a   : > { %14397 = vst [vmem:[#allocation33_spill] sm:$0xff] %v12904_v51  ;;  %14398 = vst [vmem:[#allocation34_spill] sm:$0xff] %v12907_v52  ;;  %10551 = vmatmul.mubr.f32.gmra.mrb[4].mxu0 %v12845_v6  ;;  %10707 = vmatmul.mubr.f32.gmra.mrb[4].mxu1 %v12845_v6  ;;  %v563_v1 = vsub.f32 %v12883_v40, %v12904_v51  ;;  %v12930_v13 = vand.u32 4294901760, %v543_v58  ;;  %v12933_v14 = vand.u32 4294901760, %v12907_v52  ;;  %v389_v42 = vsel %vm345_vm0, %v246_v55, 0 }
  0x3b   : > { %14399 = vst [vmem:[#allocation35_spill] sm:$0xff] %v12910_v56  ;;  %14400 = vst [vmem:[#allocation36_spill] sm:$0xff] %v12915_v59  ;;  %10553 = vmatprep.mubr.f32.mxu0 %v12910_v56  ;;  %10709 = vmatprep.mubr.f32.mxu1 %v12910_v56  ;;  %v12936_v32 = vsub.f32 %v386_v45, %v12917_v61  ;;  %v12939_v47 = vand.u32 4294901760, %v389_v42  ;;  %v573_v6 = vsub.f32 %v12895_v44, %v12915_v59 }
  0x3c   : > { %14401 = vst [vmem:[#allocation37_spill] sm:$0xff] %v12921_v63  ;;  %14402 = vst [vmem:[#allocation38_spill] sm:$0xff] %v12930_v13  ;;  %v392_v3 = vsel %vm345_vm0, %v247_v2, 0  ;;  %v12946_v58 = vand.u32 4294901760, %v553_v0  ;;  %v12958_v57 = vand.u32 4294901760, %v563_v1  ;;  %v583_v2 = vsub.f32 %v12907_v52, %v12933_v14 }
  0x3d   : > { %14403 = vst [vmem:[#allocation39_spill] sm:$0xff] %v12933_v14  ;;  %14404 = vst [vmem:[#allocation40_spill] sm:$0xff] %v12936_v32  ;;  %v12949_v56 = vand.u32 4294901760, %v12936_v32  ;;  %v12952_v45 = vsub.f32 %v389_v42, %v12939_v47  ;;  %v12954_v55 = vand.u32 4294901760, %v392_v3  ;;  %v12970_v42 = vand.u32 4294901760, %v573_v6 }
  0x3e   : > { %10554 = vmatmul.mubr.f32.gmra.mrb[6].mxu0 %v12921_v63  ;;  %10710 = vmatmul.mubr.f32.gmra.mrb[6].mxu1 %v12921_v63  ;;  %14405 = vst [vmem:[#allocation41_spill] sm:$0xff] %v12946_v58  ;;  %v12979_v54 = vand.u32 4294901760, %v583_v2 }
  0x3f   : > { %14406 = vst [vmem:[#allocation42_spill] sm:$0xff] %v12949_v56  ;;  %14407 = vst [vmem:[#allocation43_spill] sm:$0xff] %v12952_v45  ;;  %10556 = vmatprep.mubr.f32.mxu0 %v12930_v13  ;;  %10712 = vmatprep.mubr.f32.mxu1 %v12930_v13  ;;  %v12963_v0 = vand.u32 4294901760, %v12952_v45  ;;  %v12966_v63 = vsub.f32 %v392_v3, %v12954_v55  ;;  %v593_v13 = vsub.f32 %v12936_v32, %v12949_v56 }
  0x41   : > { %14408 = vst [vmem:[#allocation44_spill] sm:$0xff] %v12963_v0  ;;  %14409 = vst [vmem:[#allocation45_spill] sm:$0xff] %v12966_v63  ;;  %v12975_v1 = vand.u32 4294901760, %v12966_v63  ;;  %v603_v3 = vsub.f32 %v12952_v45, %v12963_v0  ;;  %v12985_v6 = vand.u32 4294901760, %v593_v13  ;;  %v251_v13 = vld [vmem:[%s12711_s29 + $0x18] sm:$0xff] }
  0x42   : > { %10557 = vmatmul.mubr.f32.gmra.mrb[8].mxu0 %v12946_v58  ;;  %10713 = vmatmul.mubr.f32.gmra.mrb[8].mxu1 %v12946_v58 }
  0x43   : > { %14410 = vst [vmem:[#allocation46_spill] sm:$0xff] %v12975_v1  ;;  %10559 = vmatprep.mubr.f32.mxu0 %v12958_v57  ;;  %10715 = vmatprep.mubr.f32.mxu1 %v12958_v57  ;;  %v613_v58 = vsub.f32 %v12966_v63, %v12975_v1  ;;  %v12991_v53 = vand.u32 4294901760, %v603_v3  ;;  %v9716_v3 = vld [vmem:[%s12701_s9 + $0x18] sm:$0xff] }
  0x45   : > { %v12995_v2 = vand.u32 4294901760, %v613_v58  ;;  %v9715_v58 = vld [vmem:[%s12701_s9 + $0x10] sm:$0xff] }
  0x46   : > { %10560 = vmatmul.mubr.f32.gmra.mrb[10].mxu0 %v12970_v42  ;;  %10716 = vmatmul.mubr.f32.gmra.mrb[10].mxu1 %v12970_v42 }
  0x47   : > { %10562 = vmatprep.mubr.f32.mxu0 %v12979_v54  ;;  %10718 = vmatprep.mubr.f32.mxu1 %v12979_v54 }
  0x4a   : > { %10563 = vmatmul.mubr.f32.gmra.mrb[12].mxu0 %v12985_v6  ;;  %10719 = vmatmul.mubr.f32.gmra.mrb[12].mxu1 %v12985_v6 }
  0x4b   : > { %10565 = vmatprep.mubr.f32.mxu0 %v12991_v53  ;;  %10721 = vmatprep.mubr.f32.mxu1 %v12991_v53 }
  0x4e   : > { %10566 = vmatmul.mubr.f32.gmra.mrb[14].mxu0 %v12995_v2  ;;  %10722 = vmatmul.mubr.f32.gmra.mrb[14].mxu1 %v12995_v2 }
  0x4f   : > { %10570 = vmatprep.mubr.f32.mxu0 %v12728_v10  ;;  %10726 = vmatprep.mubr.f32.mxu1 %v12728_v10 }
  0x52   : > { %10571 = vmatmul.mubr.f32.vlgmr.msra.gmra.mrb[0].mxu0 %v12743_v18  ;;  %10727 = vmatmul.mubr.f32.vlgmr.msra.gmra.mrb[0].mxu1 %v12743_v18 }
  0x53   : > { %10595 = vmatpush3.msra.mxu0 %v12738_v16  ;;  %10751 = vmatpush3.msra.mxu1 %v12741_v17  ;;  %v12602_v16 = vmov 0   ;;  %v248_v17 = vld [vmem:[%s12711_s29] sm:$0xff] }
  0x54   : > { %10573 = vmatprep.mubr.f32.mxu0 %v12745_v19  ;;  %10729 = vmatprep.mubr.f32.mxu1 %v12745_v19 }
  0x55   : > { %10620 = vmatprep.subr.mxu0 %v12720_v4  ;;  %10776 = vmatprep.subr.mxu1 %v12722_v5 }
  0x56   : > { %10574 = vmatmul.mubr.f32.gmra.mrb[2].mxu0 %v12752_v21  ;;  %10730 = vmatmul.mubr.f32.gmra.mrb[2].mxu1 %v12752_v21 }
  0x57   : > { %10576 = vmatprep.mubr.f32.mxu0 %v12774_v30  ;;  %10732 = vmatprep.mubr.f32.mxu1 %v12774_v30 }
  0x58   : > { %12503 = vset.pattern.permute.xlu0 %v12602_v16  ;;  %12504 = vset.pattern.permute.xlu1 %v12602_v16  ;;  %v253_v16 = vld [vmem:[%s12711_s29 + $0x28] sm:$0xff] }
  0x59   : > { %266 = vperm.xlu0 %12503, %v248_v17   ;;  %v252_v17 = vld [vmem:[%s12711_s29 + $0x20] sm:$0xff] }
  0x5a   : > { %10577 = vmatmul.mubr.f32.gmra.mrb[4].mxu0 %v12776_v31  ;;  %10733 = vmatmul.mubr.f32.gmra.mrb[4].mxu1 %v12776_v31 }
  0x5b   : > { %10579 = vmatprep.mubr.f32.mxu0 %v12832_v60  ;;  %10735 = vmatprep.mubr.f32.mxu1 %v12832_v60 }
  0x5e   : > { %10580 = vmatmul.mubr.f32.gmra.mrb[6].mxu0 %v12837_v62  ;;  %10736 = vmatmul.mubr.f32.gmra.mrb[6].mxu1 %v12837_v62 }
  0x5f   : > { %10582 = vmatprep.mubr.f32.mxu0 %v12850_v8  ;;  %10738 = vmatprep.mubr.f32.mxu1 %v12850_v8 }
  0x62   : > { %10583 = vmatmul.mubr.f32.gmra.mrb[8].mxu0 %v12857_v11  ;;  %10739 = vmatmul.mubr.f32.gmra.mrb[8].mxu1 %v12857_v11 }
  0x63   : > { %10585 = vmatprep.mubr.f32.mxu0 %v12859_v12  ;;  %10741 = vmatprep.mubr.f32.mxu1 %v12859_v12 }
  0x66   : > { %10586 = vmatmul.mubr.f32.gmra.mrb[10].mxu0 %v12869_v23  ;;  %10742 = vmatmul.mubr.f32.gmra.mrb[10].mxu1 %v12869_v23 }
  0x67   : > { %10588 = vmatprep.mubr.f32.mxu0 %v12885_v41  ;;  %10744 = vmatprep.mubr.f32.mxu1 %v12885_v41 }
  0x6a   : > { %10589 = vmatmul.mubr.f32.gmra.mrb[12].mxu0 %v12917_v61  ;;  %10745 = vmatmul.mubr.f32.gmra.mrb[12].mxu1 %v12917_v61 }
  0x6b   : > { %10591 = vmatprep.mubr.f32.mxu0 %v12939_v47  ;;  %10747 = vmatprep.mubr.f32.mxu1 %v12939_v47 }
  0x6e   : > { %10592 = vmatmul.mubr.f32.gmra.mrb[14].mxu0 %v12954_v55  ;;  %10748 = vmatmul.mubr.f32.gmra.mrb[14].mxu1 %v12954_v55 }
  0x6f   : > { %10596 = vmatprep.mubr.f32.mxu0 %v12750_v20  ;;  %10752 = vmatprep.mubr.f32.mxu1 %v12750_v20 }
  0x72   : > { %10597 = vmatmul.mubr.f32.vlgmr.msra.gmra.mrb[0].mxu0 %v12763_v26  ;;  %10753 = vmatmul.mubr.f32.vlgmr.msra.gmra.mrb[0].mxu1 %v12763_v26 }
  0x73   : > { %10621 = vmatpush3.msra.mxu0 %v12720_v4  ;;  %10777 = vmatpush3.msra.mxu1 %v12722_v5 }
  0x74   : > { %10599 = vmatprep.mubr.f32.mxu0 %v12766_v27  ;;  %10755 = vmatprep.mubr.f32.mxu1 %v12766_v27 }
  0x75   : > { %10646 = vmatprep.subr.mxu0 %v12757_v24  ;;  %10802 = vmatprep.subr.mxu1 %v12760_v25 }
  0x76   : > { %10600 = vmatmul.mubr.f32.gmra.mrb[2].mxu0 %v12772_v29  ;;  %10756 = vmatmul.mubr.f32.gmra.mrb[2].mxu1 %v12772_v29 }
  0x77   : > { %10602 = vmatprep.mubr.f32.mxu0 %v12794_v38  ;;  %10758 = vmatprep.mubr.f32.mxu1 %v12794_v38 }
  0x7a   : > { %10603 = vmatmul.mubr.f32.gmra.mrb[4].mxu0 %v12797_v39  ;;  %10759 = vmatmul.mubr.f32.gmra.mrb[4].mxu1 %v12797_v39 }
  0x7b   : > { %10605 = vmatprep.mubr.f32.mxu0 %v12848_v7  ;;  %10761 = vmatprep.mubr.f32.mxu1 %v12848_v7 }
  0x7e   : > { %10606 = vmatmul.mubr.f32.gmra.mrb[6].mxu0 %v12855_v9  ;;  %10762 = vmatmul.mubr.f32.gmra.mrb[6].mxu1 %v12855_v9 }
  0x7f   : > { %10608 = vmatprep.mubr.f32.mxu0 %v12867_v22  ;;  %10764 = vmatprep.mubr.f32.mxu1 %v12867_v22 }
  0x82   : > { %10609 = vmatmul.mubr.f32.gmra.mrb[8].mxu0 %v12880_v36  ;;  %10765 = vmatmul.mubr.f32.gmra.mrb[8].mxu1 %v12880_v36 }
  0x83   : > { %10611 = vmatprep.mubr.f32.mxu0 %v12883_v40  ;;  %10767 = vmatprep.mubr.f32.mxu1 %v12883_v40 }
  0x86   : > { %10612 = vmatmul.mubr.f32.gmra.mrb[10].mxu0 %v12895_v44  ;;  %10768 = vmatmul.mubr.f32.gmra.mrb[10].mxu1 %v12895_v44 }
  0x87   : > { %10614 = vmatprep.mubr.f32.mxu0 %v12907_v52  ;;  %10770 = vmatprep.mubr.f32.mxu1 %v12907_v52 }
  0x8a   : > { %10615 = vmatmul.mubr.f32.gmra.mrb[12].mxu0 %v12936_v32  ;;  %10771 = vmatmul.mubr.f32.gmra.mrb[12].mxu1 %v12936_v32 }
  0x8b   : > { %10617 = vmatprep.mubr.f32.mxu0 %v12952_v45  ;;  %10773 = vmatprep.mubr.f32.mxu1 %v12952_v45 }
  0x8e   : > { %10618 = vmatmul.mubr.f32.gmra.mrb[14].mxu0 %v12966_v63  ;;  %10774 = vmatmul.mubr.f32.gmra.mrb[14].mxu1 %v12966_v63 }
  0x8f   : > { %10622 = vmatprep.mubr.f32.mxu0 %v12769_v28  ;;  %10778 = vmatprep.mubr.f32.mxu1 %v12769_v28 }
  0x92   : > { %10623 = vmatmul.mubr.f32.vlgmr.msra.gmra.mrb[0].mxu0 %v12783_v34  ;;  %10779 = vmatmul.mubr.f32.vlgmr.msra.gmra.mrb[0].mxu1 %v12783_v34 }
  0x93   : > { %10647 = vmatpush3.msra.mxu0 %v12757_v24  ;;  %10803 = vmatpush3.msra.mxu1 %v12760_v25  ;;  %v250_v24 = vld [vmem:[%s12711_s29 + $0x10] sm:$0xff]  ;;  %v249_v25 = vld [vmem:[%s12711_s29 + $0x8] sm:$0xff] }
  0x94   : > { %10625 = vmatprep.mubr.f32.mxu0 %v12786_v35  ;;  %10781 = vmatprep.mubr.f32.mxu1 %v12786_v35 }
  0x95   : > { %10672 = vmatprep.subr.mxu0 %v12720_v4  ;;  %10828 = vmatprep.subr.mxu1 %v12722_v5 }
  0x96   : > { %10626 = vmatmul.mubr.f32.gmra.mrb[2].mxu0 %v12791_v37  ;;  %10782 = vmatmul.mubr.f32.gmra.mrb[2].mxu1 %v12791_v37 }
  0x97   : > { %10628 = vmatprep.mubr.f32.mxu0 %v12810_v48  ;;  %10784 = vmatprep.mubr.f32.mxu1 %v12810_v48 }
  0x98   : > { %276 = vperm.xlu1 %12504, %v250_v24   ;;  %271 = vperm.xlu0 %12503, %v249_v25   ;;  %v13119_v24 = vand.u32 4294901760, %v9715_v58  ;;  %v13121_v25 = vand.u32 4294901760, %v9716_v3 }
  0x9a   : > { %10629 = vmatmul.mubr.f32.gmra.mrb[4].mxu0 %v12813_v49  ;;  %10785 = vmatmul.mubr.f32.gmra.mrb[4].mxu1 %v12813_v49 }
  0x9b   : > { %10631 = vmatprep.mubr.f32.mxu0 %v12864_v15  ;;  %10787 = vmatprep.mubr.f32.mxu1 %v12864_v15 }
  0x9c   : > { %281 = vperm.xlu1 %12504, %v251_v13   ;;  %286 = vperm.xlu0 %12503, %v252_v17   ;;  %v255_v13 = vld [vmem:[%s12711_s29 + $0x38] sm:$0xff] }
  0x9d   : > { %v259_v17 = vld [vmem:[%s12711_s29 + $0x58] sm:$0xff] }
  0x9e   : > { %10632 = vmatmul.mubr.f32.gmra.mrb[6].mxu0 %v12877_v33  ;;  %10788 = vmatmul.mubr.f32.gmra.mrb[6].mxu1 %v12877_v33 }
  0x9f   : > { %10634 = vmatprep.mubr.f32.mxu0 %v12892_v43  ;;  %10790 = vmatprep.mubr.f32.mxu1 %v12892_v43 }
  0xa0   : > { %291 = vperm.xlu1 %12504, %v253_v16   ;;  %v254_v16 = vld [vmem:[%s12711_s29 + $0x30] sm:$0xff] }
  0xa1   : > { %296 = vperm.xlu0 %12503, %v254_v16   ;;  %v260_v16 = vld [vmem:[%s12711_s29 + $0x60] sm:$0xff] }
  0xa2   : > { %10635 = vmatmul.mubr.f32.gmra.mrb[8].mxu0 %v12901_v50  ;;  %10791 = vmatmul.mubr.f32.gmra.mrb[8].mxu1 %v12901_v50 }
  0xa3   : > { %10637 = vmatprep.mubr.f32.mxu0 %v12904_v51  ;;  %10793 = vmatprep.mubr.f32.mxu1 %v12904_v51 }
  0xa4   : > { %301 = vperm.xlu1 %12504, %v255_v13   ;;  %v261_v13 = vld [vmem:[%s12711_s29 + $0x68] sm:$0xff] }
  0xa6   : > { %10638 = vmatmul.mubr.f32.gmra.mrb[10].mxu0 %v12915_v59  ;;  %10794 = vmatmul.mubr.f32.gmra.mrb[10].mxu1 %v12915_v59 }
  0xa7   : > { %10640 = vmatprep.mubr.f32.mxu0 %v12933_v14  ;;  %10796 = vmatprep.mubr.f32.mxu1 %v12933_v14 }
  0xaa   : > { %10641 = vmatmul.mubr.f32.gmra.mrb[12].mxu0 %v12949_v56  ;;  %10797 = vmatmul.mubr.f32.gmra.mrb[12].mxu1 %v12949_v56  ;;  %v14414_v56 = vld [vmem:[#allocation21_spill] sm:$0xff] }
  0xab   : > { %10643 = vmatprep.mubr.f32.mxu0 %v12963_v0  ;;  %10799 = vmatprep.mubr.f32.mxu1 %v12963_v0  ;;  %v14413_v0 = vld [vmem:[#allocation20_spill] sm:$0xff] }
  0xae   : > { %10644 = vmatmul.mubr.f32.gmra.mrb[14].mxu0 %v12975_v1  ;;  %10800 = vmatmul.mubr.f32.gmra.mrb[14].mxu1 %v12975_v1  ;;  %v258_v1 = vld [vmem:[%s12711_s29 + $0x50] sm:$0xff] }
  0xaf   : > { %10648 = vmatprep.mubr.f32.mxu0 %v12728_v10  ;;  %10804 = vmatprep.mubr.f32.mxu1 %v12728_v10 }
  0xb2   : > { %10649 = vmatmul.mubr.f32.vlgmr.msra.gmra.mrb[0].mxu0 %v12743_v18  ;;  %10805 = vmatmul.mubr.f32.vlgmr.msra.gmra.mrb[0].mxu1 %v12743_v18 }
  0xb3   : > { %10673 = vmatpush3.msra.mxu0 %v12720_v4  ;;  %10829 = vmatpush3.msra.mxu1 %v12722_v5  ;;  %v257_v4 = vld [vmem:[%s12711_s29 + $0x48] sm:$0xff]  ;;  %v256_v5 = vld [vmem:[%s12711_s29 + $0x40] sm:$0xff] }
  0xb4   : > { %10651 = vmatprep.mubr.f32.mxu0 %v12745_v19  ;;  %10807 = vmatprep.mubr.f32.mxu1 %v12745_v19 }
  0xb5   : > { %10854 = vmatprep.subr.mxu0 %v13119_v24  ;;  %11010 = vmatprep.subr.mxu1 %v13121_v25 }
  0xb6   : > { %10652 = vmatmul.mubr.f32.gmra.mrb[2].mxu0 %v12752_v21  ;;  %10808 = vmatmul.mubr.f32.gmra.mrb[2].mxu1 %v12752_v21 }
  0xb7   : > { %10654 = vmatprep.mubr.f32.mxu0 %v12774_v30  ;;  %10810 = vmatprep.mubr.f32.mxu1 %v12774_v30 }
  0xb8   : > { %311 = vperm.xlu1 %12504, %v257_v4   ;;  %306 = vperm.xlu0 %12503, %v256_v5   ;;  %v13156_v4 = vsub.f32 %v9715_v58, %v13119_v24  ;;  %v13159_v5 = vsub.f32 %v9716_v3, %v13121_v25 }
  0xba   : > { %10655 = vmatmul.mubr.f32.gmra.mrb[4].mxu0 %v12776_v31  ;;  %10811 = vmatmul.mubr.f32.gmra.mrb[4].mxu1 %v12776_v31  ;;  %v13171_v58 = vand.u32 4294901760, %v13159_v5 }
  0xbb   : > { %10657 = vmatprep.mubr.f32.mxu0 %v12832_v60  ;;  %10813 = vmatprep.mubr.f32.mxu1 %v12832_v60 }
  0xbc   : > { %321 = vperm.xlu1 %12504, %v259_v17   ;;  %316 = vperm.xlu0 %12503, %v258_v1   ;;  %v263_v17 = vld [vmem:[%s12711_s29 + $0x78] sm:$0xff]  ;;  %v262_v1 = vld [vmem:[%s12711_s29 + $0x70] sm:$0xff] }
  0xbe   : > { %10658 = vmatmul.mubr.f32.gmra.mrb[6].mxu0 %v12837_v62  ;;  %10814 = vmatmul.mubr.f32.gmra.mrb[6].mxu1 %v12837_v62 }
  0xbf   : > { %10660 = vmatprep.mubr.f32.mxu0 %v12850_v8  ;;  %10816 = vmatprep.mubr.f32.mxu1 %v12850_v8 }
  0xc0   : > { %331 = vperm.xlu1 %12504, %v261_v13   ;;  %326 = vperm.xlu0 %12503, %v260_v16   ;;  %v13168_v13 = vand.u32 4294901760, %v13156_v4  ;;  %v4071_v16 = vsub.f32 %v13159_v5, %v13171_v58 }
  0xc2   : > { %10661 = vmatmul.mubr.f32.gmra.mrb[8].mxu0 %v12857_v11  ;;  %10817 = vmatmul.mubr.f32.gmra.mrb[8].mxu1 %v12857_v11  ;;  %v2922_v3 = vsub.f32 %v13156_v4, %v13168_v13 }
  0xc3   : > { %10663 = vmatprep.mubr.f32.mxu0 %v12859_v12  ;;  %10819 = vmatprep.mubr.f32.mxu1 %v12859_v12 }
  0xc4   : > { %341 = vperm.xlu1 %12504, %v263_v17   ;;  %336 = vperm.xlu0 %12503, %v262_v1   ;;  %v2923_v17 = vand.u32 4294901760, %v2922_v3  ;;  %v4072_v1 = vand.u32 4294901760, %v4071_v16  ;;  %v14411_v3 = vld [vmem:[#allocation18_spill] sm:$0xff]  ;;  %v14412_v16 = vld [vmem:[#allocation19_spill] sm:$0xff] }
  0xc6   : > { %10664 = vmatmul.mubr.f32.gmra.mrb[10].mxu0 %v12869_v23  ;;  %10820 = vmatmul.mubr.f32.gmra.mrb[10].mxu1 %v12869_v23 }
  0xc7   : > { %10666 = vmatprep.mubr.f32.mxu0 %v12885_v41  ;;  %10822 = vmatprep.mubr.f32.mxu1 %v12885_v41 }
  0xca   : > { %10667 = vmatmul.mubr.f32.gmra.mrb[12].mxu0 %v12917_v61  ;;  %10823 = vmatmul.mubr.f32.gmra.mrb[12].mxu1 %v12917_v61 }
  0xcb   : > { %10669 = vmatprep.mubr.f32.mxu0 %v12939_v47  ;;  %10825 = vmatprep.mubr.f32.mxu1 %v12939_v47 }
  0xce   : > { %10670 = vmatmul.mubr.f32.gmra.mrb[14].mxu0 %v12954_v55  ;;  %10826 = vmatmul.mubr.f32.gmra.mrb[14].mxu1 %v12954_v55 }
  0xcf   : > { %10674 = vmatprep.mubr.f32.mxu0 %v12728_v10  ;;  %10830 = vmatprep.mubr.f32.mxu1 %v12728_v10 }
  0xd2   : > { %10675 = vmatmul.mubr.f32.vlgmr.msra.gmra.mrb[0].mxu0 %v12743_v18  ;;  %10831 = vmatmul.mubr.f32.vlgmr.msra.gmra.mrb[0].mxu1 %v12743_v18 }
  0xd3   : > { %10855 = vmatpush3.msra.mxu0 %v13119_v24  ;;  %11011 = vmatpush3.msra.mxu1 %v13121_v25 }
  0xd4   : > { %10677 = vmatprep.mubr.f32.mxu0 %v12745_v19  ;;  %10833 = vmatprep.mubr.f32.mxu1 %v12745_v19 }
  0xd5   : > { %10880 = vmatprep.subr.mxu0 %v2923_v17  ;;  %11036 = vmatprep.subr.mxu1 %v4072_v1 }
  0xd6   : > { %10678 = vmatmul.mubr.f32.gmra.mrb[2].mxu0 %v12752_v21  ;;  %10834 = vmatmul.mubr.f32.gmra.mrb[2].mxu1 %v12752_v21 }
  0xd7   : > { %10680 = vmatprep.mubr.f32.mxu0 %v12774_v30  ;;  %10836 = vmatprep.mubr.f32.mxu1 %v12774_v30 }
  0xda   : > { %10681 = vmatmul.mubr.f32.gmra.mrb[4].mxu0 %v12776_v31  ;;  %10837 = vmatmul.mubr.f32.gmra.mrb[4].mxu1 %v12776_v31 }
  0xdb   : > { %10683 = vmatprep.mubr.f32.mxu0 %v12832_v60  ;;  %10839 = vmatprep.mubr.f32.mxu1 %v12832_v60 }
  0xde   : > { %10684 = vmatmul.mubr.f32.gmra.mrb[6].mxu0 %v12837_v62  ;;  %10840 = vmatmul.mubr.f32.gmra.mrb[6].mxu1 %v12837_v62 }
  0xdf   : > { %10686 = vmatprep.mubr.f32.mxu0 %v12850_v8  ;;  %10842 = vmatprep.mubr.f32.mxu1 %v12850_v8 }
  0xe2   : > { %10687 = vmatmul.mubr.f32.gmra.mrb[8].mxu0 %v12857_v11  ;;  %10843 = vmatmul.mubr.f32.gmra.mrb[8].mxu1 %v12857_v11 }
  0xe3   : > { %10689 = vmatprep.mubr.f32.mxu0 %v12859_v12  ;;  %10845 = vmatprep.mubr.f32.mxu1 %v12859_v12 }
  0xe6   : > { %10690 = vmatmul.mubr.f32.gmra.mrb[10].mxu0 %v12869_v23  ;;  %10846 = vmatmul.mubr.f32.gmra.mrb[10].mxu1 %v12869_v23 }
  0xe7   : > { %10692 = vmatprep.mubr.f32.mxu0 %v12885_v41  ;;  %10848 = vmatprep.mubr.f32.mxu1 %v12885_v41 }
  0xea   : > { %10693 = vmatmul.mubr.f32.gmra.mrb[12].mxu0 %v12917_v61  ;;  %10849 = vmatmul.mubr.f32.gmra.mrb[12].mxu1 %v12917_v61 }
  0xeb   : > { %10695 = vmatprep.mubr.f32.mxu0 %v12939_v47  ;;  %10851 = vmatprep.mubr.f32.mxu1 %v12939_v47 }
  0xee   : > { %10696 = vmatmul.mubr.f32.gmra.mrb[14].mxu0 %v12954_v55  ;;  %10852 = vmatmul.mubr.f32.gmra.mrb[14].mxu1 %v12954_v55 }
  0xef   : > { %10856 = vmatprep.mubr.f32.mxu0 %v12805_v46  ;;  %11012 = vmatprep.mubr.f32.mxu1 %v12805_v46  ;;  %v14415_v46 = vld [vmem:[#allocation22_spill] sm:$0xff] }
  0xf2   : > { %10857 = vmatmul.mubr.f32.vlgmr.msra.gmra.mrb[16].mxu0 %v14411_v3  ;;  %11013 = vmatmul.mubr.f32.vlgmr.msra.gmra.mrb[16].mxu1 %v14411_v3 }
  0xf3   : > { %10881 = vmatpush3.msra.mxu0 %v2923_v17  ;;  %11037 = vmatpush3.msra.mxu1 %v4072_v1  ;;  %v14416_v17 = vld [vmem:[#allocation35_spill] sm:$0xff]  ;;  %v14417_v1 = vld [vmem:[#allocation37_spill] sm:$0xff] }
  0xf4   : > { %10859 = vmatprep.mubr.f32.mxu0 %v14412_v16  ;;  %11015 = vmatprep.mubr.f32.mxu1 %v14412_v16  ;;  %v14418_v16 = vld [vmem:[#allocation38_spill] sm:$0xff] }
  0xf5   : > { %10906 = vmatprep.subr.mxu0 %v13156_v4  ;;  %11062 = vmatprep.subr.mxu1 %v13159_v5 }
  0xf6   : > { %10860 = vmatmul.mubr.f32.gmra.mrb[18].mxu0 %v14413_v0  ;;  %11016 = vmatmul.mubr.f32.gmra.mrb[18].mxu1 %v14413_v0  ;;  %v14419_v0 = vld [vmem:[#allocation41_spill] sm:$0xff] }
  0xf7   : > { %10862 = vmatprep.mubr.f32.mxu0 %v14414_v56  ;;  %11018 = vmatprep.mubr.f32.mxu1 %v14414_v56 }
  0xfa   : > { %10863 = vmatmul.mubr.f32.gmra.mrb[20].mxu0 %v14415_v46  ;;  %11019 = vmatmul.mubr.f32.gmra.mrb[20].mxu1 %v14415_v46 }
  0xfb   : > { %10865 = vmatprep.mubr.f32.mxu0 %v14416_v17  ;;  %11021 = vmatprep.mubr.f32.mxu1 %v14416_v17 }
  0xfe   : > { %10866 = vmatmul.mubr.f32.gmra.mrb[22].mxu0 %v14417_v1  ;;  %11022 = vmatmul.mubr.f32.gmra.mrb[22].mxu1 %v14417_v1 }
  0xff   : > { %10868 = vmatprep.mubr.f32.mxu0 %v14418_v16  ;;  %11024 = vmatprep.mubr.f32.mxu1 %v14418_v16 }
 0x102   : > { %10869 = vmatmul.mubr.f32.gmra.mrb[24].mxu0 %v14419_v0  ;;  %11025 = vmatmul.mubr.f32.gmra.mrb[24].mxu1 %v14419_v0 }
 0x103   : > { %10871 = vmatprep.mubr.f32.mxu0 %v12958_v57  ;;  %11027 = vmatprep.mubr.f32.mxu1 %v12958_v57 }
 0x106   : > { %10872 = vmatmul.mubr.f32.gmra.mrb[26].mxu0 %v12970_v42  ;;  %11028 = vmatmul.mubr.f32.gmra.mrb[26].mxu1 %v12970_v42 }
 0x107   : > { %10874 = vmatprep.mubr.f32.mxu0 %v12979_v54  ;;  %11030 = vmatprep.mubr.f32.mxu1 %v12979_v54 }
 0x10a   : > { %10875 = vmatmul.mubr.f32.gmra.mrb[28].mxu0 %v12985_v6  ;;  %11031 = vmatmul.mubr.f32.gmra.mrb[28].mxu1 %v12985_v6 }
 0x10b   : > { %10877 = vmatprep.mubr.f32.mxu0 %v12991_v53  ;;  %11033 = vmatprep.mubr.f32.mxu1 %v12991_v53 }
 0x10e   : > { %10878 = vmatmul.mubr.f32.gmra.mrb[30].mxu0 %v12995_v2  ;;  %11034 = vmatmul.mubr.f32.gmra.mrb[30].mxu1 %v12995_v2 }
 0x10f   : > { %10882 = vmatprep.mubr.f32.mxu0 %v12728_v10  ;;  %11038 = vmatprep.mubr.f32.mxu1 %v12728_v10 }
 0x112   : > { %10883 = vmatmul.mubr.f32.vlgmr.msra.gmra.mrb[16].mxu0 %v12743_v18  ;;  %11039 = vmatmul.mubr.f32.vlgmr.msra.gmra.mrb[16].mxu1 %v12743_v18 }
 0x113   : > { %10907 = vmatpush3.msra.mxu0 %v13156_v4  ;;  %11063 = vmatpush3.msra.mxu1 %v13159_v5  ;;  %v14420_v4 = vld [vmem:[#allocation42_spill] sm:$0xff]  ;;  %v14421_v5 = vld [vmem:[#allocation44_spill] sm:$0xff] }
 0x114   : > { %10885 = vmatprep.mubr.f32.mxu0 %v12745_v19  ;;  %11041 = vmatprep.mubr.f32.mxu1 %v12745_v19 }
 0x115   : > { %10932 = vmatprep.subr.mxu0 %v13119_v24  ;;  %11088 = vmatprep.subr.mxu1 %v13121_v25 }
 0x116   : > { %10886 = vmatmul.mubr.f32.gmra.mrb[18].mxu0 %v12752_v21  ;;  %11042 = vmatmul.mubr.f32.gmra.mrb[18].mxu1 %v12752_v21 }
 0x117   : > { %10888 = vmatprep.mubr.f32.mxu0 %v12774_v30  ;;  %11044 = vmatprep.mubr.f32.mxu1 %v12774_v30 }
 0x11a   : > { %10889 = vmatmul.mubr.f32.gmra.mrb[20].mxu0 %v12776_v31  ;;  %11045 = vmatmul.mubr.f32.gmra.mrb[20].mxu1 %v12776_v31 }
 0x11b   : > { %10891 = vmatprep.mubr.f32.mxu0 %v12832_v60  ;;  %11047 = vmatprep.mubr.f32.mxu1 %v12832_v60 }
 0x11e   : > { %10892 = vmatmul.mubr.f32.gmra.mrb[22].mxu0 %v12837_v62  ;;  %11048 = vmatmul.mubr.f32.gmra.mrb[22].mxu1 %v12837_v62 }
 0x11f   : > { %10894 = vmatprep.mubr.f32.mxu0 %v12850_v8  ;;  %11050 = vmatprep.mubr.f32.mxu1 %v12850_v8 }
 0x122   : > { %10895 = vmatmul.mubr.f32.gmra.mrb[24].mxu0 %v12857_v11  ;;  %11051 = vmatmul.mubr.f32.gmra.mrb[24].mxu1 %v12857_v11 }
 0x123   : > { %10897 = vmatprep.mubr.f32.mxu0 %v12859_v12  ;;  %11053 = vmatprep.mubr.f32.mxu1 %v12859_v12 }
 0x126   : > { %10898 = vmatmul.mubr.f32.gmra.mrb[26].mxu0 %v12869_v23  ;;  %11054 = vmatmul.mubr.f32.gmra.mrb[26].mxu1 %v12869_v23 }
 0x127   : > { %10900 = vmatprep.mubr.f32.mxu0 %v12885_v41  ;;  %11056 = vmatprep.mubr.f32.mxu1 %v12885_v41 }
 0x12a   : > { %10901 = vmatmul.mubr.f32.gmra.mrb[28].mxu0 %v12917_v61  ;;  %11057 = vmatmul.mubr.f32.gmra.mrb[28].mxu1 %v12917_v61 }
 0x12b   : > { %10903 = vmatprep.mubr.f32.mxu0 %v12939_v47  ;;  %11059 = vmatprep.mubr.f32.mxu1 %v12939_v47 }
 0x12e   : > { %10904 = vmatmul.mubr.f32.gmra.mrb[30].mxu0 %v12954_v55  ;;  %11060 = vmatmul.mubr.f32.gmra.mrb[30].mxu1 %v12954_v55 }
 0x12f   : > { %10908 = vmatprep.mubr.f32.mxu0 %v12750_v20  ;;  %11064 = vmatprep.mubr.f32.mxu1 %v12750_v20 }
 0x132   : > { %10909 = vmatmul.mubr.f32.vlgmr.msra.gmra.mrb[16].mxu0 %v12763_v26  ;;  %11065 = vmatmul.mubr.f32.vlgmr.msra.gmra.mrb[16].mxu1 %v12763_v26 }
 0x133   : > { %10933 = vmatpush3.msra.mxu0 %v13119_v24  ;;  %11089 = vmatpush3.msra.mxu1 %v13121_v25 }
 0x134   : > { %10911 = vmatprep.mubr.f32.mxu0 %v12766_v27  ;;  %11067 = vmatprep.mubr.f32.mxu1 %v12766_v27 }
 0x135   : > { %10958 = vmatprep.subr.mxu0 %v13168_v13  ;;  %11114 = vmatprep.subr.mxu1 %v13171_v58 }
 0x136   : > { %10912 = vmatmul.mubr.f32.gmra.mrb[18].mxu0 %v12772_v29  ;;  %11068 = vmatmul.mubr.f32.gmra.mrb[18].mxu1 %v12772_v29 }
 0x137   : > { %10914 = vmatprep.mubr.f32.mxu0 %v12794_v38  ;;  %11070 = vmatprep.mubr.f32.mxu1 %v12794_v38 }
 0x13a   : > { %10915 = vmatmul.mubr.f32.gmra.mrb[20].mxu0 %v12797_v39  ;;  %11071 = vmatmul.mubr.f32.gmra.mrb[20].mxu1 %v12797_v39 }
 0x13b   : > { %10917 = vmatprep.mubr.f32.mxu0 %v12848_v7  ;;  %11073 = vmatprep.mubr.f32.mxu1 %v12848_v7 }
 0x13e   : > { %10918 = vmatmul.mubr.f32.gmra.mrb[22].mxu0 %v12855_v9  ;;  %11074 = vmatmul.mubr.f32.gmra.mrb[22].mxu1 %v12855_v9 }
 0x13f   : > { %10920 = vmatprep.mubr.f32.mxu0 %v12867_v22  ;;  %11076 = vmatprep.mubr.f32.mxu1 %v12867_v22 }
 0x142   : > { %10921 = vmatmul.mubr.f32.gmra.mrb[24].mxu0 %v12880_v36  ;;  %11077 = vmatmul.mubr.f32.gmra.mrb[24].mxu1 %v12880_v36 }
 0x143   : > { %10923 = vmatprep.mubr.f32.mxu0 %v12883_v40  ;;  %11079 = vmatprep.mubr.f32.mxu1 %v12883_v40 }
 0x146   : > { %10924 = vmatmul.mubr.f32.gmra.mrb[26].mxu0 %v12895_v44  ;;  %11080 = vmatmul.mubr.f32.gmra.mrb[26].mxu1 %v12895_v44 }
 0x147   : > { %10926 = vmatprep.mubr.f32.mxu0 %v12907_v52  ;;  %11082 = vmatprep.mubr.f32.mxu1 %v12907_v52 }
 0x14a   : > { %10927 = vmatmul.mubr.f32.gmra.mrb[28].mxu0 %v12936_v32  ;;  %11083 = vmatmul.mubr.f32.gmra.mrb[28].mxu1 %v12936_v32 }
 0x14b   : > { %10929 = vmatprep.mubr.f32.mxu0 %v12952_v45  ;;  %11085 = vmatprep.mubr.f32.mxu1 %v12952_v45 }
 0x14e   : > { %10930 = vmatmul.mubr.f32.gmra.mrb[30].mxu0 %v12966_v63  ;;  %11086 = vmatmul.mubr.f32.gmra.mrb[30].mxu1 %v12966_v63 }
 0x14f   : > { %10934 = vmatprep.mubr.f32.mxu0 %v12769_v28  ;;  %11090 = vmatprep.mubr.f32.mxu1 %v12769_v28 }
 0x152   : > { %10935 = vmatmul.mubr.f32.vlgmr.msra.gmra.mrb[16].mxu0 %v12783_v34  ;;  %11091 = vmatmul.mubr.f32.vlgmr.msra.gmra.mrb[16].mxu1 %v12783_v34 }
 0x153   : > { %10959 = vmatpush3.msra.mxu0 %v13168_v13  ;;  %11115 = vmatpush3.msra.mxu1 %v13171_v58  ;;  %v14422_v13 = vld [vmem:[#allocation46_spill] sm:$0xff]  ;;  %v9717_v58 = vld [vmem:[%s12701_s9 + $0x20] sm:$0xff] }
 0x154   : > { %10937 = vmatprep.mubr.f32.mxu0 %v12786_v35  ;;  %11093 = vmatprep.mubr.f32.mxu1 %v12786_v35 }
 0x155   : > { %10984 = vmatprep.subr.mxu0 %v13119_v24  ;;  %11140 = vmatprep.subr.mxu1 %v13121_v25 }
 0x156   : > { %10938 = vmatmul.mubr.f32.gmra.mrb[18].mxu0 %v12791_v37  ;;  %11094 = vmatmul.mubr.f32.gmra.mrb[18].mxu1 %v12791_v37 }
 0x157   : > { %10940 = vmatprep.mubr.f32.mxu0 %v12810_v48  ;;  %11096 = vmatprep.mubr.f32.mxu1 %v12810_v48 }
 0x15a   : > { %10941 = vmatmul.mubr.f32.gmra.mrb[20].mxu0 %v12813_v49  ;;  %11097 = vmatmul.mubr.f32.gmra.mrb[20].mxu1 %v12813_v49 }
 0x15b   : > { %10943 = vmatprep.mubr.f32.mxu0 %v12864_v15  ;;  %11099 = vmatprep.mubr.f32.mxu1 %v12864_v15 }
 0x15e   : > { %10944 = vmatmul.mubr.f32.gmra.mrb[22].mxu0 %v12877_v33  ;;  %11100 = vmatmul.mubr.f32.gmra.mrb[22].mxu1 %v12877_v33  ;;  %v13427_v33 = vpop.permute.xlu0 %266 }
 0x15f   : > { %10946 = vmatprep.mubr.f32.mxu0 %v12892_v43  ;;  %11102 = vmatprep.mubr.f32.mxu1 %v12892_v43  ;;  %14425 = vst [vmem:[#allocation41_spill] sm:$0xff] %v13427_v33 }
 0x162   : > { %10947 = vmatmul.mubr.f32.gmra.mrb[24].mxu0 %v12901_v50  ;;  %11103 = vmatmul.mubr.f32.gmra.mrb[24].mxu1 %v12901_v50 }
 0x163   : > { %10949 = vmatprep.mubr.f32.mxu0 %v12904_v51  ;;  %11105 = vmatprep.mubr.f32.mxu1 %v12904_v51  ;;  %v9718_v51 = vld [vmem:[%s12701_s9 + $0x28] sm:$0xff] }
 0x166   : > { %10950 = vmatmul.mubr.f32.gmra.mrb[26].mxu0 %v12915_v59  ;;  %11106 = vmatmul.mubr.f32.gmra.mrb[26].mxu1 %v12915_v59  ;;  %v13363_v59 = vand.u32 4294901760, %v9717_v58 }
 0x167   : > { %10952 = vmatprep.mubr.f32.mxu0 %v12933_v14  ;;  %11108 = vmatprep.mubr.f32.mxu1 %v12933_v14  ;;  %v13365_v14 = vand.u32 4294901760, %v9718_v51 }
 0x16a   : > { %10953 = vmatmul.mubr.f32.gmra.mrb[28].mxu0 %v14420_v4  ;;  %11109 = vmatmul.mubr.f32.gmra.mrb[28].mxu1 %v14420_v4  ;;  %v13419_v4 = vpop.permute.xlu1 %276 }
 0x16b   : > { %10955 = vmatprep.mubr.f32.mxu0 %v14421_v5  ;;  %11111 = vmatprep.mubr.f32.mxu1 %v14421_v5 }
 0x16e   : > { %10956 = vmatmul.mubr.f32.gmra.mrb[30].mxu0 %v14422_v13  ;;  %11112 = vmatmul.mubr.f32.gmra.mrb[30].mxu1 %v14422_v13 }
 0x16f   : > { %10960 = vmatprep.mubr.f32.mxu0 %v12728_v10  ;;  %11116 = vmatprep.mubr.f32.mxu1 %v12728_v10 }
 0x172   : > { %10961 = vmatmul.mubr.f32.vlgmr.msra.gmra.mrb[16].mxu0 %v12743_v18  ;;  %11117 = vmatmul.mubr.f32.vlgmr.msra.gmra.mrb[16].mxu1 %v12743_v18 }
 0x173   : > { %10985 = vmatpush3.msra.mxu0 %v13119_v24  ;;  %11141 = vmatpush3.msra.mxu1 %v13121_v25  ;;  %v13392_v24 = vsub.f32 %v9717_v58, %v13363_v59  ;;  %v13395_v25 = vsub.f32 %v9718_v51, %v13365_v14 }
 0x174   : > { %10963 = vmatprep.mubr.f32.mxu0 %v12745_v19  ;;  %11119 = vmatprep.mubr.f32.mxu1 %v12745_v19 }
 0x175   : > { %11166 = vmatprep.subr.mxu0 %v13363_v59  ;;  %11322 = vmatprep.subr.mxu1 %v13365_v14  ;;  %v13402_v13 = vand.u32 4294901760, %v13392_v24  ;;  %v13405_v5 = vand.u32 4294901760, %v13395_v25 }
 0x176   : > { %10964 = vmatmul.mubr.f32.gmra.mrb[18].mxu0 %v12752_v21  ;;  %11120 = vmatmul.mubr.f32.gmra.mrb[18].mxu1 %v12752_v21 }
 0x177   : > { %10966 = vmatprep.mubr.f32.mxu0 %v12774_v30  ;;  %11122 = vmatprep.mubr.f32.mxu1 %v12774_v30  ;;  %14423 = vst [vmem:[#allocation18_spill] sm:$0xff] %v13402_v13  ;;  %14424 = vst [vmem:[#allocation37_spill] sm:$0xff] %v13405_v5  ;;  %v5220_v51 = vsub.f32 %v13392_v24, %v13402_v13  ;;  %v6369_v58 = vsub.f32 %v13395_v25, %v13405_v5 }
 0x179   : > { %v13421_v50 = vand.u32 4294901760, %v5220_v51  ;;  %v13423_v43 = vand.u32 4294901760, %v6369_v58  ;;  %v13437_v51 = vpop.permute.xlu1 %281  ;;  %v13441_v58 = vpop.permute.xlu0 %271 }
 0x17a   : > { %10967 = vmatmul.mubr.f32.gmra.mrb[20].mxu0 %v12776_v31  ;;  %11123 = vmatmul.mubr.f32.gmra.mrb[20].mxu1 %v12776_v31  ;;  %14426 = vst [vmem:[#allocation47_spill] sm:$0xff] %v13441_v58 }
 0x17b   : > { %10969 = vmatprep.mubr.f32.mxu0 %v12832_v60  ;;  %11125 = vmatprep.mubr.f32.mxu1 %v12832_v60 }
 0x17d   : > { %v13447_v15 = vpop.permute.xlu1 %291  ;;  %v13449_v49 = vpop.permute.xlu0 %286 }
 0x17e   : > { %10970 = vmatmul.mubr.f32.gmra.mrb[22].mxu0 %v12837_v62  ;;  %11126 = vmatmul.mubr.f32.gmra.mrb[22].mxu1 %v12837_v62  ;;  %14427 = vst [vmem:[#allocation48_spill] sm:$0xff] %v13447_v15  ;;  %14428 = vst [vmem:[#allocation49_spill] sm:$0xff] %v13449_v49 }
 0x17f   : > { %10972 = vmatprep.mubr.f32.mxu0 %v12850_v8  ;;  %11128 = vmatprep.mubr.f32.mxu1 %v12850_v8 }
 0x181   : > { %v13457_v48 = vpop.permute.xlu1 %301  ;;  %v13459_v37 = vpop.permute.xlu0 %296 }
 0x182   : > { %10973 = vmatmul.mubr.f32.gmra.mrb[24].mxu0 %v12857_v11  ;;  %11129 = vmatmul.mubr.f32.gmra.mrb[24].mxu1 %v12857_v11  ;;  %14429 = vst [vmem:[#allocation50_spill] sm:$0xff] %v13457_v48  ;;  %14430 = vst [vmem:[#allocation51_spill] sm:$0xff] %v13459_v37 }
 0x183   : > { %10975 = vmatprep.mubr.f32.mxu0 %v12859_v12  ;;  %11131 = vmatprep.mubr.f32.mxu1 %v12859_v12 }
 0x185   : > { %v13467_v45 = vpop.permute.xlu1 %311  ;;  %v13469_v32 = vpop.permute.xlu0 %306 }
 0x186   : > { %10976 = vmatmul.mubr.f32.gmra.mrb[26].mxu0 %v12869_v23  ;;  %11132 = vmatmul.mubr.f32.gmra.mrb[26].mxu1 %v12869_v23  ;;  %14431 = vst [vmem:[#allocation52_spill] sm:$0xff] %v13467_v45 }
 0x187   : > { %10978 = vmatprep.mubr.f32.mxu0 %v12885_v41  ;;  %11134 = vmatprep.mubr.f32.mxu1 %v12885_v41 }
 0x189   : > { %v13497_v13 = vpop.permute.xlu1 %321  ;;  %v13499_v27 = vpop.permute.xlu0 %316 }
 0x18a   : > { %10979 = vmatmul.mubr.f32.gmra.mrb[28].mxu0 %v12917_v61  ;;  %11135 = vmatmul.mubr.f32.gmra.mrb[28].mxu1 %v12917_v61 }
 0x18b   : > { %10981 = vmatprep.mubr.f32.mxu0 %v12939_v47  ;;  %11137 = vmatprep.mubr.f32.mxu1 %v12939_v47 }
 0x18e   : > { %10982 = vmatmul.mubr.f32.gmra.mrb[30].mxu0 %v12954_v55  ;;  %11138 = vmatmul.mubr.f32.gmra.mrb[30].mxu1 %v12954_v55 }
 0x18f   : > { %10986 = vmatprep.mubr.f32.mxu0 %v12728_v10  ;;  %11142 = vmatprep.mubr.f32.mxu1 %v12728_v10 }
 0x192   : > { %10987 = vmatmul.mubr.f32.vlgmr.msra.gmra.mrb[16].mxu0 %v12743_v18  ;;  %11143 = vmatmul.mubr.f32.vlgmr.msra.gmra.mrb[16].mxu1 %v12743_v18 }
 0x193   : > { %11167 = vmatpush3.msra.mxu0 %v13363_v59  ;;  %11323 = vmatpush3.msra.mxu1 %v13365_v14 }
 0x194   : > { %10989 = vmatprep.mubr.f32.mxu0 %v12745_v19  ;;  %11145 = vmatprep.mubr.f32.mxu1 %v12745_v19 }
 0x195   : > { %11192 = vmatprep.subr.mxu0 %v13421_v50  ;;  %11348 = vmatprep.subr.mxu1 %v13423_v43 }
 0x196   : > { %10990 = vmatmul.mubr.f32.gmra.mrb[18].mxu0 %v12752_v21  ;;  %11146 = vmatmul.mubr.f32.gmra.mrb[18].mxu1 %v12752_v21 }
 0x197   : > { %10992 = vmatprep.mubr.f32.mxu0 %v12774_v30  ;;  %11148 = vmatprep.mubr.f32.mxu1 %v12774_v30 }
 0x19a   : > { %10993 = vmatmul.mubr.f32.gmra.mrb[20].mxu0 %v12776_v31  ;;  %11149 = vmatmul.mubr.f32.gmra.mrb[20].mxu1 %v12776_v31 }
 0x19b   : > { %10995 = vmatprep.mubr.f32.mxu0 %v12832_v60  ;;  %11151 = vmatprep.mubr.f32.mxu1 %v12832_v60 }
 0x19e   : > { %10996 = vmatmul.mubr.f32.gmra.mrb[22].mxu0 %v12837_v62  ;;  %11152 = vmatmul.mubr.f32.gmra.mrb[22].mxu1 %v12837_v62 }
 0x19f   : > { %10998 = vmatprep.mubr.f32.mxu0 %v12850_v8  ;;  %11154 = vmatprep.mubr.f32.mxu1 %v12850_v8 }
 0x1a2   : > { %10999 = vmatmul.mubr.f32.gmra.mrb[24].mxu0 %v12857_v11  ;;  %11155 = vmatmul.mubr.f32.gmra.mrb[24].mxu1 %v12857_v11 }
 0x1a3   : > { %11001 = vmatprep.mubr.f32.mxu0 %v12859_v12  ;;  %11157 = vmatprep.mubr.f32.mxu1 %v12859_v12 }
 0x1a5   : > { %v10676_v35 = vpop.f32.mrb[0].mxu0  ;;  %v10832_v34 = vpop.f32.mrb[0].mxu1 }
 0x1a6   : > { %v1391_v28 = vpop.f32.mrb[1].mxu0  ;;  %v2540_v63 = vpop.f32.mrb[1].mxu1  ;;  %11002 = vmatmul.mubr.f32.gmra.mrb[26].mxu0 %v12869_v23  ;;  %11158 = vmatmul.mubr.f32.gmra.mrb[26].mxu1 %v12869_v23  ;;  %vm1486_vm1 = vcmp.lt.f32.partialorder %v10676_v35, 0.0  ;;  %vm2635_vm2 = vcmp.lt.f32.partialorder %v10832_v34, 0.0 }
 0x1a7   : > { %11004 = vmatprep.mubr.f32.mxu0 %v12885_v41  ;;  %11160 = vmatprep.mubr.f32.mxu1 %v12885_v41  ;;  %vm1485_vm3 = vcmp.lt.f32.partialorder %v1391_v28, 0.0  ;;  %vm2634_vm4 = vcmp.lt.f32.partialorder %v2540_v63, 0.0  ;;  %v13476_v22 = vsel %vm1486_vm1, %v13441_v58, inf  ;;  %v13479_v35 = vsel %vm2635_vm2, %v13441_v58, inf }
 0x1a8   : > { %v13482_v34 = vsel %vm1485_vm3, %v13427_v33, inf  ;;  %v13485_v28 = vsel %vm2634_vm4, %v13427_v33, inf  ;;  %v14432_v33 = vld [vmem:[#allocation15_spill] sm:$0xff] }
 0x1a9   : > { %v10679_v52 = vpop.f32.mrb[2].mxu0  ;;  %v10835_v44 = vpop.f32.mrb[2].mxu1 }
 0x1aa   : > { %v1403_v40 = vpop.f32.mrb[3].mxu0  ;;  %v2552_v36 = vpop.f32.mrb[3].mxu1  ;;  %11005 = vmatmul.mubr.f32.gmra.mrb[28].mxu0 %v12917_v61  ;;  %11161 = vmatmul.mubr.f32.gmra.mrb[28].mxu1 %v12917_v61  ;;  %vm1488_vm5 = vcmp.lt.f32.partialorder %v10679_v52, 0.0  ;;  %vm2637_vm6 = vcmp.lt.f32.partialorder %v10835_v44, 0.0 }
 0x1ab   : > { %11007 = vmatprep.mubr.f32.mxu0 %v12939_v47  ;;  %11163 = vmatprep.mubr.f32.mxu1 %v12939_v47  ;;  %vm1487_vm7 = vcmp.lt.f32.partialorder %v1403_v40, 0.0  ;;  %vm2636_vm8 = vcmp.lt.f32.partialorder %v2552_v36, 0.0 }
 0x1ad   : > { %v10682_v63 = vpop.f32.mrb[4].mxu0  ;;  %v10838_v9 = vpop.f32.mrb[4].mxu1 }
 0x1ae   : > { %vm1490_vm9 = vcmp.lt.f32.partialorder %v10682_v63, 0.0  ;;  %vm2639_vm10 = vcmp.lt.f32.partialorder %v10838_v9, 0.0  ;;  %v1415_v7 = vpop.f32.mrb[5].mxu0  ;;  %v2564_v39 = vpop.f32.mrb[5].mxu1  ;;  %11008 = vmatmul.mubr.f32.gmra.mrb[30].mxu0 %v12954_v55  ;;  %11164 = vmatmul.mubr.f32.gmra.mrb[30].mxu1 %v12954_v55 }
 0x1af   : > { %v1506_v58 = vsel %vm1490_vm9, %v13447_v15, inf  ;;  %v2655_v38 = vsel %vm2639_vm10, %v13447_v15, inf  ;;  %vm1489_vm11 = vcmp.lt.f32.partialorder %v1415_v7, 0.0  ;;  %vm2638_vm12 = vcmp.lt.f32.partialorder %v2564_v39, 0.0  ;;  %11168 = vmatprep.mubr.f32.mxu0 %v14432_v33  ;;  %11324 = vmatprep.mubr.f32.mxu1 %v14432_v33 }
 0x1b0   : > { %v1518_v29 = vmin.f32 %v13476_v22, %v1506_v58  ;;  %v2667_v9 = vmin.f32 %v13479_v35, %v2655_v38  ;;  %v1505_v63 = vsel %vm1489_vm11, %v13449_v49, inf  ;;  %v2654_v5 = vsel %vm2638_vm12, %v13449_v49, inf }
 0x1b1   : > { %v13503_v7 = vsel %vm1488_vm5, %v13437_v51, inf  ;;  %v13507_v39 = vsel %vm2637_vm6, %v13437_v51, inf  ;;  %v1517_v22 = vmin.f32 %v13482_v34, %v1505_v63  ;;  %v2666_v38 = vmin.f32 %v13485_v28, %v2654_v5  ;;  %v10685_v58 = vpop.f32.mrb[6].mxu0  ;;  %v10841_v35 = vpop.f32.mrb[6].mxu1  ;;  %v14433_v28 = vld [vmem:[#allocation19_spill] sm:$0xff] }
 0x1b2   : > { %v13513_v49 = vsel %vm1487_vm7, %v13419_v4, inf  ;;  %v13517_v33 = vsel %vm2636_vm8, %v13419_v4, inf  ;;  %vm1492_vm13 = vcmp.lt.f32.partialorder %v10685_v58, 0.0  ;;  %vm2641_vm14 = vcmp.lt.f32.partialorder %v10841_v35, 0.0  ;;  %v1427_v52 = vpop.f32.mrb[7].mxu0  ;;  %v2576_v44 = vpop.f32.mrb[7].mxu1  ;;  %11169 = vmatmul.mubr.f32.vlgmr.msra.gmra.mrb[32].mxu0 %v14411_v3  ;;  %11325 = vmatmul.mubr.f32.vlgmr.msra.gmra.mrb[32].mxu1 %v14411_v3 }
 0x1b3   : > { %v1508_v5 = vsel %vm1492_vm13, %v13457_v48, inf  ;;  %v2657_v34 = vsel %vm2641_vm14, %v13457_v48, inf  ;;  %vm1491_vm15 = vcmp.lt.f32.partialorder %v1427_v52, 0.0  ;;  %vm2640_vm0 = vcmp.lt.f32.partialorder %v2576_v44, 0.0  ;;  %11193 = vmatpush3.msra.mxu0 %v13421_v50  ;;  %11349 = vmatpush3.msra.mxu1 %v13423_v43 }
 0x1b4   : > { %v1507_v36 = vsel %vm1491_vm15, %v13459_v37, inf  ;;  %v2656_v40 = vsel %vm2640_vm0, %v13459_v37, inf  ;;  %11171 = vmatprep.mubr.f32.mxu0 %v14433_v28  ;;  %11327 = vmatprep.mubr.f32.mxu1 %v14433_v28  ;;  %v1520_v63 = vmin.f32 %v13503_v7, %v1508_v5  ;;  %v2669_v58 = vmin.f32 %v13507_v39, %v2657_v34  ;;  %v14434_v37 = vld [vmem:[#allocation20_spill] sm:$0xff]  ;;  %v13547_v34 = vpop.permute.xlu1 %331 }
 0x1b5   : > { %v10688_v35 = vpop.f32.mrb[8].mxu0  ;;  %v10844_v48 = vpop.f32.mrb[8].mxu1  ;;  %v1519_v52 = vmin.f32 %v13513_v49, %v1507_v36  ;;  %v2668_v50 = vmin.f32 %v13517_v33, %v2656_v40  ;;  %11218 = vmatprep.subr.mxu0 %v13392_v24  ;;  %11374 = vmatprep.subr.mxu1 %v13395_v25 }
 0x1b6   : > { %vm1494_vm1 = vcmp.lt.f32.partialorder %v10688_v35, 0.0  ;;  %vm2643_vm2 = vcmp.lt.f32.partialorder %v10844_v48, 0.0  ;;  %v1439_v43 = vpop.f32.mrb[9].mxu0  ;;  %v2588_v44 = vpop.f32.mrb[9].mxu1  ;;  %11172 = vmatmul.mubr.f32.gmra.mrb[34].mxu0 %v14434_v37  ;;  %11328 = vmatmul.mubr.f32.gmra.mrb[34].mxu1 %v14434_v37 }
 0x1b7   : > { %v1510_v7 = vsel %vm1494_vm1, %v13467_v45, inf  ;;  %v2659_v39 = vsel %vm2643_vm2, %v13467_v45, inf  ;;  %vm1493_vm3 = vcmp.lt.f32.partialorder %v1439_v43, 0.0  ;;  %vm2642_vm4 = vcmp.lt.f32.partialorder %v2588_v44, 0.0  ;;  %11174 = vmatprep.mubr.f32.mxu0 %v14414_v56  ;;  %11330 = vmatprep.mubr.f32.mxu1 %v14414_v56  ;;  %v13549_v36 = vpop.permute.xlu0 %326 }
 0x1b8   : > { %v13541_v49 = vmin.f32 %v1518_v29, %v1510_v7  ;;  %v13543_v33 = vmin.f32 %v2667_v9, %v2659_v39  ;;  %v1509_v48 = vsel %vm1493_vm3, %v13469_v32, inf  ;;  %v2658_v5 = vsel %vm2642_vm4, %v13469_v32, inf }
 0x1b9   : > { %v1521_v40 = vmin.f32 %v1517_v22, %v1509_v48  ;;  %v13551_v35 = vmin.f32 %v2666_v38, %v2658_v5  ;;  %v10691_v43 = vpop.f32.mrb[10].mxu0  ;;  %v10847_v44 = vpop.f32.mrb[10].mxu1 }
 0x1ba   : > { %vm1496_vm5 = vcmp.lt.f32.partialorder %v10691_v43, 0.0  ;;  %vm2645_vm6 = vcmp.lt.f32.partialorder %v10847_v44, 0.0  ;;  %v1451_v56 = vpop.f32.mrb[11].mxu0  ;;  %v2600_v29 = vpop.f32.mrb[11].mxu1  ;;  %11175 = vmatmul.mubr.f32.gmra.mrb[36].mxu0 %v14415_v46  ;;  %11331 = vmatmul.mubr.f32.gmra.mrb[36].mxu1 %v14415_v46 }
 0x1bb   : > { %vm1495_vm7 = vcmp.lt.f32.partialorder %v1451_v56, 0.0  ;;  %vm2644_vm8 = vcmp.lt.f32.partialorder %v2600_v29, 0.0  ;;  %11177 = vmatprep.mubr.f32.mxu0 %v14416_v17  ;;  %11333 = vmatprep.mubr.f32.mxu1 %v14416_v17  ;;  %v1512_v9 = vsel %vm1496_vm5, %v13497_v13, inf  ;;  %v2661_v22 = vsel %vm2645_vm6, %v13497_v13, inf }
 0x1bc   : > { %v1524_v38 = vmin.f32 %v1520_v63, %v1512_v9  ;;  %v2673_v7 = vmin.f32 %v2669_v58, %v2661_v22  ;;  %v1511_v39 = vsel %vm1495_vm7, %v13499_v27, inf  ;;  %v2660_v48 = vsel %vm2644_vm8, %v13499_v27, inf  ;;  %v13571_v22 = vpop.permute.xlu1 %341 }
 0x1bd   : > { %v10694_v5 = vpop.f32.mrb[12].mxu0  ;;  %v10850_v43 = vpop.f32.mrb[12].mxu1  ;;  %v1523_v44 = vmin.f32 %v1519_v52, %v1511_v39  ;;  %v2672_v46 = vmin.f32 %v2668_v50, %v2660_v48 }
 0x1be   : > { %vm1498_vm9 = vcmp.lt.f32.partialorder %v10694_v5, 0.0  ;;  %vm2647_vm10 = vcmp.lt.f32.partialorder %v10850_v43, 0.0  ;;  %v1463_v56 = vpop.f32.mrb[13].mxu0  ;;  %v2612_v29 = vpop.f32.mrb[13].mxu1  ;;  %11178 = vmatmul.mubr.f32.gmra.mrb[38].mxu0 %v14417_v1  ;;  %11334 = vmatmul.mubr.f32.gmra.mrb[38].mxu1 %v14417_v1 }
 0x1bf   : > { %v1514_v17 = vsel %vm1498_vm9, %v13547_v34, inf  ;;  %v2663_v63 = vsel %vm2647_vm10, %v13547_v34, inf  ;;  %vm1497_vm11 = vcmp.lt.f32.partialorder %v1463_v56, 0.0  ;;  %vm2646_vm12 = vcmp.lt.f32.partialorder %v2612_v29, 0.0  ;;  %11180 = vmatprep.mubr.f32.mxu0 %v14418_v16  ;;  %11336 = vmatprep.mubr.f32.mxu1 %v14418_v16  ;;  %v13573_v39 = vpop.permute.xlu0 %336 }
 0x1c0   : > { %v1526_v58 = vmin.f32 %v13541_v49, %v1514_v17  ;;  %v2675_v52 = vmin.f32 %v13543_v33, %v2663_v63  ;;  %v1513_v50 = vsel %vm1497_vm11, %v13549_v36, inf  ;;  %v2662_v9 = vsel %vm2646_vm12, %v13549_v36, inf }
 0x1c1   : > { %v1525_v48 = vmin.f32 %v1521_v40, %v1513_v50  ;;  %v2674_v5 = vmin.f32 %v13551_v35, %v2662_v9  ;;  %v10697_v43 = vpop.f32.mrb[14].mxu0  ;;  %v10853_v56 = vpop.f32.mrb[14].mxu1 }
 0x1c2   : > { %vm1500_vm13 = vcmp.lt.f32.partialorder %v10697_v43, 0.0  ;;  %vm2649_vm14 = vcmp.lt.f32.partialorder %v10853_v56, 0.0  ;;  %v1475_v29 = vpop.f32.mrb[15].mxu0  ;;  %v2624_v16 = vpop.f32.mrb[15].mxu1  ;;  %11181 = vmatmul.mubr.f32.gmra.mrb[40].mxu0 %v14419_v0  ;;  %11337 = vmatmul.mubr.f32.gmra.mrb[40].mxu1 %v14419_v0 }
 0x1c3   : > { %v1516_v17 = vsel %vm1500_vm13, %v13571_v22, inf  ;;  %v2665_v49 = vsel %vm2649_vm14, %v13571_v22, inf  ;;  %vm1499_vm15 = vcmp.lt.f32.partialorder %v1475_v29, 0.0  ;;  %vm2648_vm0 = vcmp.lt.f32.partialorder %v2624_v16, 0.0  ;;  %11183 = vmatprep.mubr.f32.mxu0 %v12958_v57  ;;  %11339 = vmatprep.mubr.f32.mxu1 %v12958_v57 }
 0x1c4   : > { %v1528_v33 = vmin.f32 %v1524_v38, %v1516_v17  ;;  %v2677_v40 = vmin.f32 %v2673_v7, %v2665_v49  ;;  %v1515_v35 = vsel %vm1499_vm15, %v13573_v39, inf  ;;  %v1529_v63 = vmin.f32 %v1525_v48, %v1526_v58 }
 0x1c5   : > { %v1527_v50 = vmin.f32 %v1523_v44, %v1515_v35  ;;  %v2664_v9 = vsel %vm2648_vm0, %v13573_v39, inf  ;;  %v2678_v43 = vmin.f32 %v2674_v5, %v2675_v52 }
 0x1c6   : > { %v2676_v56 = vmin.f32 %v2672_v46, %v2664_v9  ;;  %11184 = vmatmul.mubr.f32.gmra.mrb[42].mxu0 %v12970_v42  ;;  %11340 = vmatmul.mubr.f32.gmra.mrb[42].mxu1 %v12970_v42 }
 0x1c7   : > { %v1530_v29 = vmin.f32 %v1527_v50, %v1528_v33  ;;  %11186 = vmatprep.mubr.f32.mxu0 %v12979_v54  ;;  %11342 = vmatprep.mubr.f32.mxu1 %v12979_v54 }
 0x1c8   : > { %v2679_v16 = vmin.f32 %v2676_v56, %v2677_v40  ;;  %v1538_v40 = vld [vmem:[%s12713_s23] sm:$0x1]  ;;  %v14436_v56 = vld [vmem:[#allocation18_spill] sm:$0xff] }
 0x1c9   : > { %v1531_v38 = vmin.f32 %v1529_v63, %v1530_v29  ;;  %v2687_v63 = vld [vmem:[%s12713_s23 + $0x1] sm:$0x1] }
 0x1ca   : > { %v2680_v7 = vmin.f32 %v2678_v43, %v2679_v16  ;;  %11187 = vmatmul.mubr.f32.gmra.mrb[44].mxu0 %v12985_v6  ;;  %11343 = vmatmul.mubr.f32.gmra.mrb[44].mxu1 %v12985_v6  ;;  %v14435_v43 = vld [vmem:[#allocation7_spill] sm:$0xff]  ;;  %v14437_v29 = vld [vmem:[#allocation37_spill] sm:$0xff] }
 0x1cb   : > { %v1532_v44 = vrot.slane %v1531_v38, 4  ;;  %11189 = vmatprep.mubr.f32.mxu0 %v12991_v53  ;;  %11345 = vmatprep.mubr.f32.mxu1 %v12991_v53  ;;  %v14438_v16 = vld [vmem:[#allocation9_spill] sm:$0xff] }
 0x1cc   : > { %v2681_v46 = vrot.slane %v2680_v7, 4 }
 0x1cd   : > { %v1533_v58 = vmin.f32 %v1531_v38, %v1532_v44  ;;  %v14439_v38 = vld [vmem:[#allocation13_spill] sm:$0xff]  ;;  %v14441_v44 = vld [vmem:[#allocation23_spill] sm:$0xff] }
 0x1ce   : > { %v2682_v52 = vmin.f32 %v2680_v7, %v2681_v46  ;;  %11190 = vmatmul.mubr.f32.gmra.mrb[46].mxu0 %v12995_v2  ;;  %11346 = vmatmul.mubr.f32.gmra.mrb[46].mxu1 %v12995_v2  ;;  %v14440_v7 = vld [vmem:[#allocation14_spill] sm:$0xff]  ;;  %v14442_v46 = vld [vmem:[#allocation24_spill] sm:$0xff] }
 0x1cf   : > { %v1534_v48 = vrot.slane %v1533_v58, 2  ;;  %11194 = vmatprep.mubr.f32.mxu0 %v12728_v10  ;;  %11350 = vmatprep.mubr.f32.mxu1 %v12728_v10 }
 0x1d0   : > { %v2683_v5 = vrot.slane %v2682_v52, 2 }
 0x1d1   : > { %v1535_v17 = vmin.f32 %v1533_v58, %v1534_v48  ;;  %v14443_v58 = vld [vmem:[#allocation26_spill] sm:$0xff]  ;;  %v14445_v48 = vld [vmem:[#allocation29_spill] sm:$0xff] }
 0x1d2   : > { %v2684_v49 = vmin.f32 %v2682_v52, %v2683_v5  ;;  %11195 = vmatmul.mubr.f32.vlgmr.msra.gmra.mrb[32].mxu0 %v12743_v18  ;;  %11351 = vmatmul.mubr.f32.vlgmr.msra.gmra.mrb[32].mxu1 %v12743_v18  ;;  %v14444_v52 = vld [vmem:[#allocation28_spill] sm:$0xff]  ;;  %v14446_v5 = vld [vmem:[#allocation31_spill] sm:$0xff] }
 0x1d3   : > { %v1536_v33 = vrot.slane %v1535_v17, 1  ;;  %11219 = vmatpush3.msra.mxu0 %v13392_v24  ;;  %11375 = vmatpush3.msra.mxu1 %v13395_v25 }
 0x1d4   : > { %v2685_v35 = vrot.slane %v2684_v49, 1  ;;  %11197 = vmatprep.mubr.f32.mxu0 %v12745_v19  ;;  %11353 = vmatprep.mubr.f32.mxu1 %v12745_v19 }
 0x1d5   : > { %v1537_v50 = vmin.f32 %v1535_v17, %v1536_v33  ;;  %11244 = vmatprep.subr.mxu0 %v13363_v59  ;;  %11400 = vmatprep.subr.mxu1 %v13365_v14  ;;  %v14447_v17 = vld [vmem:[#allocation34_spill] sm:$0xff]  ;;  %v14449_v33 = vld [vmem:[#allocation43_spill] sm:$0xff] }
 0x1d6   : > { %v2686_v9 = vmin.f32 %v2684_v49, %v2685_v35  ;;  %11198 = vmatmul.mubr.f32.gmra.mrb[34].mxu0 %v12752_v21  ;;  %11354 = vmatmul.mubr.f32.gmra.mrb[34].mxu1 %v12752_v21  ;;  %v14448_v49 = vld [vmem:[#allocation40_spill] sm:$0xff] }
 0x1d7   : > { %v1539_v24 = vmin.f32 %v1538_v40, %v1537_v50  ;;  %11200 = vmatprep.mubr.f32.mxu0 %v12774_v30  ;;  %11356 = vmatprep.mubr.f32.mxu1 %v12774_v30  ;;  %v14450_v40 = vld [vmem:[#allocation45_spill] sm:$0xff]  ;;  %v14451_v35 = vld [vmem:[#allocation8_spill] sm:$0xff]  ;;  %v14453_v50 = vld [vmem:[#allocation11_spill] sm:$0xff] }
 0x1d8   : > { %v2688_v25 = vmin.f32 %v2687_v63, %v2686_v9  ;;  %v14452_v63 = vld [vmem:[#allocation10_spill] sm:$0xff]  ;;  %v14454_v9 = vld [vmem:[#allocation12_spill] sm:$0xff] }
 0x1d9   : > { %1540 = vst [vmem:[%s12713_s23] sm:$0x1] %v1539_v24  ;;  %v14455_v24 = vld [vmem:[#allocation16_spill] sm:$0xff] }
 0x1da   : > { %2689 = vst [vmem:[%s12713_s23 + $0x1] sm:$0x1] %v2688_v25  ;;  %11201 = vmatmul.mubr.f32.gmra.mrb[36].mxu0 %v12776_v31  ;;  %11357 = vmatmul.mubr.f32.gmra.mrb[36].mxu1 %v12776_v31  ;;  %v14456_v25 = vld [vmem:[#allocation17_spill] sm:$0xff] }
 0x1db   : > { %11203 = vmatprep.mubr.f32.mxu0 %v12832_v60  ;;  %11359 = vmatprep.mubr.f32.mxu1 %v12832_v60 }
 0x1de   : > { %11204 = vmatmul.mubr.f32.gmra.mrb[38].mxu0 %v12837_v62  ;;  %11360 = vmatmul.mubr.f32.gmra.mrb[38].mxu1 %v12837_v62 }
 0x1df   : > { %11206 = vmatprep.mubr.f32.mxu0 %v12850_v8  ;;  %11362 = vmatprep.mubr.f32.mxu1 %v12850_v8 }
 0x1e2   : > { %11207 = vmatmul.mubr.f32.gmra.mrb[40].mxu0 %v12857_v11  ;;  %11363 = vmatmul.mubr.f32.gmra.mrb[40].mxu1 %v12857_v11 }
 0x1e3   : > { %11209 = vmatprep.mubr.f32.mxu0 %v12859_v12  ;;  %11365 = vmatprep.mubr.f32.mxu1 %v12859_v12 }
 0x1e6   : > { %11210 = vmatmul.mubr.f32.gmra.mrb[42].mxu0 %v12869_v23  ;;  %11366 = vmatmul.mubr.f32.gmra.mrb[42].mxu1 %v12869_v23 }
 0x1e7   : > { %11212 = vmatprep.mubr.f32.mxu0 %v12885_v41  ;;  %11368 = vmatprep.mubr.f32.mxu1 %v12885_v41 }
 0x1ea   : > { %11213 = vmatmul.mubr.f32.gmra.mrb[44].mxu0 %v12917_v61  ;;  %11369 = vmatmul.mubr.f32.gmra.mrb[44].mxu1 %v12917_v61 }
 0x1eb   : > { %11215 = vmatprep.mubr.f32.mxu0 %v12939_v47  ;;  %11371 = vmatprep.mubr.f32.mxu1 %v12939_v47 }
 0x1ee   : > { %11216 = vmatmul.mubr.f32.gmra.mrb[46].mxu0 %v12954_v55  ;;  %11372 = vmatmul.mubr.f32.gmra.mrb[46].mxu1 %v12954_v55 }
 0x1ef   : > { %11220 = vmatprep.mubr.f32.mxu0 %v12750_v20  ;;  %11376 = vmatprep.mubr.f32.mxu1 %v12750_v20 }
 0x1f2   : > { %11221 = vmatmul.mubr.f32.vlgmr.msra.gmra.mrb[32].mxu0 %v12763_v26  ;;  %11377 = vmatmul.mubr.f32.vlgmr.msra.gmra.mrb[32].mxu1 %v12763_v26 }
 0x1f3   : > { %11245 = vmatpush3.msra.mxu0 %v13363_v59  ;;  %11401 = vmatpush3.msra.mxu1 %v13365_v14 }
 0x1f4   : > { %11223 = vmatprep.mubr.f32.mxu0 %v14435_v43  ;;  %11379 = vmatprep.mubr.f32.mxu1 %v14435_v43 }
 0x1f5   : > { %11270 = vmatprep.subr.mxu0 %v14436_v56  ;;  %11426 = vmatprep.subr.mxu1 %v14437_v29 }
 0x1f6   : > { %11224 = vmatmul.mubr.f32.gmra.mrb[34].mxu0 %v14438_v16  ;;  %11380 = vmatmul.mubr.f32.gmra.mrb[34].mxu1 %v14438_v16 }
 0x1f7   : > { %11226 = vmatprep.mubr.f32.mxu0 %v14439_v38  ;;  %11382 = vmatprep.mubr.f32.mxu1 %v14439_v38 }
 0x1fa   : > { %11227 = vmatmul.mubr.f32.gmra.mrb[36].mxu0 %v14440_v7  ;;  %11383 = vmatmul.mubr.f32.gmra.mrb[36].mxu1 %v14440_v7 }
 0x1fb   : > { %11229 = vmatprep.mubr.f32.mxu0 %v14441_v44  ;;  %11385 = vmatprep.mubr.f32.mxu1 %v14441_v44 }
 0x1fe   : > { %11230 = vmatmul.mubr.f32.gmra.mrb[38].mxu0 %v14442_v46  ;;  %11386 = vmatmul.mubr.f32.gmra.mrb[38].mxu1 %v14442_v46 }
 0x1ff   : > { %11232 = vmatprep.mubr.f32.mxu0 %v14443_v58  ;;  %11388 = vmatprep.mubr.f32.mxu1 %v14443_v58 }
 0x202   : > { %11233 = vmatmul.mubr.f32.gmra.mrb[40].mxu0 %v14444_v52  ;;  %11389 = vmatmul.mubr.f32.gmra.mrb[40].mxu1 %v14444_v52  ;;  %v14469_v52 = vld [vmem:[#allocation47_spill] sm:$0xff] }
 0x203   : > { %11235 = vmatprep.mubr.f32.mxu0 %v14445_v48  ;;  %11391 = vmatprep.mubr.f32.mxu1 %v14445_v48 }
 0x206   : > { %11236 = vmatmul.mubr.f32.gmra.mrb[42].mxu0 %v14446_v5  ;;  %11392 = vmatmul.mubr.f32.gmra.mrb[42].mxu1 %v14446_v5 }
 0x207   : > { %11238 = vmatprep.mubr.f32.mxu0 %v14447_v17  ;;  %11394 = vmatprep.mubr.f32.mxu1 %v14447_v17 }
 0x20a   : > { %11239 = vmatmul.mubr.f32.gmra.mrb[44].mxu0 %v14448_v49  ;;  %11395 = vmatmul.mubr.f32.gmra.mrb[44].mxu1 %v14448_v49 }
 0x20b   : > { %11241 = vmatprep.mubr.f32.mxu0 %v14449_v33  ;;  %11397 = vmatprep.mubr.f32.mxu1 %v14449_v33 }
 0x20e   : > { %11242 = vmatmul.mubr.f32.gmra.mrb[46].mxu0 %v14450_v40  ;;  %11398 = vmatmul.mubr.f32.gmra.mrb[46].mxu1 %v14450_v40 }
 0x20f   : > { %11246 = vmatprep.mubr.f32.mxu0 %v14451_v35  ;;  %11402 = vmatprep.mubr.f32.mxu1 %v14451_v35 }
 0x212   : > { %11247 = vmatmul.mubr.f32.vlgmr.msra.gmra.mrb[32].mxu0 %v14452_v63  ;;  %11403 = vmatmul.mubr.f32.vlgmr.msra.gmra.mrb[32].mxu1 %v14452_v63  ;;  %v9720_v63 = vld [vmem:[%s12701_s9 + $0x38] sm:$0xff] }
 0x213   : > { %11271 = vmatpush3.msra.mxu0 %v14436_v56  ;;  %11427 = vmatpush3.msra.mxu1 %v14437_v29  ;;  %v14457_v56 = vld [vmem:[#allocation25_spill] sm:$0xff]  ;;  %v14458_v29 = vld [vmem:[#allocation27_spill] sm:$0xff] }
 0x214   : > { %11249 = vmatprep.mubr.f32.mxu0 %v14453_v50  ;;  %11405 = vmatprep.mubr.f32.mxu1 %v14453_v50  ;;  %v14459_v50 = vld [vmem:[#allocation30_spill] sm:$0xff] }
 0x215   : > { %11296 = vmatprep.subr.mxu0 %v13363_v59  ;;  %11452 = vmatprep.subr.mxu1 %v13365_v14 }
 0x216   : > { %11250 = vmatmul.mubr.f32.gmra.mrb[34].mxu0 %v14454_v9  ;;  %11406 = vmatmul.mubr.f32.gmra.mrb[34].mxu1 %v14454_v9  ;;  %v14460_v9 = vld [vmem:[#allocation32_spill] sm:$0xff] }
 0x217   : > { %11252 = vmatprep.mubr.f32.mxu0 %v14455_v24  ;;  %11408 = vmatprep.mubr.f32.mxu1 %v14455_v24  ;;  %v14461_v24 = vld [vmem:[#allocation33_spill] sm:$0xff] }
 0x21a   : > { %11253 = vmatmul.mubr.f32.gmra.mrb[36].mxu0 %v14456_v25  ;;  %11409 = vmatmul.mubr.f32.gmra.mrb[36].mxu1 %v14456_v25  ;;  %v14462_v25 = vld [vmem:[#allocation36_spill] sm:$0xff] }
 0x21b   : > { %11255 = vmatprep.mubr.f32.mxu0 %v14457_v56  ;;  %11411 = vmatprep.mubr.f32.mxu1 %v14457_v56  ;;  %v14463_v56 = vld [vmem:[#allocation39_spill] sm:$0xff] }
 0x21e   : > { %11256 = vmatmul.mubr.f32.gmra.mrb[38].mxu0 %v14458_v29  ;;  %11412 = vmatmul.mubr.f32.gmra.mrb[38].mxu1 %v14458_v29  ;;  %v14464_v29 = vld [vmem:[#allocation42_spill] sm:$0xff] }
 0x21f   : > { %11258 = vmatprep.mubr.f32.mxu0 %v14459_v50  ;;  %11414 = vmatprep.mubr.f32.mxu1 %v14459_v50  ;;  %v14465_v50 = vld [vmem:[#allocation44_spill] sm:$0xff] }
 0x222   : > { %11259 = vmatmul.mubr.f32.gmra.mrb[40].mxu0 %v14460_v9  ;;  %11415 = vmatmul.mubr.f32.gmra.mrb[40].mxu1 %v14460_v9  ;;  %v14466_v9 = vld [vmem:[#allocation46_spill] sm:$0xff] }
 0x223   : > { %11261 = vmatprep.mubr.f32.mxu0 %v14461_v24  ;;  %11417 = vmatprep.mubr.f32.mxu1 %v14461_v24  ;;  %v9719_v24 = vld [vmem:[%s12701_s9 + $0x30] sm:$0xff] }
 0x226   : > { %11262 = vmatmul.mubr.f32.gmra.mrb[42].mxu0 %v14462_v25  ;;  %11418 = vmatmul.mubr.f32.gmra.mrb[42].mxu1 %v14462_v25  ;;  %v13710_v25 = vand.u32 4294901760, %v9719_v24 }
 0x227   : > { %11264 = vmatprep.mubr.f32.mxu0 %v14463_v56  ;;  %11420 = vmatprep.mubr.f32.mxu1 %v14463_v56  ;;  %v13712_v56 = vand.u32 4294901760, %v9720_v63 }
 0x22a   : > { %11265 = vmatmul.mubr.f32.gmra.mrb[44].mxu0 %v14464_v29  ;;  %11421 = vmatmul.mubr.f32.gmra.mrb[44].mxu1 %v14464_v29 }
 0x22b   : > { %11267 = vmatprep.mubr.f32.mxu0 %v14465_v50  ;;  %11423 = vmatprep.mubr.f32.mxu1 %v14465_v50 }
 0x22e   : > { %11268 = vmatmul.mubr.f32.gmra.mrb[46].mxu0 %v14466_v9  ;;  %11424 = vmatmul.mubr.f32.gmra.mrb[46].mxu1 %v14466_v9 }
 0x22f   : > { %11272 = vmatprep.mubr.f32.mxu0 %v12728_v10  ;;  %11428 = vmatprep.mubr.f32.mxu1 %v12728_v10 }
 0x232   : > { %11273 = vmatmul.mubr.f32.vlgmr.msra.gmra.mrb[32].mxu0 %v12743_v18  ;;  %11429 = vmatmul.mubr.f32.vlgmr.msra.gmra.mrb[32].mxu1 %v12743_v18 }
 0x233   : > { %11297 = vmatpush3.msra.mxu0 %v13363_v59  ;;  %11453 = vmatpush3.msra.mxu1 %v13365_v14  ;;  %v13739_v59 = vsub.f32 %v9719_v24, %v13710_v25  ;;  %v13742_v14 = vsub.f32 %v9720_v63, %v13712_v56 }
 0x234   : > { %11275 = vmatprep.mubr.f32.mxu0 %v12745_v19  ;;  %11431 = vmatprep.mubr.f32.mxu1 %v12745_v19 }
 0x235   : > { %11478 = vmatprep.subr.mxu0 %v13710_v25  ;;  %11634 = vmatprep.subr.mxu1 %v13712_v56  ;;  %v13749_v9 = vand.u32 4294901760, %v13739_v59  ;;  %v13752_v50 = vand.u32 4294901760, %v13742_v14 }
 0x236   : > { %11276 = vmatmul.mubr.f32.gmra.mrb[34].mxu0 %v12752_v21  ;;  %11432 = vmatmul.mubr.f32.gmra.mrb[34].mxu1 %v12752_v21 }
 0x237   : > { %11278 = vmatprep.mubr.f32.mxu0 %v12774_v30  ;;  %11434 = vmatprep.mubr.f32.mxu1 %v12774_v30  ;;  %14467 = vst [vmem:[#allocation19_spill] sm:$0xff] %v13749_v9  ;;  %14468 = vst [vmem:[#allocation20_spill] sm:$0xff] %v13752_v50  ;;  %v7518_v63 = vsub.f32 %v13739_v59, %v13749_v9  ;;  %v8667_v24 = vsub.f32 %v13742_v14, %v13752_v50 }
 0x239   : > { %v13766_v29 = vand.u32 4294901760, %v7518_v63  ;;  %v13768_v35 = vand.u32 4294901760, %v8667_v24 }
 0x23a   : > { %11279 = vmatmul.mubr.f32.gmra.mrb[36].mxu0 %v12776_v31  ;;  %11435 = vmatmul.mubr.f32.gmra.mrb[36].mxu1 %v12776_v31 }
 0x23b   : > { %11281 = vmatprep.mubr.f32.mxu0 %v12832_v60  ;;  %11437 = vmatprep.mubr.f32.mxu1 %v12832_v60 }
 0x23e   : > { %11282 = vmatmul.mubr.f32.gmra.mrb[38].mxu0 %v12837_v62  ;;  %11438 = vmatmul.mubr.f32.gmra.mrb[38].mxu1 %v12837_v62 }
 0x23f   : > { %11284 = vmatprep.mubr.f32.mxu0 %v12850_v8  ;;  %11440 = vmatprep.mubr.f32.mxu1 %v12850_v8 }
 0x242   : > { %11285 = vmatmul.mubr.f32.gmra.mrb[40].mxu0 %v12857_v11  ;;  %11441 = vmatmul.mubr.f32.gmra.mrb[40].mxu1 %v12857_v11 }
 0x243   : > { %11287 = vmatprep.mubr.f32.mxu0 %v12859_v12  ;;  %11443 = vmatprep.mubr.f32.mxu1 %v12859_v12 }
 0x246   : > { %11288 = vmatmul.mubr.f32.gmra.mrb[42].mxu0 %v12869_v23  ;;  %11444 = vmatmul.mubr.f32.gmra.mrb[42].mxu1 %v12869_v23 }
 0x247   : > { %11290 = vmatprep.mubr.f32.mxu0 %v12885_v41  ;;  %11446 = vmatprep.mubr.f32.mxu1 %v12885_v41 }
 0x24a   : > { %11291 = vmatmul.mubr.f32.gmra.mrb[44].mxu0 %v12917_v61  ;;  %11447 = vmatmul.mubr.f32.gmra.mrb[44].mxu1 %v12917_v61 }
 0x24b   : > { %11293 = vmatprep.mubr.f32.mxu0 %v12939_v47  ;;  %11449 = vmatprep.mubr.f32.mxu1 %v12939_v47 }
 0x24e   : > { %11294 = vmatmul.mubr.f32.gmra.mrb[46].mxu0 %v12954_v55  ;;  %11450 = vmatmul.mubr.f32.gmra.mrb[46].mxu1 %v12954_v55 }
 0x24f   : > { %11298 = vmatprep.mubr.f32.mxu0 %v12728_v10  ;;  %11454 = vmatprep.mubr.f32.mxu1 %v12728_v10 }
 0x252   : > { %11299 = vmatmul.mubr.f32.vlgmr.msra.gmra.mrb[32].mxu0 %v12743_v18  ;;  %11455 = vmatmul.mubr.f32.vlgmr.msra.gmra.mrb[32].mxu1 %v12743_v18 }
 0x253   : > { %11479 = vmatpush3.msra.mxu0 %v13710_v25  ;;  %11635 = vmatpush3.msra.mxu1 %v13712_v56 }
 0x254   : > { %11301 = vmatprep.mubr.f32.mxu0 %v12745_v19  ;;  %11457 = vmatprep.mubr.f32.mxu1 %v12745_v19 }
 0x255   : > { %11504 = vmatprep.subr.mxu0 %v13766_v29  ;;  %11660 = vmatprep.subr.mxu1 %v13768_v35 }
 0x256   : > { %11302 = vmatmul.mubr.f32.gmra.mrb[34].mxu0 %v12752_v21  ;;  %11458 = vmatmul.mubr.f32.gmra.mrb[34].mxu1 %v12752_v21 }
 0x257   : > { %11304 = vmatprep.mubr.f32.mxu0 %v12774_v30  ;;  %11460 = vmatprep.mubr.f32.mxu1 %v12774_v30 }
 0x25a   : > { %11305 = vmatmul.mubr.f32.gmra.mrb[36].mxu0 %v12776_v31  ;;  %11461 = vmatmul.mubr.f32.gmra.mrb[36].mxu1 %v12776_v31 }
 0x25b   : > { %11307 = vmatprep.mubr.f32.mxu0 %v12832_v60  ;;  %11463 = vmatprep.mubr.f32.mxu1 %v12832_v60 }
 0x25e   : > { %11308 = vmatmul.mubr.f32.gmra.mrb[38].mxu0 %v12837_v62  ;;  %11464 = vmatmul.mubr.f32.gmra.mrb[38].mxu1 %v12837_v62 }
 0x25f   : > { %11310 = vmatprep.mubr.f32.mxu0 %v12850_v8  ;;  %11466 = vmatprep.mubr.f32.mxu1 %v12850_v8 }
 0x262   : > { %11311 = vmatmul.mubr.f32.gmra.mrb[40].mxu0 %v12857_v11  ;;  %11467 = vmatmul.mubr.f32.gmra.mrb[40].mxu1 %v12857_v11 }
 0x263   : > { %11313 = vmatprep.mubr.f32.mxu0 %v12859_v12  ;;  %11469 = vmatprep.mubr.f32.mxu1 %v12859_v12 }
 0x265   : > { %v10988_v63 = vpop.f32.mrb[16].mxu0  ;;  %v11144_v24 = vpop.f32.mrb[16].mxu1 }
 0x266   : > { %v3689_v40 = vpop.f32.mrb[17].mxu0  ;;  %v4838_v33 = vpop.f32.mrb[17].mxu1  ;;  %11314 = vmatmul.mubr.f32.gmra.mrb[42].mxu0 %v12869_v23  ;;  %11470 = vmatmul.mubr.f32.gmra.mrb[42].mxu1 %v12869_v23  ;;  %vm3784_vm1 = vcmp.lt.f32.partialorder %v10988_v63, 0.0  ;;  %vm4933_vm2 = vcmp.lt.f32.partialorder %v11144_v24, 0.0  ;;  %v14470_v24 = vld [vmem:[#allocation41_spill] sm:$0xff] }
 0x267   : > { %11316 = vmatprep.mubr.f32.mxu0 %v12885_v41  ;;  %11472 = vmatprep.mubr.f32.mxu1 %v12885_v41  ;;  %vm3783_vm3 = vcmp.lt.f32.partialorder %v3689_v40, 0.0  ;;  %vm4932_vm4 = vcmp.lt.f32.partialorder %v4838_v33, 0.0  ;;  %v13803_v58 = vsel %vm3784_vm1, %v14469_v52, inf  ;;  %v13806_v63 = vsel %vm4933_vm2, %v14469_v52, inf }
 0x268   : > { %v13809_v46 = vsel %vm3783_vm3, %v14470_v24, inf  ;;  %v13812_v33 = vsel %vm4932_vm4, %v14470_v24, inf  ;;  %v14471_v24 = vld [vmem:[#allocation15_spill] sm:$0xff] }
 0x269   : > { %v10991_v49 = vpop.f32.mrb[18].mxu0  ;;  %v11147_v17 = vpop.f32.mrb[18].mxu1 }
 0x26a   : > { %v3701_v5 = vpop.f32.mrb[19].mxu0  ;;  %v4850_v48 = vpop.f32.mrb[19].mxu1  ;;  %11317 = vmatmul.mubr.f32.gmra.mrb[44].mxu0 %v12917_v61  ;;  %11473 = vmatmul.mubr.f32.gmra.mrb[44].mxu1 %v12917_v61  ;;  %vm3786_vm5 = vcmp.lt.f32.partialorder %v10991_v49, 0.0  ;;  %vm4935_vm6 = vcmp.lt.f32.partialorder %v11147_v17, 0.0 }
 0x26b   : > { %11319 = vmatprep.mubr.f32.mxu0 %v12939_v47  ;;  %11475 = vmatprep.mubr.f32.mxu1 %v12939_v47  ;;  %vm3785_vm7 = vcmp.lt.f32.partialorder %v3701_v5, 0.0  ;;  %vm4934_vm8 = vcmp.lt.f32.partialorder %v4850_v48, 0.0  ;;  %v13826_v26 = vsel %vm3786_vm5, %v13437_v51, inf  ;;  %v14474_v5 = vld [vmem:[#allocation51_spill] sm:$0xff] }
 0x26d   : > { %v10994_v40 = vpop.f32.mrb[20].mxu0  ;;  %v11150_v44 = vpop.f32.mrb[20].mxu1 }
 0x26e   : > { %vm3788_vm9 = vcmp.lt.f32.partialorder %v10994_v40, 0.0  ;;  %vm4937_vm10 = vcmp.lt.f32.partialorder %v11150_v44, 0.0  ;;  %v3713_v7 = vpop.f32.mrb[21].mxu0  ;;  %v4862_v38 = vpop.f32.mrb[21].mxu1  ;;  %11320 = vmatmul.mubr.f32.gmra.mrb[46].mxu0 %v12954_v55  ;;  %11476 = vmatmul.mubr.f32.gmra.mrb[46].mxu1 %v12954_v55  ;;  %v14472_v40 = vld [vmem:[#allocation49_spill] sm:$0xff] }
 0x26f   : > { %v3804_v52 = vsel %vm3788_vm9, %v13447_v15, inf  ;;  %v4953_v16 = vsel %vm4937_vm10, %v13447_v15, inf  ;;  %vm3787_vm11 = vcmp.lt.f32.partialorder %v3713_v7, 0.0  ;;  %vm4936_vm12 = vcmp.lt.f32.partialorder %v4862_v38, 0.0  ;;  %11480 = vmatprep.mubr.f32.mxu0 %v14471_v24  ;;  %11636 = vmatprep.mubr.f32.mxu1 %v14471_v24 }
 0x270   : > { %v3816_v50 = vmin.f32 %v13803_v58, %v3804_v52  ;;  %v4965_v44 = vmin.f32 %v13806_v63, %v4953_v16  ;;  %v3803_v9 = vsel %vm3787_vm11, %v14472_v40, inf  ;;  %v4952_v43 = vsel %vm4936_vm12, %v14472_v40, inf }
 0x271   : > { %v13830_v7 = vsel %vm4935_vm6, %v13437_v51, inf  ;;  %v3815_v38 = vmin.f32 %v13809_v46, %v3803_v9  ;;  %v4964_v24 = vmin.f32 %v13812_v33, %v4952_v43  ;;  %v10997_v15 = vpop.f32.mrb[22].mxu0  ;;  %v11153_v58 = vpop.f32.mrb[22].mxu1  ;;  %v13836_v16 = vsel %vm3785_vm7, %v13419_v4, inf  ;;  %v14473_v46 = vld [vmem:[#allocation50_spill] sm:$0xff] }
 0x272   : > { %v13840_v52 = vsel %vm4934_vm8, %v13419_v4, inf  ;;  %vm3790_vm13 = vcmp.lt.f32.partialorder %v10997_v15, 0.0  ;;  %vm4939_vm14 = vcmp.lt.f32.partialorder %v11153_v58, 0.0  ;;  %v3725_v49 = vpop.f32.mrb[23].mxu0  ;;  %v4874_v17 = vpop.f32.mrb[23].mxu1  ;;  %11481 = vmatmul.mubr.f32.vlgmr.msra.gmra.mrb[48].mxu0 %v14411_v3  ;;  %11637 = vmatmul.mubr.f32.vlgmr.msra.gmra.mrb[48].mxu1 %v14411_v3 }
 0x273   : > { %v3806_v43 = vsel %vm3790_vm13, %v14473_v46, inf  ;;  %v4955_v9 = vsel %vm4939_vm14, %v14473_v46, inf  ;;  %vm3789_vm15 = vcmp.lt.f32.partialorder %v3725_v49, 0.0  ;;  %vm4938_vm0 = vcmp.lt.f32.partialorder %v4874_v17, 0.0  ;;  %11505 = vmatpush3.msra.mxu0 %v13766_v29  ;;  %11661 = vmatpush3.msra.mxu1 %v13768_v35 }
 0x274   : > { %v3818_v48 = vmin.f32 %v13826_v26, %v3806_v43  ;;  %v4967_v15 = vmin.f32 %v13830_v7, %v4955_v9  ;;  %v3805_v63 = vsel %vm3789_vm15, %v14474_v5, inf  ;;  %v4954_v33 = vsel %vm4938_vm0, %v14474_v5, inf  ;;  %11483 = vmatprep.mubr.f32.mxu0 %v14433_v28  ;;  %11639 = vmatprep.mubr.f32.mxu1 %v14433_v28 }
 0x275   : > { %v3817_v3 = vmin.f32 %v13836_v16, %v3805_v63  ;;  %v4966_v58 = vmin.f32 %v13840_v52, %v4954_v33  ;;  %v11000_v49 = vpop.f32.mrb[24].mxu0  ;;  %v11156_v29 = vpop.f32.mrb[24].mxu1  ;;  %11530 = vmatprep.subr.mxu0 %v13739_v59  ;;  %11686 = vmatprep.subr.mxu1 %v13742_v14  ;;  %v14475_v16 = vld [vmem:[#allocation21_spill] sm:$0xff] }
 0x276   : > { %vm3792_vm1 = vcmp.lt.f32.partialorder %v11000_v49, 0.0  ;;  %vm4941_vm2 = vcmp.lt.f32.partialorder %v11156_v29, 0.0  ;;  %v3737_v26 = vpop.f32.mrb[25].mxu0  ;;  %v4886_v35 = vpop.f32.mrb[25].mxu1  ;;  %11484 = vmatmul.mubr.f32.gmra.mrb[50].mxu0 %v14434_v37  ;;  %11640 = vmatmul.mubr.f32.gmra.mrb[50].mxu1 %v14434_v37 }
 0x277   : > { %v3808_v28 = vsel %vm3792_vm1, %v13467_v45, inf  ;;  %v4957_v7 = vsel %vm4941_vm2, %v13467_v45, inf  ;;  %vm3791_vm3 = vcmp.lt.f32.partialorder %v3737_v26, 0.0  ;;  %vm4940_vm4 = vcmp.lt.f32.partialorder %v4886_v35, 0.0  ;;  %11486 = vmatprep.mubr.f32.mxu0 %v14475_v16  ;;  %11642 = vmatprep.mubr.f32.mxu1 %v14475_v16  ;;  %v14476_v26 = vld [vmem:[#allocation22_spill] sm:$0xff] }
 0x278   : > { %v3820_v52 = vmin.f32 %v3816_v50, %v3808_v28  ;;  %v4969_v17 = vmin.f32 %v4965_v44, %v4957_v7  ;;  %v3807_v43 = vsel %vm3791_vm3, %v13469_v32, inf  ;;  %v4956_v9 = vsel %vm4940_vm4, %v13469_v32, inf  ;;  %v14477_v44 = vld [vmem:[#allocation35_spill] sm:$0xff] }
 0x279   : > { %v3819_v63 = vmin.f32 %v3815_v38, %v3807_v43  ;;  %v4968_v33 = vmin.f32 %v4964_v24, %v4956_v9  ;;  %v11003_v49 = vpop.f32.mrb[26].mxu0  ;;  %v11159_v37 = vpop.f32.mrb[26].mxu1 }
 0x27a   : > { %vm3794_vm5 = vcmp.lt.f32.partialorder %v11003_v49, 0.0  ;;  %vm4943_vm6 = vcmp.lt.f32.partialorder %v11159_v37, 0.0  ;;  %v3749_v29 = vpop.f32.mrb[27].mxu0  ;;  %v4898_v45 = vpop.f32.mrb[27].mxu1  ;;  %11487 = vmatmul.mubr.f32.gmra.mrb[52].mxu0 %v14476_v26  ;;  %11643 = vmatmul.mubr.f32.gmra.mrb[52].mxu1 %v14476_v26 }
 0x27b   : > { %v3810_v35 = vsel %vm3794_vm5, %v13497_v13, inf  ;;  %v4959_v50 = vsel %vm4943_vm6, %v13497_v13, inf  ;;  %vm3793_vm7 = vcmp.lt.f32.partialorder %v3749_v29, 0.0  ;;  %vm4942_vm8 = vcmp.lt.f32.partialorder %v4898_v45, 0.0  ;;  %11489 = vmatprep.mubr.f32.mxu0 %v14477_v44  ;;  %11645 = vmatprep.mubr.f32.mxu1 %v14477_v44 }
 0x27c   : > { %v3822_v38 = vmin.f32 %v3818_v48, %v3810_v35  ;;  %v4971_v24 = vmin.f32 %v4967_v15, %v4959_v50  ;;  %v3809_v28 = vsel %vm3793_vm7, %v13499_v27, inf  ;;  %v4958_v7 = vsel %vm4942_vm8, %v13499_v27, inf  ;;  %v14478_v15 = vld [vmem:[#allocation38_spill] sm:$0xff] }
 0x27d   : > { %v3821_v16 = vmin.f32 %v3817_v3, %v3809_v28  ;;  %v4970_v43 = vmin.f32 %v4966_v58, %v4958_v7  ;;  %v11006_v9 = vpop.f32.mrb[28].mxu0  ;;  %v11162_v49 = vpop.f32.mrb[28].mxu1 }
 0x27e   : > { %vm3796_vm9 = vcmp.lt.f32.partialorder %v11006_v9, 0.0  ;;  %vm4945_vm10 = vcmp.lt.f32.partialorder %v11162_v49, 0.0  ;;  %v3761_v37 = vpop.f32.mrb[29].mxu0  ;;  %v4910_v26 = vpop.f32.mrb[29].mxu1  ;;  %11490 = vmatmul.mubr.f32.gmra.mrb[54].mxu0 %v14417_v1  ;;  %11646 = vmatmul.mubr.f32.gmra.mrb[54].mxu1 %v14417_v1 }
 0x27f   : > { %v3812_v45 = vsel %vm3796_vm9, %v13547_v34, inf  ;;  %v4961_v48 = vsel %vm4945_vm10, %v13547_v34, inf  ;;  %vm3795_vm11 = vcmp.lt.f32.partialorder %v3761_v37, 0.0  ;;  %vm4944_vm12 = vcmp.lt.f32.partialorder %v4910_v26, 0.0  ;;  %11492 = vmatprep.mubr.f32.mxu0 %v14478_v15  ;;  %11648 = vmatprep.mubr.f32.mxu1 %v14478_v15 }
 0x280   : > { %v3824_v3 = vmin.f32 %v3820_v52, %v3812_v45  ;;  %v4973_v58 = vmin.f32 %v4969_v17, %v4961_v48  ;;  %v3811_v29 = vsel %vm3795_vm11, %v13549_v36, inf  ;;  %v4960_v35 = vsel %vm4944_vm12, %v13549_v36, inf }
 0x281   : > { %v3823_v50 = vmin.f32 %v3819_v63, %v3811_v29  ;;  %v4972_v44 = vmin.f32 %v4968_v33, %v4960_v35  ;;  %v11009_v28 = vpop.f32.mrb[30].mxu0  ;;  %v11165_v1 = vpop.f32.mrb[30].mxu1  ;;  %v3836_v35 = vld [vmem:[%s12713_s23 + $0x2] sm:$0x1] }
 0x282   : > { %vm3798_vm13 = vcmp.lt.f32.partialorder %v11009_v28, 0.0  ;;  %vm4947_vm14 = vcmp.lt.f32.partialorder %v11165_v1, 0.0  ;;  %v3773_v7 = vpop.f32.mrb[31].mxu0  ;;  %v4922_v9 = vpop.f32.mrb[31].mxu1  ;;  %11493 = vmatmul.mubr.f32.gmra.mrb[56].mxu0 %v14419_v0  ;;  %11649 = vmatmul.mubr.f32.gmra.mrb[56].mxu1 %v14419_v0  ;;  %v14479_v1 = vld [vmem:[#allocation6_spill] sm:$0xff] }
 0x283   : > { %v3827_v49 = vmin.f32 %v3823_v50, %v3824_v3  ;;  %v4976_v37 = vmin.f32 %v4972_v44, %v4973_v58  ;;  %v3814_v52 = vsel %vm3798_vm13, %v13571_v22, inf  ;;  %v4963_v17 = vsel %vm4947_vm14, %v13571_v22, inf  ;;  %11495 = vmatprep.mubr.f32.mxu0 %v12958_v57  ;;  %11651 = vmatprep.mubr.f32.mxu1 %v12958_v57  ;;  %v4985_v50 = vld [vmem:[%s12713_s23 + $0x3] sm:$0x1] }
 0x284   : > { %v3826_v63 = vmin.f32 %v3822_v38, %v3814_v52  ;;  %v4975_v33 = vmin.f32 %v4971_v24, %v4963_v17  ;;  %vm3797_vm15 = vcmp.lt.f32.partialorder %v3773_v7, 0.0  ;;  %vm4946_vm0 = vcmp.lt.f32.partialorder %v4922_v9, 0.0  ;;  %v14480_v7 = vld [vmem:[#allocation7_spill] sm:$0xff]  ;;  %v14485_v52 = vld [vmem:[#allocation14_spill] sm:$0xff] }
 0x285   : > { %v3813_v26 = vsel %vm3797_vm15, %v13573_v39, inf  ;;  %v4962_v45 = vsel %vm4946_vm0, %v13573_v39, inf  ;;  %v14481_v9 = vld [vmem:[#allocation19_spill] sm:$0xff] }
 0x286   : > { %v3825_v48 = vmin.f32 %v3821_v16, %v3813_v26  ;;  %v4974_v0 = vmin.f32 %v4970_v43, %v4962_v45  ;;  %11496 = vmatmul.mubr.f32.gmra.mrb[58].mxu0 %v12970_v42  ;;  %11652 = vmatmul.mubr.f32.gmra.mrb[58].mxu1 %v12970_v42  ;;  %v14486_v17 = vld [vmem:[#allocation23_spill] sm:$0xff]  ;;  %v14489_v26 = vld [vmem:[#allocation28_spill] sm:$0xff]  ;;  %v14490_v45 = vld [vmem:[#allocation29_spill] sm:$0xff] }
 0x287   : > { %11498 = vmatprep.mubr.f32.mxu0 %v12979_v54  ;;  %11654 = vmatprep.mubr.f32.mxu1 %v12979_v54 }
 0x288   : > { %v3828_v15 = vmin.f32 %v3825_v48, %v3826_v63  ;;  %v4977_v57 = vmin.f32 %v4974_v0, %v4975_v33  ;;  %v14487_v63 = vld [vmem:[#allocation24_spill] sm:$0xff]  ;;  %v14488_v33 = vld [vmem:[#allocation26_spill] sm:$0xff]  ;;  %v14491_v48 = vld [vmem:[#allocation31_spill] sm:$0xff] }
 0x289   : > { %v14492_v0 = vld [vmem:[#allocation34_spill] sm:$0xff] }
 0x28a   : > { %v3829_v38 = vmin.f32 %v3827_v49, %v3828_v15  ;;  %v4978_v24 = vmin.f32 %v4976_v37, %v4977_v57  ;;  %11499 = vmatmul.mubr.f32.gmra.mrb[60].mxu0 %v12985_v6  ;;  %11655 = vmatmul.mubr.f32.gmra.mrb[60].mxu1 %v12985_v6  ;;  %v14482_v49 = vld [vmem:[#allocation20_spill] sm:$0xff]  ;;  %v14483_v37 = vld [vmem:[#allocation9_spill] sm:$0xff]  ;;  %v14494_v57 = vld [vmem:[#allocation43_spill] sm:$0xff] }
 0x28b   : > { %11501 = vmatprep.mubr.f32.mxu0 %v12991_v53  ;;  %11657 = vmatprep.mubr.f32.mxu1 %v12991_v53  ;;  %v14493_v15 = vld [vmem:[#allocation40_spill] sm:$0xff] }
 0x28c   : > { %v3830_v16 = vrot.slane %v3829_v38, 4  ;;  %v4979_v43 = vrot.slane %v4978_v24, 4 }
 0x28e   : > { %v3831_v3 = vmin.f32 %v3829_v38, %v3830_v16  ;;  %v4980_v42 = vmin.f32 %v4978_v24, %v4979_v43  ;;  %11502 = vmatmul.mubr.f32.gmra.mrb[62].mxu0 %v12995_v2  ;;  %11658 = vmatmul.mubr.f32.gmra.mrb[62].mxu1 %v12995_v2  ;;  %v14495_v38 = vld [vmem:[#allocation45_spill] sm:$0xff]  ;;  %v14496_v24 = vld [vmem:[#allocation8_spill] sm:$0xff]  ;;  %v14497_v16 = vld [vmem:[#allocation10_spill] sm:$0xff] }
 0x28f   : > { %11506 = vmatprep.mubr.f32.mxu0 %v12728_v10  ;;  %11662 = vmatprep.mubr.f32.mxu1 %v12728_v10  ;;  %v14498_v43 = vld [vmem:[#allocation11_spill] sm:$0xff] }
 0x290   : > { %v3832_v54 = vrot.slane %v3831_v3, 2  ;;  %v4981_v6 = vrot.slane %v4980_v42, 2 }
 0x292   : > { %v3833_v58 = vmin.f32 %v3831_v3, %v3832_v54  ;;  %v4982_v29 = vmin.f32 %v4980_v42, %v4981_v6  ;;  %11507 = vmatmul.mubr.f32.vlgmr.msra.gmra.mrb[48].mxu0 %v12743_v18  ;;  %11663 = vmatmul.mubr.f32.vlgmr.msra.gmra.mrb[48].mxu1 %v12743_v18  ;;  %v14499_v3 = vld [vmem:[#allocation12_spill] sm:$0xff]  ;;  %v14501_v54 = vld [vmem:[#allocation17_spill] sm:$0xff] }
 0x293   : > { %11531 = vmatpush3.msra.mxu0 %v13739_v59  ;;  %11687 = vmatpush3.msra.mxu1 %v13742_v14  ;;  %v14500_v42 = vld [vmem:[#allocation16_spill] sm:$0xff]  ;;  %v14502_v6 = vld [vmem:[#allocation25_spill] sm:$0xff] }
 0x294   : > { %v3834_v53 = vrot.slane %v3833_v58, 1  ;;  %v4983_v2 = vrot.slane %v4982_v29, 1  ;;  %11509 = vmatprep.mubr.f32.mxu0 %v12745_v19  ;;  %11665 = vmatprep.mubr.f32.mxu1 %v12745_v19 }
 0x295   : > { %11556 = vmatprep.subr.mxu0 %v13710_v25  ;;  %11712 = vmatprep.subr.mxu1 %v13712_v56 }
 0x296   : > { %v3835_v44 = vmin.f32 %v3833_v58, %v3834_v53  ;;  %v4984_v28 = vmin.f32 %v4982_v29, %v4983_v2  ;;  %11510 = vmatmul.mubr.f32.gmra.mrb[50].mxu0 %v12752_v21  ;;  %11666 = vmatmul.mubr.f32.gmra.mrb[50].mxu1 %v12752_v21  ;;  %v14503_v58 = vld [vmem:[#allocation27_spill] sm:$0xff]  ;;  %v14504_v29 = vld [vmem:[#allocation30_spill] sm:$0xff]  ;;  %v14505_v53 = vld [vmem:[#allocation32_spill] sm:$0xff] }
 0x297   : > { %11512 = vmatprep.mubr.f32.mxu0 %v12774_v30  ;;  %11668 = vmatprep.mubr.f32.mxu1 %v12774_v30  ;;  %v14506_v2 = vld [vmem:[#allocation33_spill] sm:$0xff] }
 0x298   : > { %v3837_v59 = vmin.f32 %v3836_v35, %v3835_v44  ;;  %v4986_v14 = vmin.f32 %v4985_v50, %v4984_v28  ;;  %v14507_v35 = vld [vmem:[#allocation36_spill] sm:$0xff]  ;;  %v14508_v50 = vld [vmem:[#allocation39_spill] sm:$0xff]  ;;  %v14509_v44 = vld [vmem:[#allocation42_spill] sm:$0xff] }
 0x299   : > { %v14510_v28 = vld [vmem:[#allocation44_spill] sm:$0xff] }
 0x29a   : > { %3838 = vst [vmem:[%s12713_s23 + $0x2] sm:$0x1] %v3837_v59  ;;  %4987 = vst [vmem:[%s12713_s23 + $0x3] sm:$0x1] %v4986_v14  ;;  %11513 = vmatmul.mubr.f32.gmra.mrb[52].mxu0 %v12776_v31  ;;  %11669 = vmatmul.mubr.f32.gmra.mrb[52].mxu1 %v12776_v31  ;;  %v14511_v59 = vld [vmem:[#allocation46_spill] sm:$0xff] }
 0x29b   : > { %11515 = vmatprep.mubr.f32.mxu0 %v12832_v60  ;;  %11671 = vmatprep.mubr.f32.mxu1 %v12832_v60 }
 0x29e   : > { %11516 = vmatmul.mubr.f32.gmra.mrb[54].mxu0 %v12837_v62  ;;  %11672 = vmatmul.mubr.f32.gmra.mrb[54].mxu1 %v12837_v62 }
 0x29f   : > { %11518 = vmatprep.mubr.f32.mxu0 %v12850_v8  ;;  %11674 = vmatprep.mubr.f32.mxu1 %v12850_v8 }
 0x2a2   : > { %11519 = vmatmul.mubr.f32.gmra.mrb[56].mxu0 %v12857_v11  ;;  %11675 = vmatmul.mubr.f32.gmra.mrb[56].mxu1 %v12857_v11 }
 0x2a3   : > { %11521 = vmatprep.mubr.f32.mxu0 %v12859_v12  ;;  %11677 = vmatprep.mubr.f32.mxu1 %v12859_v12 }
 0x2a6   : > { %11522 = vmatmul.mubr.f32.gmra.mrb[58].mxu0 %v12869_v23  ;;  %11678 = vmatmul.mubr.f32.gmra.mrb[58].mxu1 %v12869_v23 }
 0x2a7   : > { %11524 = vmatprep.mubr.f32.mxu0 %v12885_v41  ;;  %11680 = vmatprep.mubr.f32.mxu1 %v12885_v41 }
 0x2aa   : > { %11525 = vmatmul.mubr.f32.gmra.mrb[60].mxu0 %v12917_v61  ;;  %11681 = vmatmul.mubr.f32.gmra.mrb[60].mxu1 %v12917_v61 }
 0x2ab   : > { %11527 = vmatprep.mubr.f32.mxu0 %v12939_v47  ;;  %11683 = vmatprep.mubr.f32.mxu1 %v12939_v47 }
 0x2ae   : > { %11528 = vmatmul.mubr.f32.gmra.mrb[62].mxu0 %v12954_v55  ;;  %11684 = vmatmul.mubr.f32.gmra.mrb[62].mxu1 %v12954_v55 }
 0x2af   : > { %11532 = vmatprep.mubr.f32.mxu0 %v12750_v20  ;;  %11688 = vmatprep.mubr.f32.mxu1 %v12750_v20  ;;  %v14484_v20 = vld [vmem:[#allocation13_spill] sm:$0xff] }
 0x2b2   : > { %11533 = vmatmul.mubr.f32.vlgmr.msra.gmra.mrb[48].mxu0 %v14479_v1  ;;  %11689 = vmatmul.mubr.f32.vlgmr.msra.gmra.mrb[48].mxu1 %v14479_v1 }
 0x2b3   : > { %11557 = vmatpush3.msra.mxu0 %v13710_v25  ;;  %11713 = vmatpush3.msra.mxu1 %v13712_v56 }
 0x2b4   : > { %11535 = vmatprep.mubr.f32.mxu0 %v14480_v7  ;;  %11691 = vmatprep.mubr.f32.mxu1 %v14480_v7 }
 0x2b5   : > { %11582 = vmatprep.subr.mxu0 %v14481_v9  ;;  %11738 = vmatprep.subr.mxu1 %v14482_v49 }
 0x2b6   : > { %11536 = vmatmul.mubr.f32.gmra.mrb[50].mxu0 %v14483_v37  ;;  %11692 = vmatmul.mubr.f32.gmra.mrb[50].mxu1 %v14483_v37 }
 0x2b7   : > { %11538 = vmatprep.mubr.f32.mxu0 %v14484_v20  ;;  %11694 = vmatprep.mubr.f32.mxu1 %v14484_v20 }
 0x2ba   : > { %11539 = vmatmul.mubr.f32.gmra.mrb[52].mxu0 %v14485_v52  ;;  %11695 = vmatmul.mubr.f32.gmra.mrb[52].mxu1 %v14485_v52 }
 0x2bb   : > { %11541 = vmatprep.mubr.f32.mxu0 %v14486_v17  ;;  %11697 = vmatprep.mubr.f32.mxu1 %v14486_v17 }
 0x2be   : > { %11542 = vmatmul.mubr.f32.gmra.mrb[54].mxu0 %v14487_v63  ;;  %11698 = vmatmul.mubr.f32.gmra.mrb[54].mxu1 %v14487_v63 }
 0x2bf   : > { %11544 = vmatprep.mubr.f32.mxu0 %v14488_v33  ;;  %11700 = vmatprep.mubr.f32.mxu1 %v14488_v33 }
 0x2c2   : > { %11545 = vmatmul.mubr.f32.gmra.mrb[56].mxu0 %v14489_v26  ;;  %11701 = vmatmul.mubr.f32.gmra.mrb[56].mxu1 %v14489_v26 }
 0x2c3   : > { %11547 = vmatprep.mubr.f32.mxu0 %v14490_v45  ;;  %11703 = vmatprep.mubr.f32.mxu1 %v14490_v45 }
 0x2c6   : > { %11548 = vmatmul.mubr.f32.gmra.mrb[58].mxu0 %v14491_v48  ;;  %11704 = vmatmul.mubr.f32.gmra.mrb[58].mxu1 %v14491_v48 }
 0x2c7   : > { %11550 = vmatprep.mubr.f32.mxu0 %v14492_v0  ;;  %11706 = vmatprep.mubr.f32.mxu1 %v14492_v0 }
 0x2ca   : > { %11551 = vmatmul.mubr.f32.gmra.mrb[60].mxu0 %v14493_v15  ;;  %11707 = vmatmul.mubr.f32.gmra.mrb[60].mxu1 %v14493_v15 }
 0x2cb   : > { %11553 = vmatprep.mubr.f32.mxu0 %v14494_v57  ;;  %11709 = vmatprep.mubr.f32.mxu1 %v14494_v57 }
 0x2ce   : > { %11554 = vmatmul.mubr.f32.gmra.mrb[62].mxu0 %v14495_v38  ;;  %11710 = vmatmul.mubr.f32.gmra.mrb[62].mxu1 %v14495_v38 }
 0x2cf   : > { %11558 = vmatprep.mubr.f32.mxu0 %v14496_v24  ;;  %11714 = vmatprep.mubr.f32.mxu1 %v14496_v24 }
 0x2d2   : > { %11559 = vmatmul.mubr.f32.vlgmr.msra.gmra.mrb[48].mxu0 %v14497_v16  ;;  %11715 = vmatmul.mubr.f32.vlgmr.msra.gmra.mrb[48].mxu1 %v14497_v16 }
 0x2d3   : > { %11583 = vmatpush3.msra.mxu0 %v14481_v9  ;;  %11739 = vmatpush3.msra.mxu1 %v14482_v49 }
 0x2d4   : > { %11561 = vmatprep.mubr.f32.mxu0 %v14498_v43  ;;  %11717 = vmatprep.mubr.f32.mxu1 %v14498_v43 }
 0x2d5   : > { %11608 = vmatprep.subr.mxu0 %v13710_v25  ;;  %11764 = vmatprep.subr.mxu1 %v13712_v56 }
 0x2d6   : > { %11562 = vmatmul.mubr.f32.gmra.mrb[50].mxu0 %v14499_v3  ;;  %11718 = vmatmul.mubr.f32.gmra.mrb[50].mxu1 %v14499_v3 }
 0x2d7   : > { %11564 = vmatprep.mubr.f32.mxu0 %v14500_v42  ;;  %11720 = vmatprep.mubr.f32.mxu1 %v14500_v42 }
 0x2da   : > { %11565 = vmatmul.mubr.f32.gmra.mrb[52].mxu0 %v14501_v54  ;;  %11721 = vmatmul.mubr.f32.gmra.mrb[52].mxu1 %v14501_v54 }
 0x2db   : > { %11567 = vmatprep.mubr.f32.mxu0 %v14502_v6  ;;  %11723 = vmatprep.mubr.f32.mxu1 %v14502_v6 }
 0x2de   : > { %11568 = vmatmul.mubr.f32.gmra.mrb[54].mxu0 %v14503_v58  ;;  %11724 = vmatmul.mubr.f32.gmra.mrb[54].mxu1 %v14503_v58 }
 0x2df   : > { %11570 = vmatprep.mubr.f32.mxu0 %v14504_v29  ;;  %11726 = vmatprep.mubr.f32.mxu1 %v14504_v29 }
 0x2e2   : > { %11571 = vmatmul.mubr.f32.gmra.mrb[56].mxu0 %v14505_v53  ;;  %11727 = vmatmul.mubr.f32.gmra.mrb[56].mxu1 %v14505_v53 }
 0x2e3   : > { %11573 = vmatprep.mubr.f32.mxu0 %v14506_v2  ;;  %11729 = vmatprep.mubr.f32.mxu1 %v14506_v2 }
 0x2e6   : > { %11574 = vmatmul.mubr.f32.gmra.mrb[58].mxu0 %v14507_v35  ;;  %11730 = vmatmul.mubr.f32.gmra.mrb[58].mxu1 %v14507_v35  ;;  %v14515_v35 = vld [vmem:[#allocation52_spill] sm:$0xff] }
 0x2e7   : > { %11576 = vmatprep.mubr.f32.mxu0 %v14508_v50  ;;  %11732 = vmatprep.mubr.f32.mxu1 %v14508_v50 }
 0x2ea   : > { %11577 = vmatmul.mubr.f32.gmra.mrb[60].mxu0 %v14509_v44  ;;  %11733 = vmatmul.mubr.f32.gmra.mrb[60].mxu1 %v14509_v44 }
 0x2eb   : > { %11579 = vmatprep.mubr.f32.mxu0 %v14510_v28  ;;  %11735 = vmatprep.mubr.f32.mxu1 %v14510_v28 }
 0x2ee   : > { %11580 = vmatmul.mubr.f32.gmra.mrb[62].mxu0 %v14511_v59  ;;  %11736 = vmatmul.mubr.f32.gmra.mrb[62].mxu1 %v14511_v59 }
 0x2ef   : > { %11584 = vmatprep.mubr.f32.mxu0 %v12728_v10  ;;  %11740 = vmatprep.mubr.f32.mxu1 %v12728_v10 }
 0x2f2   : > { %11585 = vmatmul.mubr.f32.vlgmr.msra.gmra.mrb[48].mxu0 %v12743_v18  ;;  %11741 = vmatmul.mubr.f32.vlgmr.msra.gmra.mrb[48].mxu1 %v12743_v18 }
 0x2f3   : > { %11609 = vmatpush3.msra.mxu0 %v13710_v25  ;;  %11765 = vmatpush3.msra.mxu1 %v13712_v56 }
 0x2f4   : > { %11587 = vmatprep.mubr.f32.mxu0 %v12745_v19  ;;  %11743 = vmatprep.mubr.f32.mxu1 %v12745_v19 }
 0x2f6   : > { %11588 = vmatmul.mubr.f32.gmra.mrb[50].mxu0 %v12752_v21  ;;  %11744 = vmatmul.mubr.f32.gmra.mrb[50].mxu1 %v12752_v21 }
 0x2f7   : > { %11590 = vmatprep.mubr.f32.mxu0 %v12774_v30  ;;  %11746 = vmatprep.mubr.f32.mxu1 %v12774_v30 }
 0x2fa   : > { %11591 = vmatmul.mubr.f32.gmra.mrb[52].mxu0 %v12776_v31  ;;  %11747 = vmatmul.mubr.f32.gmra.mrb[52].mxu1 %v12776_v31 }
 0x2fb   : > { %11593 = vmatprep.mubr.f32.mxu0 %v12832_v60  ;;  %11749 = vmatprep.mubr.f32.mxu1 %v12832_v60 }
 0x2fe   : > { %11594 = vmatmul.mubr.f32.gmra.mrb[54].mxu0 %v12837_v62  ;;  %11750 = vmatmul.mubr.f32.gmra.mrb[54].mxu1 %v12837_v62 }
 0x2ff   : > { %11596 = vmatprep.mubr.f32.mxu0 %v12850_v8  ;;  %11752 = vmatprep.mubr.f32.mxu1 %v12850_v8 }
 0x302   : > { %11597 = vmatmul.mubr.f32.gmra.mrb[56].mxu0 %v12857_v11  ;;  %11753 = vmatmul.mubr.f32.gmra.mrb[56].mxu1 %v12857_v11 }
 0x303   : > { %11599 = vmatprep.mubr.f32.mxu0 %v12859_v12  ;;  %11755 = vmatprep.mubr.f32.mxu1 %v12859_v12 }
 0x306   : > { %11600 = vmatmul.mubr.f32.gmra.mrb[58].mxu0 %v12869_v23  ;;  %11756 = vmatmul.mubr.f32.gmra.mrb[58].mxu1 %v12869_v23 }
 0x307   : > { %11602 = vmatprep.mubr.f32.mxu0 %v12885_v41  ;;  %11758 = vmatprep.mubr.f32.mxu1 %v12885_v41 }
 0x30a   : > { %11603 = vmatmul.mubr.f32.gmra.mrb[60].mxu0 %v12917_v61  ;;  %11759 = vmatmul.mubr.f32.gmra.mrb[60].mxu1 %v12917_v61 }
 0x30b   : > { %11605 = vmatprep.mubr.f32.mxu0 %v12939_v47  ;;  %11761 = vmatprep.mubr.f32.mxu1 %v12939_v47 }
 0x30e   : > { %11606 = vmatmul.mubr.f32.gmra.mrb[62].mxu0 %v12954_v55  ;;  %11762 = vmatmul.mubr.f32.gmra.mrb[62].mxu1 %v12954_v55 }
 0x30f   : > { %11610 = vmatprep.mubr.f32.mxu0 %v12728_v10  ;;  %11766 = vmatprep.mubr.f32.mxu1 %v12728_v10 }
 0x312   : > { %11611 = vmatmul.mubr.f32.vlgmr.msra.gmra.mrb[48].mxu0 %v12743_v18  ;;  %11767 = vmatmul.mubr.f32.vlgmr.msra.gmra.mrb[48].mxu1 %v12743_v18 }
 0x313   : > { %11613 = vmatprep.mubr.f32.mxu0 %v12745_v19  ;;  %11769 = vmatprep.mubr.f32.mxu1 %v12745_v19 }
 0x316   : > { %11614 = vmatmul.mubr.f32.gmra.mrb[50].mxu0 %v12752_v21  ;;  %11770 = vmatmul.mubr.f32.gmra.mrb[50].mxu1 %v12752_v21 }
 0x317   : > { %11616 = vmatprep.mubr.f32.mxu0 %v12774_v30  ;;  %11772 = vmatprep.mubr.f32.mxu1 %v12774_v30 }
 0x31a   : > { %11617 = vmatmul.mubr.f32.gmra.mrb[52].mxu0 %v12776_v31  ;;  %11773 = vmatmul.mubr.f32.gmra.mrb[52].mxu1 %v12776_v31 }
 0x31b   : > { %11619 = vmatprep.mubr.f32.mxu0 %v12832_v60  ;;  %11775 = vmatprep.mubr.f32.mxu1 %v12832_v60 }
 0x31e   : > { %11620 = vmatmul.mubr.f32.gmra.mrb[54].mxu0 %v12837_v62  ;;  %11776 = vmatmul.mubr.f32.gmra.mrb[54].mxu1 %v12837_v62 }
 0x31f   : > { %11622 = vmatprep.mubr.f32.mxu0 %v12850_v8  ;;  %11778 = vmatprep.mubr.f32.mxu1 %v12850_v8  ;;  %v14512_v8 = vld [vmem:[#allocation47_spill] sm:$0xff] }
 0x322   : > { %11623 = vmatmul.mubr.f32.gmra.mrb[56].mxu0 %v12857_v11  ;;  %11779 = vmatmul.mubr.f32.gmra.mrb[56].mxu1 %v12857_v11 }
 0x323   : > { %11625 = vmatprep.mubr.f32.mxu0 %v12859_v12  ;;  %11781 = vmatprep.mubr.f32.mxu1 %v12859_v12 }
 0x325   : > { %v11300_v10 = vpop.f32.mrb[32].mxu0  ;;  %v11456_v18 = vpop.f32.mrb[32].mxu1 }
 0x326   : > { %v5987_v19 = vpop.f32.mrb[33].mxu0  ;;  %v7136_v21 = vpop.f32.mrb[33].mxu1  ;;  %11626 = vmatmul.mubr.f32.gmra.mrb[58].mxu0 %v12869_v23  ;;  %11782 = vmatmul.mubr.f32.gmra.mrb[58].mxu1 %v12869_v23  ;;  %vm6082_vm1 = vcmp.lt.f32.partialorder %v11300_v10, 0.0  ;;  %vm7231_vm2 = vcmp.lt.f32.partialorder %v11456_v18, 0.0  ;;  %v14513_v23 = vld [vmem:[#allocation41_spill] sm:$0xff] }
 0x327   : > { %11628 = vmatprep.mubr.f32.mxu0 %v12885_v41  ;;  %11784 = vmatprep.mubr.f32.mxu1 %v12885_v41  ;;  %vm6081_vm3 = vcmp.lt.f32.partialorder %v5987_v19, 0.0  ;;  %vm7230_vm4 = vcmp.lt.f32.partialorder %v7136_v21, 0.0  ;;  %v6098_v11 = vsel %vm6082_vm1, %v14512_v8, inf  ;;  %v7247_v12 = vsel %vm7231_vm2, %v14512_v8, inf }
 0x328   : > { %v6097_v41 = vsel %vm6081_vm3, %v14513_v23, inf  ;;  %v7246_v25 = vsel %vm7230_vm4, %v14513_v23, inf }
 0x329   : > { %v11303_v30 = vpop.f32.mrb[34].mxu0  ;;  %v11459_v31 = vpop.f32.mrb[34].mxu1 }
 0x32a   : > { %v5999_v60 = vpop.f32.mrb[35].mxu0  ;;  %v7148_v62 = vpop.f32.mrb[35].mxu1  ;;  %11629 = vmatmul.mubr.f32.gmra.mrb[60].mxu0 %v12917_v61  ;;  %11785 = vmatmul.mubr.f32.gmra.mrb[60].mxu1 %v12917_v61  ;;  %vm6084_vm5 = vcmp.lt.f32.partialorder %v11303_v30, 0.0  ;;  %vm7233_vm6 = vcmp.lt.f32.partialorder %v11459_v31, 0.0 }
 0x32b   : > { %11631 = vmatprep.mubr.f32.mxu0 %v12939_v47  ;;  %11787 = vmatprep.mubr.f32.mxu1 %v12939_v47  ;;  %vm6083_vm7 = vcmp.lt.f32.partialorder %v5999_v60, 0.0  ;;  %vm7232_vm8 = vcmp.lt.f32.partialorder %v7148_v62, 0.0  ;;  %v14514_v47 = vld [vmem:[#allocation48_spill] sm:$0xff]  ;;  %v6100_v17 = vsel %vm6084_vm5, %v13437_v51, inf  ;;  %v7249_v63 = vsel %vm7233_vm6, %v13437_v51, inf }
 0x32c   : > { %v6099_v48 = vsel %vm6083_vm7, %v13419_v4, inf  ;;  %v7248_v0 = vsel %vm7232_vm8, %v13419_v4, inf }
 0x32d   : > { %v11306_v56 = vpop.f32.mrb[36].mxu0  ;;  %v11462_v14 = vpop.f32.mrb[36].mxu1 }
 0x32e   : > { %vm6086_vm9 = vcmp.lt.f32.partialorder %v11306_v56, 0.0  ;;  %vm7235_vm10 = vcmp.lt.f32.partialorder %v11462_v14, 0.0  ;;  %v6011_v61 = vpop.f32.mrb[37].mxu0  ;;  %v7160_v1 = vpop.f32.mrb[37].mxu1  ;;  %11632 = vmatmul.mubr.f32.gmra.mrb[62].mxu0 %v12954_v55  ;;  %11788 = vmatmul.mubr.f32.gmra.mrb[62].mxu1 %v12954_v55 }
 0x32f   : > { %v6102_v7 = vsel %vm6086_vm9, %v14514_v47, inf  ;;  %v7251_v9 = vsel %vm7235_vm10, %v14514_v47, inf  ;;  %vm6085_vm11 = vcmp.lt.f32.partialorder %v6011_v61, 0.0  ;;  %vm7234_vm12 = vcmp.lt.f32.partialorder %v7160_v1, 0.0 }
 0x330   : > { %v6114_v49 = vmin.f32 %v6098_v11, %v6102_v7  ;;  %v7263_v37 = vmin.f32 %v7247_v12, %v7251_v9  ;;  %v6101_v20 = vsel %vm6085_vm11, %v14472_v40, inf  ;;  %v7250_v52 = vsel %vm7234_vm12, %v14472_v40, inf }
 0x331   : > { %v6113_v33 = vmin.f32 %v6097_v41, %v6101_v20  ;;  %v7262_v55 = vmin.f32 %v7246_v25, %v7250_v52  ;;  %v11309_v26 = vpop.f32.mrb[38].mxu0  ;;  %v11465_v45 = vpop.f32.mrb[38].mxu1 }
 0x332   : > { %vm6088_vm13 = vcmp.lt.f32.partialorder %v11309_v26, 0.0  ;;  %vm7237_vm14 = vcmp.lt.f32.partialorder %v11465_v45, 0.0  ;;  %v6023_v15 = vpop.f32.mrb[39].mxu0  ;;  %v7172_v57 = vpop.f32.mrb[39].mxu1 }
 0x333   : > { %v6104_v38 = vsel %vm6088_vm13, %v14473_v46, inf  ;;  %v7253_v24 = vsel %vm7237_vm14, %v14473_v46, inf  ;;  %vm6087_vm15 = vcmp.lt.f32.partialorder %v6023_v15, 0.0  ;;  %vm7236_vm0 = vcmp.lt.f32.partialorder %v7172_v57, 0.0 }
 0x334   : > { %v6116_v16 = vmin.f32 %v6100_v17, %v6104_v38  ;;  %v7265_v43 = vmin.f32 %v7249_v63, %v7253_v24  ;;  %v6103_v3 = vsel %vm6087_vm15, %v14474_v5, inf  ;;  %v7252_v42 = vsel %vm7236_vm0, %v14474_v5, inf }
 0x335   : > { %v6115_v54 = vmin.f32 %v6099_v48, %v6103_v3  ;;  %v7264_v6 = vmin.f32 %v7248_v0, %v7252_v42  ;;  %v11312_v58 = vpop.f32.mrb[40].mxu0  ;;  %v11468_v29 = vpop.f32.mrb[40].mxu1 }
 0x336   : > { %vm6090_vm1 = vcmp.lt.f32.partialorder %v11312_v58, 0.0  ;;  %vm7239_vm2 = vcmp.lt.f32.partialorder %v11468_v29, 0.0  ;;  %v6035_v53 = vpop.f32.mrb[41].mxu0  ;;  %v7184_v2 = vpop.f32.mrb[41].mxu1 }
 0x337   : > { %v6106_v50 = vsel %vm6090_vm1, %v14515_v35, inf  ;;  %v7255_v44 = vsel %vm7239_vm2, %v14515_v35, inf  ;;  %vm6089_vm3 = vcmp.lt.f32.partialorder %v6035_v53, 0.0  ;;  %vm7238_vm4 = vcmp.lt.f32.partialorder %v7184_v2, 0.0 }
 0x338   : > { %v6118_v28 = vmin.f32 %v6114_v49, %v6106_v50  ;;  %v7267_v59 = vmin.f32 %v7263_v37, %v7255_v44  ;;  %v6105_v10 = vsel %vm6089_vm3, %v13469_v32, inf  ;;  %v7254_v18 = vsel %vm7238_vm4, %v13469_v32, inf }
 0x339   : > { %v6117_v19 = vmin.f32 %v6113_v33, %v6105_v10  ;;  %v7266_v21 = vmin.f32 %v7262_v55, %v7254_v18  ;;  %v11315_v30 = vpop.f32.mrb[42].mxu0  ;;  %v11471_v31 = vpop.f32.mrb[42].mxu1 }
 0x33a   : > { %vm6092_vm5 = vcmp.lt.f32.partialorder %v11315_v30, 0.0  ;;  %vm7241_vm6 = vcmp.lt.f32.partialorder %v11471_v31, 0.0  ;;  %v6047_v60 = vpop.f32.mrb[43].mxu0  ;;  %v7196_v62 = vpop.f32.mrb[43].mxu1 }
 0x33b   : > { %v6108_v11 = vsel %vm6092_vm5, %v13497_v13, inf  ;;  %v7257_v12 = vsel %vm7241_vm6, %v13497_v13, inf  ;;  %vm6091_vm7 = vcmp.lt.f32.partialorder %v6047_v60, 0.0  ;;  %vm7240_vm8 = vcmp.lt.f32.partialorder %v7196_v62, 0.0 }
 0x33c   : > { %v6120_v41 = vmin.f32 %v6116_v16, %v6108_v11  ;;  %v7269_v25 = vmin.f32 %v7265_v43, %v7257_v12  ;;  %v6107_v56 = vsel %vm6091_vm7, %v13499_v27, inf  ;;  %v7256_v14 = vsel %vm7240_vm8, %v13499_v27, inf  ;;  %v6134_v11 = vld [vmem:[%s12713_s23 + $0x4] sm:$0x1]  ;;  %v7283_v12 = vld [vmem:[%s12713_s23 + $0x5] sm:$0x1] }
 0x33d   : > { %v6119_v61 = vmin.f32 %v6115_v54, %v6107_v56  ;;  %v7268_v1 = vmin.f32 %v7264_v6, %v7256_v14  ;;  %v11318_v7 = vpop.f32.mrb[44].mxu0  ;;  %v11474_v9 = vpop.f32.mrb[44].mxu1 }
 0x33e   : > { %vm6094_vm9 = vcmp.lt.f32.partialorder %v11318_v7, 0.0  ;;  %vm7243_vm10 = vcmp.lt.f32.partialorder %v11474_v9, 0.0  ;;  %v6059_v49 = vpop.f32.mrb[45].mxu0  ;;  %v7208_v37 = vpop.f32.mrb[45].mxu1 }
 0x33f   : > { %v6110_v20 = vsel %vm6094_vm9, %v13547_v34, inf  ;;  %v7259_v52 = vsel %vm7243_vm10, %v13547_v34, inf  ;;  %vm6093_vm11 = vcmp.lt.f32.partialorder %v6059_v49, 0.0  ;;  %vm7242_vm12 = vcmp.lt.f32.partialorder %v7208_v37, 0.0 }
 0x340   : > { %v6122_v17 = vmin.f32 %v6118_v28, %v6110_v20  ;;  %v7271_v63 = vmin.f32 %v7267_v59, %v7259_v52  ;;  %v6109_v33 = vsel %vm6093_vm11, %v13549_v36, inf  ;;  %v7258_v55 = vsel %vm7242_vm12, %v13549_v36, inf }
 0x341   : > { %v6121_v26 = vmin.f32 %v6117_v19, %v6109_v33  ;;  %v7270_v45 = vmin.f32 %v7266_v21, %v7258_v55  ;;  %v11321_v48 = vpop.f32.mrb[46].mxu0  ;;  %v11477_v0 = vpop.f32.mrb[46].mxu1 }
 0x342   : > { %vm6096_vm13 = vcmp.lt.f32.partialorder %v11321_v48, 0.0  ;;  %vm7245_vm14 = vcmp.lt.f32.partialorder %v11477_v0, 0.0  ;;  %v6071_v15 = vpop.f32.mrb[47].mxu0  ;;  %v7220_v57 = vpop.f32.mrb[47].mxu1 }
 0x343   : > { %v6125_v38 = vmin.f32 %v6121_v26, %v6122_v17  ;;  %v7274_v24 = vmin.f32 %v7270_v45, %v7271_v63  ;;  %v6112_v16 = vsel %vm6096_vm13, %v13571_v22, inf  ;;  %v7261_v43 = vsel %vm7245_vm14, %v13571_v22, inf }
 0x344   : > { %v6124_v3 = vmin.f32 %v6120_v41, %v6112_v16  ;;  %v7273_v42 = vmin.f32 %v7269_v25, %v7261_v43  ;;  %vm6095_vm15 = vcmp.lt.f32.partialorder %v6071_v15, 0.0  ;;  %vm7244_vm0 = vcmp.lt.f32.partialorder %v7220_v57, 0.0 }
 0x345   : > { %v6111_v54 = vsel %vm6095_vm15, %v13573_v39, inf  ;;  %v7260_v6 = vsel %vm7244_vm0, %v13573_v39, inf }
 0x346   : > { %v6123_v58 = vmin.f32 %v6119_v61, %v6111_v54  ;;  %v7272_v29 = vmin.f32 %v7268_v1, %v7260_v6 }
 0x348   : > { %v6126_v53 = vmin.f32 %v6123_v58, %v6124_v3  ;;  %v7275_v2 = vmin.f32 %v7272_v29, %v7273_v42 }
 0x34a   : > { %v6127_v50 = vmin.f32 %v6125_v38, %v6126_v53  ;;  %v7276_v44 = vmin.f32 %v7274_v24, %v7275_v2 }
 0x34c   : > { %v6128_v28 = vrot.slane %v6127_v50, 4  ;;  %v7277_v59 = vrot.slane %v7276_v44, 4 }
 0x34e   : > { %v6129_v10 = vmin.f32 %v6127_v50, %v6128_v28  ;;  %v7278_v18 = vmin.f32 %v7276_v44, %v7277_v59 }
 0x350   : > { %v6130_v19 = vrot.slane %v6129_v10, 2  ;;  %v7279_v21 = vrot.slane %v7278_v18, 2 }
 0x352   : > { %v6131_v30 = vmin.f32 %v6129_v10, %v6130_v19  ;;  %v7280_v31 = vmin.f32 %v7278_v18, %v7279_v21 }
 0x354   : > { %v6132_v60 = vrot.slane %v6131_v30, 1  ;;  %v7281_v62 = vrot.slane %v7280_v31, 1 }
 0x356   : > { %v6133_v41 = vmin.f32 %v6131_v30, %v6132_v60  ;;  %v7282_v25 = vmin.f32 %v7280_v31, %v7281_v62 }
 0x358   : > { %v6135_v56 = vmin.f32 %v6134_v11, %v6133_v41  ;;  %v7284_v14 = vmin.f32 %v7283_v12, %v7282_v25 }
 0x35a   : > { %6136 = vst [vmem:[%s12713_s23 + $0x4] sm:$0x1] %v6135_v56  ;;  %7285 = vst [vmem:[%s12713_s23 + $0x5] sm:$0x1] %v7284_v14 }
 0x3e5   : > { %v11612_v61 = vpop.f32.mrb[48].mxu0  ;;  %v11768_v1 = vpop.f32.mrb[48].mxu1 }
 0x3e6   : > { %v8285_v7 = vpop.f32.mrb[49].mxu0  ;;  %v9434_v9 = vpop.f32.mrb[49].mxu1  ;;  %vm8380_vm1 = vcmp.lt.f32.partialorder %v11612_v61, 0.0  ;;  %vm9529_vm2 = vcmp.lt.f32.partialorder %v11768_v1, 0.0 }
 0x3e7   : > { %vm8379_vm3 = vcmp.lt.f32.partialorder %v8285_v7, 0.0  ;;  %vm9528_vm4 = vcmp.lt.f32.partialorder %v9434_v9, 0.0  ;;  %v8396_v17 = vsel %vm8380_vm1, %v14512_v8, inf  ;;  %v9545_v63 = vsel %vm9529_vm2, %v14512_v8, inf }
 0x3e8   : > { %v8395_v33 = vsel %vm8379_vm3, %v14513_v23, inf  ;;  %v9544_v55 = vsel %vm9528_vm4, %v14513_v23, inf }
 0x3e9   : > { %v11615_v49 = vpop.f32.mrb[50].mxu0  ;;  %v11771_v37 = vpop.f32.mrb[50].mxu1 }
 0x3ea   : > { %v8297_v20 = vpop.f32.mrb[51].mxu0  ;;  %v9446_v52 = vpop.f32.mrb[51].mxu1  ;;  %vm8382_vm5 = vcmp.lt.f32.partialorder %v11615_v49, 0.0  ;;  %vm9531_vm6 = vcmp.lt.f32.partialorder %v11771_v37, 0.0 }
 0x3eb   : > { %vm8381_vm7 = vcmp.lt.f32.partialorder %v8297_v20, 0.0  ;;  %vm9530_vm8 = vcmp.lt.f32.partialorder %v9446_v52, 0.0  ;;  %v8398_v16 = vsel %vm8382_vm5, %v13437_v51, inf  ;;  %v9547_v43 = vsel %vm9531_vm6, %v13437_v51, inf }
 0x3ec   : > { %v9546_v58 = vsel %vm9530_vm8, %v13419_v4, inf }
 0x3ed   : > { %v11618_v26 = vpop.f32.mrb[52].mxu0  ;;  %v11774_v45 = vpop.f32.mrb[52].mxu1 }
 0x3ee   : > { %vm8384_vm9 = vcmp.lt.f32.partialorder %v11618_v26, 0.0  ;;  %vm9533_vm10 = vcmp.lt.f32.partialorder %v11774_v45, 0.0  ;;  %v8309_v48 = vpop.f32.mrb[53].mxu0  ;;  %v9458_v0 = vpop.f32.mrb[53].mxu1 }
 0x3ef   : > { %v8400_v15 = vsel %vm8384_vm9, %v14514_v47, inf  ;;  %v9549_v57 = vsel %vm9533_vm10, %v14514_v47, inf  ;;  %vm8383_vm11 = vcmp.lt.f32.partialorder %v8309_v48, 0.0  ;;  %vm9532_vm12 = vcmp.lt.f32.partialorder %v9458_v0, 0.0 }
 0x3f0   : > { %v8412_v8 = vmin.f32 %v8396_v17, %v8400_v15  ;;  %v9561_v38 = vmin.f32 %v9545_v63, %v9549_v57  ;;  %v8399_v23 = vsel %vm8383_vm11, %v14472_v40, inf  ;;  %v9548_v24 = vsel %vm9532_vm12, %v14472_v40, inf }
 0x3f1   : > { %v8411_v3 = vmin.f32 %v8395_v33, %v8399_v23  ;;  %v9560_v42 = vmin.f32 %v9544_v55, %v9548_v24  ;;  %v11621_v54 = vpop.f32.mrb[54].mxu0  ;;  %v11777_v6 = vpop.f32.mrb[54].mxu1  ;;  %v8397_v47 = vsel %vm8381_vm7, %v13419_v4, inf }
 0x3f2   : > { %vm8386_vm13 = vcmp.lt.f32.partialorder %v11621_v54, 0.0  ;;  %vm9535_vm14 = vcmp.lt.f32.partialorder %v11777_v6, 0.0  ;;  %v8321_v29 = vpop.f32.mrb[55].mxu0  ;;  %v9470_v40 = vpop.f32.mrb[55].mxu1 }
 0x3f3   : > { %v8402_v53 = vsel %vm8386_vm13, %v14473_v46, inf  ;;  %v9551_v2 = vsel %vm9535_vm14, %v14473_v46, inf  ;;  %vm8385_vm15 = vcmp.lt.f32.partialorder %v8321_v29, 0.0  ;;  %vm9534_vm0 = vcmp.lt.f32.partialorder %v9470_v40, 0.0 }
 0x3f4   : > { %v8414_v51 = vmin.f32 %v8398_v16, %v8402_v53  ;;  %v9563_v50 = vmin.f32 %v9547_v43, %v9551_v2  ;;  %v8401_v44 = vsel %vm8385_vm15, %v14474_v5, inf  ;;  %v9550_v28 = vsel %vm9534_vm0, %v14474_v5, inf }
 0x3f5   : > { %v8413_v59 = vmin.f32 %v8397_v47, %v8401_v44  ;;  %v9562_v10 = vmin.f32 %v9546_v58, %v9550_v28  ;;  %v11624_v18 = vpop.f32.mrb[56].mxu0  ;;  %v11780_v4 = vpop.f32.mrb[56].mxu1 }
 0x3f6   : > { %vm8388_vm1 = vcmp.lt.f32.partialorder %v11624_v18, 0.0  ;;  %vm9537_vm2 = vcmp.lt.f32.partialorder %v11780_v4, 0.0  ;;  %v8333_v19 = vpop.f32.mrb[57].mxu0  ;;  %v9482_v21 = vpop.f32.mrb[57].mxu1  ;;  %v8432_v18 = vld [vmem:[%s12713_s23 + $0x6] sm:$0x1] }
 0x3f7   : > { %v8404_v30 = vsel %vm8388_vm1, %v14515_v35, inf  ;;  %v9553_v46 = vsel %vm9537_vm2, %v14515_v35, inf  ;;  %vm8387_vm3 = vcmp.lt.f32.partialorder %v8333_v19, 0.0  ;;  %vm9536_vm4 = vcmp.lt.f32.partialorder %v9482_v21, 0.0  ;;  %v9581_v4 = vld [vmem:[%s12713_s23 + $0x7] sm:$0x1] }
 0x3f8   : > { %v8416_v31 = vmin.f32 %v8412_v8, %v8404_v30  ;;  %v9565_v60 = vmin.f32 %v9561_v38, %v9553_v46  ;;  %v8403_v62 = vsel %vm8387_vm3, %v13469_v32, inf  ;;  %v9552_v5 = vsel %vm9536_vm4, %v13469_v32, inf }
 0x3f9   : > { %v8415_v11 = vmin.f32 %v8411_v3, %v8403_v62  ;;  %v9564_v12 = vmin.f32 %v9560_v42, %v9552_v5  ;;  %v11627_v41 = vpop.f32.mrb[58].mxu0  ;;  %v11783_v25 = vpop.f32.mrb[58].mxu1 }
 0x3fa   : > { %vm8390_vm5 = vcmp.lt.f32.partialorder %v11627_v41, 0.0  ;;  %vm9539_vm6 = vcmp.lt.f32.partialorder %v11783_v25, 0.0  ;;  %v8345_v56 = vpop.f32.mrb[59].mxu0  ;;  %v9494_v14 = vpop.f32.mrb[59].mxu1 }
 0x3fb   : > { %v8406_v61 = vsel %vm8390_vm5, %v13497_v13, inf  ;;  %v9555_v35 = vsel %vm9539_vm6, %v13497_v13, inf  ;;  %vm8389_vm7 = vcmp.lt.f32.partialorder %v8345_v56, 0.0  ;;  %vm9538_vm8 = vcmp.lt.f32.partialorder %v9494_v14, 0.0 }
 0x3fc   : > { %v8418_v1 = vmin.f32 %v8414_v51, %v8406_v61  ;;  %v9567_v7 = vmin.f32 %v9563_v50, %v9555_v35  ;;  %v8405_v9 = vsel %vm8389_vm7, %v13499_v27, inf  ;;  %v9554_v32 = vsel %vm9538_vm8, %v13499_v27, inf }
 0x3fd   : > { %v8417_v49 = vmin.f32 %v8413_v59, %v8405_v9  ;;  %v9566_v37 = vmin.f32 %v9562_v10, %v9554_v32  ;;  %v11630_v20 = vpop.f32.mrb[60].mxu0  ;;  %v11786_v52 = vpop.f32.mrb[60].mxu1 }
 0x3fe   : > { %vm8392_vm9 = vcmp.lt.f32.partialorder %v11630_v20, 0.0  ;;  %vm9541_vm10 = vcmp.lt.f32.partialorder %v11786_v52, 0.0  ;;  %v8357_v17 = vpop.f32.mrb[61].mxu0  ;;  %v9506_v63 = vpop.f32.mrb[61].mxu1 }
 0x3ff   : > { %v8408_v33 = vsel %vm8392_vm9, %v13547_v34, inf  ;;  %v9557_v13 = vsel %vm9541_vm10, %v13547_v34, inf  ;;  %vm8391_vm11 = vcmp.lt.f32.partialorder %v8357_v17, 0.0  ;;  %vm9540_vm12 = vcmp.lt.f32.partialorder %v9506_v63, 0.0 }
 0x400   : > { %v8420_v55 = vmin.f32 %v8416_v31, %v8408_v33  ;;  %v9569_v26 = vmin.f32 %v9565_v60, %v9557_v13  ;;  %v8407_v45 = vsel %vm8391_vm11, %v13549_v36, inf  ;;  %v9556_v27 = vsel %vm9540_vm12, %v13549_v36, inf }
 0x401   : > { %v8419_v48 = vmin.f32 %v8415_v11, %v8407_v45  ;;  %v9568_v0 = vmin.f32 %v9564_v12, %v9556_v27  ;;  %v11633_v15 = vpop.f32.mrb[62].mxu0  ;;  %v11789_v57 = vpop.f32.mrb[62].mxu1 }
 0x402   : > { %vm8394_vm13 = vcmp.lt.f32.partialorder %v11633_v15, 0.0  ;;  %vm9543_vm14 = vcmp.lt.f32.partialorder %v11789_v57, 0.0  ;;  %v8369_v8 = vpop.f32.mrb[63].mxu0  ;;  %v9518_v38 = vpop.f32.mrb[63].mxu1 }
 0x403   : > { %v8423_v23 = vmin.f32 %v8419_v48, %v8420_v55  ;;  %v9572_v24 = vmin.f32 %v9568_v0, %v9569_v26  ;;  %v8410_v34 = vsel %vm8394_vm13, %v13571_v22, inf  ;;  %v9559_v16 = vsel %vm9543_vm14, %v13571_v22, inf }
 0x404   : > { %v8422_v43 = vmin.f32 %v8418_v1, %v8410_v34  ;;  %v9571_v3 = vmin.f32 %v9567_v7, %v9559_v16  ;;  %vm8393_vm15 = vcmp.lt.f32.partialorder %v8369_v8, 0.0  ;;  %vm9542_vm0 = vcmp.lt.f32.partialorder %v9518_v38, 0.0 }
 0x405   : > { %v8409_v36 = vsel %vm8393_vm15, %v13573_v39, inf  ;;  %v9558_v42 = vsel %vm9542_vm0, %v13573_v39, inf }
 0x406   : > { %v8421_v54 = vmin.f32 %v8417_v49, %v8409_v36  ;;  %v9570_v6 = vmin.f32 %v9566_v37, %v9558_v42 }
 0x408   : > { %v8424_v47 = vmin.f32 %v8421_v54, %v8422_v43  ;;  %v9573_v58 = vmin.f32 %v9570_v6, %v9571_v3 }
 0x40a   : > { %v8425_v29 = vmin.f32 %v8423_v23, %v8424_v47  ;;  %v9574_v40 = vmin.f32 %v9572_v24, %v9573_v58 }
 0x40c   : > { %v8426_v53 = vrot.slane %v8425_v29, 4  ;;  %v9575_v2 = vrot.slane %v9574_v40, 4 }
 0x40e   : > { %v8427_v22 = vmin.f32 %v8425_v29, %v8426_v53  ;;  %v9576_v51 = vmin.f32 %v9574_v40, %v9575_v2 }
 0x410   : > { %v8428_v50 = vrot.slane %v8427_v22, 2  ;;  %v9577_v44 = vrot.slane %v9576_v51, 2 }
 0x412   : > { %v8429_v28 = vmin.f32 %v8427_v22, %v8428_v50  ;;  %v9578_v59 = vmin.f32 %v9576_v51, %v9577_v44 }
 0x414   : > { %v8430_v10 = vrot.slane %v8429_v28, 1  ;;  %v9579_v39 = vrot.slane %v9578_v59, 1  ;;  %9587 = sbr.rel (%p9721_p1) target bundleno = 1063 (0x427), region = 40 }
 0x416   : > { %v8431_v19 = vmin.f32 %v8429_v28, %v8430_v10  ;;  %v9580_v21 = vmin.f32 %v9578_v59, %v9579_v39 }
 0x418   : > { %v8433_v30 = vmin.f32 %v8432_v18, %v8431_v19  ;;  %v9582_v46 = vmin.f32 %v9581_v4, %v9580_v21 }
 0x41a   : > { %8434 = vst [vmem:[%s12713_s23 + $0x6] sm:$0x1] %v8433_v30  ;;  %9583 = vst [vmem:[%s12713_s23 + $0x7] sm:$0x1] %v9582_v46 }
 0x421   : > { %v9588_v31 = vld [vmem:[%s12713_s23] sm:$0xff] }
 0x422   : > { %v9589_v60 = vand.u32 2147483647, %v9588_v31 }
 0x424   : > { %vm9590_vm1 = vcmp.eq.f32.partialorder %v9589_v60, inf }
 0x425   : > { %v9591_v62 = vsel %vm9590_vm1, -1.0, %v9588_v31 }
 0x426   : > { %9592 = vst [vmem:[%s12713_s23] sm:$0xff] %v9591_v62 }
 0x427 PF: > { %s9723_s29 = sshll.u32 %s12587_s16, 7  ;;  %s9607_s15 = sshll.u32 %s12713_s23, 4  ;;  %s9608_s15 = int_to_ptr.vmem [resolvable:$true] %s9607_s15 }
 0x428   : > { %s14165_s5 = scalar_lea.hbm %s14218_s3, %s9723_s29  ;;  %s14516_s6 = sand.u32 1, %s12575_s13  }
 0x429   : > { %s9594_s7 = scalar_lea.sflag [#allocation3], %s14516_s6  ;;  %s12505_s8 = scalar_lea.vmem %s9608_s15, 128 }
 0x42a   : > { %p12506_p2 = scmp.ne.s32.totalorder %s9608_s15, %s12505_s8  ;;  %s12603_s9 = smov [#allocation2]  }
 0x42b   : > { %s12509_s10 = sshll.u32 %s12603_s9, 4  ;;  %s12510_s10 = int_to_ptr.vmem [resolvable:$false] %s12509_s10 }
 0x42c   : > { %p12507_p4 = pnand %p12506_p2, %p12673_p3  ;;  %s12511_s11 = scalar_lea.vmem %s12510_s10, 256 }
 0x42d   : > { %p12512_p6 = scmp.lt.s32.totalorder %s9608_s15, %s12510_s10  ;;  %p12513_p7 = scmp.lt.s32.totalorder %s12511_s11, %s12505_s8 }
 0x42e   : > { %p12508_p5 = pneg %p12507_p4 }
 0x42f   : > { %p12514_p8 = por %p12513_p7, %p12512_p6 }
 0x431   : > { %p12515_p10 = pnand %p12514_p8, %p12508_p5 }
 0x433   : > { %12518 = shalt.err (!%p12515_p10)
}
 0x434   : > { %s12519_s16 = scalar_lea.hbm %s14165_s5, 128  ;;  %s12523_s21 = scalar_lea.hbm %s14218_s3, 384 }
 0x435   : > { %p12520_p11 = scmp.ne.s32.totalorder %s14165_s5, %s12519_s16  ;;  %p12524_p0 = scmp.lt.u32.totalorder %s14165_s5, %s14218_s3 }
 0x436   : > { %p12525_p1 = scmp.lt.u32.totalorder %s12523_s21, %s12519_s16  ;;  %p12527_p4 = scmp.lt.u32.totalorder %s12519_s16, %s14165_s5 }
 0x437   : > { %p12521_p12 = pnand %p12520_p11, %p12673_p3 }
 0x438   : > { %p12526_p2 = por %p12525_p1, %p12524_p0 }
 0x439   : > { %p12522_p13 = pneg %p12521_p12 }
 0x43a   : > { %p12528_p5 = por %p12527_p4, %p12526_p2 }
 0x43c   : > { %p12529_p6 = pnand %p12528_p5, %p12522_p13 }
 0x43e   : > { %12532 = shalt.err (!%p12529_p6)
}
 0x43f   : > { %12430 = dma.vmem_to_hbm [thread:$0]  (%p12673_p3), %s9608_s15, 128, %s14165_s5, %s9594_s7  }
 0x440 PF: > { %p12436_p7 = scmp.ge.s32.totalorder %s12599_s19, 2  ;;  %s9619_s29 = sand.u32 1, %s12571_s12  }
 0x441   : > { %s9620_s30 = scalar_lea.sflag [#allocation3], %s9619_s29 }
 0x442   : > { %p12433_p8 = pnand %p12436_p7, %p12683_p9 }
 0x444   : > { %12566 = dma.done.wait (!%p12433_p8), %s9620_s30, 128  }
 0x445   : > { %12568 = vsyncadd (!%p12433_p8), %s9620_s30, 4294967168  ;;  %s16_s19 = sadd.s32 1, %s12599_s19   ;;  %s14517_s24 = sld [smem:[#allocation5_spill]] }
 0x446   : > { %p13_p10 = scmp.ge.s32.totalorder %s16_s19, 11   ;;  %s14518_s12 = smov %s12575_s13 }
 0x447   : > { %s14519_s13 = smov %s12579_s14  ;;  %s14520_s14 = smov %s12691_s28 }
 0x448   : > { %s14521_s15 = smov %s12591_s17  ;;  %s14522_s16 = smov %s12595_s18 }
 0x449   : > { %s14523_s17 = smov %s14526_s22  ;;  %15 = sbr.rel (!%p13_p10) target bundleno = 5 (0x5), region = 88 }
 0x44b   : > { %s14524_s18 = smov %s14517_s24 }
 0x450   :  { %9625 = vsyncpa [#allocation3], 1 }
 0x451   :  { %9627 = vsyncpa [#allocation3 + $0x1], 1 }

</bundles_post_ra>
